<compile_context>
chip_gen: v7x
topology: tpu7x:2x2x1
jax: 0.10.0
libtpu: 0.0.40
codegen_flags: <defaults>
</compile_context>

<pallas_src>
import functools

import numpy as np
import jax
import jax.numpy as jnp
from jax import lax
from jax.experimental import pallas as pl
from jax.experimental.pallas import tpu as pltpu

NORMAL_CONCAT = [0, 3, 4, 6]


# ----------------------------------------------------------------------------
# The fused cell kernel (one program per image).
# ----------------------------------------------------------------------------

def _cell_kernel(*refs, names, W, pad):
    n_params = len(names)
    x_ref, widx_ref, invc_ref = refs[0], refs[1], refs[2]
    pr = dict(zip(names, refs[3:3 + n_params]))
    o_ref = refs[3 + n_params]
    padc_ref = refs[4 + n_params]      # (HW + 2*pad, C)  zero-halo scratch
    padq_ref = refs[5 + n_params]      # (HW + 2*pad, Cq) zero-halo scratch

    HW = x_ref.shape[0]

    # Zero the scratch buffers once; only the interior is ever rewritten, so
    # the halo rows stay zero (they implement the spatial zero padding).
    padc_ref[...] = jnp.zeros_like(padc_ref)
    padq_ref[...] = jnp.zeros_like(padq_ref)

    x = x_ref[...]                     # (HW, C_prev) f32
    w_idx = widx_ref[...]              # (HW, 1) f32: column index w of each row
    inv_cnt = invc_ref[...]            # (HW, 1) f32: 1 / (valid 3x3 window size)

    def affine_mm(z, w_ref, s_ref, b_ref):
        """ReLU -> 1x1 conv (bias free, bf16 MXU) -> folded BatchNorm."""
        zr = jnp.maximum(z, 0.0).astype(jnp.bfloat16)
        acc = jnp.dot(zr, w_ref[...], preferred_element_type=jnp.float32)
        return acc * s_ref[...] + b_ref[...]

    def conv1x1(z, p):
        return affine_mm(z, pr[p + "_w"], pr[p + "_s"], pr[p + "_b"])

    def shifted_w(scratch, z, deltas):
        """out[r] = z[r+d] if it stays in the same image row (w+d in [0,W)), else 0."""
        scratch[pl.ds(pad, HW), :] = z
        outs = []
        for d in deltas:
            v = scratch[pl.ds(pad + d, HW), :]
            if d != 0:
                wb = jnp.broadcast_to(w_idx, v.shape)
                valid = (wb + float(d) >= 0.0) & (wb + float(d) <= float(W - 1))
                v = jnp.where(valid, v, 0.0)
            outs.append(v)
        return outs

    def shifted_h(scratch, z, deltas):
        """out[r] = z[r + d*W]; rows outside the image read the zero halo."""
        scratch[pl.ds(pad, HW), :] = z
        return [scratch[pl.ds(pad + d * W, HW), :] for d in deltas]

    def avg_pool_3x3(z):
        """AvgPool2d(3, stride=1, padding=1, count_include_pad=False), VPU only."""
        zl, zr_ = shifted_w(padc_ref, z, (-1, 1))
        row = z + zl + zr_
        up, dn = shifted_h(padc_ref, row, (-1, 1))
        return (row + up + dn) * inv_cnt

    def sep_conv7(z, taps_ref, horizontal):
        """ReLU -> 7-tap bias-free conv along W (horizontal) or H (vertical)."""
        zr = jnp.maximum(z, 0.0)
        if horizontal:
            sh = shifted_w(padq_ref, zr, tuple(range(-3, 4)))
        else:
            sh = shifted_h(padq_ref, zr, tuple(range(-3, 4)))
        acc = jnp.dot(sh[0].astype(jnp.bfloat16), taps_ref[0],
                      preferred_element_type=jnp.float32)
        for k in range(1, 7):
            acc = acc + jnp.dot(sh[k].astype(jnp.bfloat16), taps_ref[k],
                                preferred_element_type=jnp.float32)
        return acc

    def conv_1x7_7x1(z, p):
        q = affine_mm(z, pr[p + "_w1"], pr[p + "_s1"], pr[p + "_b1"])
        q = sep_conv7(q, pr[p + "_w17"], True) * pr[p + "_s2"][...] + pr[p + "_b2"][...]
        q = sep_conv7(q, pr[p + "_w71"], False) * pr[p + "_s3"][...] + pr[p + "_b3"][...]
        return affine_mm(q, pr[p + "_w2"], pr[p + "_s4"], pr[p + "_b4"])

    # ----- normal-cell wiring (NORMAL_OPERATIONS), pair-adds fused in-kernel --
    s0 = conv1x1(x, "r1")                                   # _states[0] = reduce1(x)
    s1 = conv1x1(x, "r2")                                   # _states[1] = reduce2(x)
    s2 = conv1x1(s1, "op0") + avg_pool_3x3(s1)              # (1,conv_1x1)+(1,max_pool_3x3[avg])
    s3 = s1 + conv_1x7_7x1(s0, "op3")                       # (1,none)+(0,conv_1x7_7x1)
    s4 = conv1x1(s0, "op4") + conv_1x7_7x1(s0, "op5")       # (0,conv_1x1)+(0,conv_1x7_7x1)
    s5 = avg_pool_3x3(s2) + s2                              # (2,max_pool_3x3[avg])+(2,none)
    s6 = avg_pool_3x3(s1) + conv1x1(s5, "op9")              # (1,avg_pool_3x3)+(5,conv_1x1)

    # concat order NORMAL_CONCAT = [0, 3, 4, 6], one slab per concatenated state
    o_ref[0, :, :] = s0
    o_ref[1, :, :] = s3
    o_ref[2, :, :] = s4
    o_ref[3, :, :] = s6


# ----------------------------------------------------------------------------
# Wrapper: NCHW in / NCHW out, single pallas_call over a batch-parallel grid.
# ----------------------------------------------------------------------------

def cell_forward(x_nchw, *, names, values, w_idx, inv_cnt, C, H, W):
    N, C_prev = x_nchw.shape[0], x_nchw.shape[1]
    HW = H * W
    Cq = C // 4
    pad = ((3 * W + 7) // 8) * 8            # halo rows >= 3*W (max shift used)

    x2 = jnp.transpose(x_nchw, (0, 2, 3, 1)).astype(jnp.float32).reshape(N, HW, C_prev)

    kernel = functools.partial(_cell_kernel, names=names, W=W, pad=pad)

    def _const_spec(a):
        zeros = (0,) * a.ndim
        return pl.BlockSpec(tuple(a.shape), lambda n, _z=zeros: _z)

    in_specs = ([pl.BlockSpec((None, HW, C_prev), lambda n: (n, 0, 0)),
                 _const_spec(w_idx), _const_spec(inv_cnt)]
                + [_const_spec(v) for v in values])

    out = pl.pallas_call(
        kernel,
        out_shape=jax.ShapeDtypeStruct((N, 4, HW, C), jnp.float32),
        grid=(N,),
        in_specs=in_specs,
        out_specs=pl.BlockSpec((None, 4, HW, C), lambda n: (n, 0, 0, 0)),
        scratch_shapes=[pltpu.VMEM((HW + 2 * pad, C), jnp.float32),
                        pltpu.VMEM((HW + 2 * pad, Cq), jnp.float32)],
        compiler_params=pltpu.CompilerParams(
            dimension_semantics=("parallel",)),
    )(x2, w_idx, inv_cnt, *values)

    out_nchw = (out.reshape(N, 4, H, W, C)
                   .transpose(0, 1, 4, 2, 3)
                   .reshape(N, 4 * C, H, W))
    return out_nchw, x_nchw                                 # skip = original input


# ----------------------------------------------------------------------------
# Deterministic parameter construction + packing for the kernel.
# ----------------------------------------------------------------------------

def make_params(key, C_prev, C):
    Cq = C // 4
    keys = list(jax.random.split(key, 32))
    it = iter(keys)

    def nk():
        return next(it)

    def bn_fold(k, c):
        k1, k2 = jax.random.split(k)
        gamma = 1.0 + 0.1 * jax.random.normal(k1, (c,), jnp.float32)
        beta = 0.1 * jax.random.normal(k2, (c,), jnp.float32)
        eps = 1e-5   # inference-mode BN with running_mean=0, running_var=1
        return gamma / jnp.sqrt(1.0 + eps), beta

    def conv_w(k, cin, cout):
        return jax.random.normal(k, (cin, cout), jnp.float32) / np.sqrt(cin)

    def sep7_w(k, cq):
        return jax.random.normal(k, (cq, cq, 7), jnp.float32) / np.sqrt(cq * 7)

    def relu_conv_bn_p(cin, cout):
        s, b = bn_fold(nk(), cout)
        return {"w": conv_w(nk(), cin, cout), "s": s, "b": b}

    def conv1771_p():
        p = {}
        p["w1"] = conv_w(nk(), C, Cq)
        p["s1"], p["b1"] = bn_fold(nk(), Cq)
        p["w17_raw"] = sep7_w(nk(), Cq)          # (cout, cin, 7)
        p["s2"], p["b2"] = bn_fold(nk(), Cq)
        p["w71_raw"] = sep7_w(nk(), Cq)
        p["s3"], p["b3"] = bn_fold(nk(), Cq)
        p["w2"] = conv_w(nk(), Cq, C)
        p["s4"], p["b4"] = bn_fold(nk(), C)
        return p

    return {
        "reduce1": relu_conv_bn_p(C_prev, C),
        "reduce2": relu_conv_bn_p(C_prev, C),
        "op0": relu_conv_bn_p(C, C),
        "op3": conv1771_p(),
        "op4": relu_conv_bn_p(C, C),
        "op5": conv1771_p(),
        "op9": relu_conv_bn_p(C, C),
    }


def pack_params(params):
    """Flatten params into the exact kernel inputs: bf16 weights, f32 (1,Cout) scale/bias."""
    flat = {}

    def vec(v):
        return jnp.asarray(v, jnp.float32).reshape(1, -1)

    def put_rcb(prefix, p):
        flat[prefix + "_w"] = jnp.asarray(p["w"], jnp.bfloat16)
        flat[prefix + "_s"] = vec(p["s"])
        flat[prefix + "_b"] = vec(p["b"])

    def put_1771(prefix, p):
        flat[prefix + "_w1"] = jnp.asarray(p["w1"], jnp.bfloat16)
        flat[prefix + "_s1"] = vec(p["s1"])
        flat[prefix + "_b1"] = vec(p["b1"])
        flat[prefix + "_w17"] = jnp.asarray(jnp.transpose(p["w17_raw"], (2, 1, 0)),
                                            jnp.bfloat16)            # (7, cin, cout)
        flat[prefix + "_s2"] = vec(p["s2"])
        flat[prefix + "_b2"] = vec(p["b2"])
        flat[prefix + "_w71"] = jnp.asarray(jnp.transpose(p["w71_raw"], (2, 1, 0)),
                                            jnp.bfloat16)            # (7, cin, cout)
        flat[prefix + "_s3"] = vec(p["s3"])
        flat[prefix + "_b3"] = vec(p["b3"])
        flat[prefix + "_w2"] = jnp.asarray(p["w2"], jnp.bfloat16)
        flat[prefix + "_s4"] = vec(p["s4"])
        flat[prefix + "_b4"] = vec(p["b4"])

    put_rcb("r1", params["reduce1"])
    put_rcb("r2", params["reduce2"])
    put_rcb("op0", params["op0"])
    put_1771("op3", params["op3"])
    put_rcb("op4", params["op4"])
    put_1771("op5", params["op5"])
    put_rcb("op9", params["op9"])
    return tuple(flat.keys()), tuple(flat.values())


def make_spatial_consts(H, W):
    """Per-row column index and 1/count map for the count_include_pad=False pool."""
    w_idx = np.tile(np.arange(W, dtype=np.float32), H).reshape(H * W, 1)
    cw = 3.0 - (np.arange(W) == 0).astype(np.float32) - (np.arange(W) == W - 1).astype(np.float32)
    ch = 3.0 - (np.arange(H) == 0).astype(np.float32) - (np.arange(H) == H - 1).astype(np.float32)
    inv = (1.0 / (ch[:, None] * cw[None, :])).reshape(H * W, 1).astype(np.float32)
    return jnp.asarray(w_idx), jnp.asarray(inv)


# ----------------------------------------------------------------------------
# Pure-JAX (lax) reference for numerical validation of the Pallas path.
# ----------------------------------------------------------------------------

def _ref_conv1x1(x, p):
    k = p["w"][None, None, :, :]
    y = lax.conv_general_dilated(jnp.maximum(x, 0.0), k, (1, 1), [(0, 0), (0, 0)],
                                 dimension_numbers=("NHWC", "HWIO", "NHWC"),
                                 precision=lax.Precision.HIGHEST)
    return y * p["s"] + p["b"]


def _ref_avgpool(x):
    win, std, pad = (1, 3, 3, 1), (1, 1, 1, 1), [(0, 0), (1, 1), (1, 1), (0, 0)]
    ssum = lax.reduce_window(x, 0.0, lax.add, win, std, pad)
    cnt = lax.reduce_window(jnp.ones_like(x), 0.0, lax.add, win, std, pad)
    return ssum / cnt


def _ref_conv1771(x, p):
    z = _ref_conv1x1(x, {"w": p["w1"], "s": p["s1"], "b": p["b1"]})
    k17 = jnp.transpose(p["w17_raw"], (2, 1, 0))[None, :, :, :]      # (1,7,ci,co)
    z = lax.conv_general_dilated(jnp.maximum(z, 0.0), k17, (1, 1), [(0, 0), (3, 3)],
                                 dimension_numbers=("NHWC", "HWIO", "NHWC"),
                                 precision=lax.Precision.HIGHEST)
    z = z * p["s2"] + p["b2"]
    k71 = jnp.transpose(p["w71_raw"], (2, 1, 0))[:, None, :, :]      # (7,1,ci,co)
    z = lax.conv_general_dilated(jnp.maximum(z, 0.0), k71, (1, 1), [(3, 3), (0, 0)],
                                 dimension_numbers=("NHWC", "HWIO", "NHWC"),
                                 precision=lax.Precision.HIGHEST)
    z = z * p["s3"] + p["b3"]
    return _ref_conv1x1(z, {"w": p["w2"], "s": p["s4"], "b": p["b4"]})


def ref_cell_forward(x_nchw, params):
    x = jnp.transpose(x_nchw, (0, 2, 3, 1)).astype(jnp.float32)
    skip = x_nchw
    s1 = _ref_conv1x1(x, params["reduce1"])
    s2 = _ref_conv1x1(x, params["reduce2"])
    states = [s1, s2]
    states.append(_ref_conv1x1(states[1], params["op0"]) + _ref_avgpool(states[1]))
    states.append(states[1] + _ref_conv1771(states[0], params["op3"]))
    states.append(_ref_conv1x1(states[0], params["op4"]) + _ref_conv1771(states[0], params["op5"]))
    states.append(_ref_avgpool(states[2]) + states[2])
    states.append(_ref_avgpool(states[1]) + _ref_conv1x1(states[5], params["op9"]))
    out = jnp.concatenate([states[i] for i in NORMAL_CONCAT], axis=-1)
    return jnp.transpose(out, (0, 3, 1, 2)), skip


# ----------------------------------------------------------------------------

if __name__ == "__main__":
    N, C_prev, H, W = 2, 8, 8, 8       # channels_prev_prev = channels_prev = 8
    C = 16                             # cell channels (so C // 4 == 4)

    root = jax.random.PRNGKey(0)
    k_params, k_x = jax.random.split(root)
    params = make_params(k_params, C_prev, C)
    names, values = pack_params(params)
    w_idx, inv_cnt = make_spatial_consts(H, W)

    x = jax.random.normal(k_x, (N, C_prev, H, W), jnp.float32)   # NCHW, like PyTorch

    fwd = jax.jit(functools.partial(cell_forward, names=names, values=values,
                                    w_idx=w_idx, inv_cnt=inv_cnt, C=C, H=H, W=W))
    out, skip = fwd(x)
    jax.block_until_ready((out, skip))

    assert out.shape == (N, 4 * C, H, W), out.shape
    assert skip.shape == (N, C_prev, H, W), skip.shape

    ref_out, ref_skip = ref_cell_forward(x, params)
    np.testing.assert_allclose(np.asarray(out), np.asarray(ref_out), rtol=2e-2, atol=2e-2)
    np.testing.assert_allclose(np.asarray(skip), np.asarray(ref_skip), rtol=0, atol=0)

    print("KERNEL_OK")
</pallas_src>

<mosaic_0001>
module attributes {stable_mosaic.version = 11 : i64} {
  func.func @_cell_kernel(%arg0: i32, %arg1: memref<1x64x8xf32, #tpu.memory_space<vmem>>, %arg2: memref<64x1xf32, #tpu.memory_space<vmem>>, %arg3: memref<64x1xf32, #tpu.memory_space<vmem>>, %arg4: memref<8x16xbf16, #tpu.memory_space<vmem>>, %arg5: memref<1x16xf32, #tpu.memory_space<vmem>>, %arg6: memref<1x16xf32, #tpu.memory_space<vmem>>, %arg7: memref<8x16xbf16, #tpu.memory_space<vmem>>, %arg8: memref<1x16xf32, #tpu.memory_space<vmem>>, %arg9: memref<1x16xf32, #tpu.memory_space<vmem>>, %arg10: memref<16x16xbf16, #tpu.memory_space<vmem>>, %arg11: memref<1x16xf32, #tpu.memory_space<vmem>>, %arg12: memref<1x16xf32, #tpu.memory_space<vmem>>, %arg13: memref<16x4xbf16, #tpu.memory_space<vmem>>, %arg14: memref<1x4xf32, #tpu.memory_space<vmem>>, %arg15: memref<1x4xf32, #tpu.memory_space<vmem>>, %arg16: memref<7x4x4xbf16, #tpu.memory_space<vmem>>, %arg17: memref<1x4xf32, #tpu.memory_space<vmem>>, %arg18: memref<1x4xf32, #tpu.memory_space<vmem>>, %arg19: memref<7x4x4xbf16, #tpu.memory_space<vmem>>, %arg20: memref<1x4xf32, #tpu.memory_space<vmem>>, %arg21: memref<1x4xf32, #tpu.memory_space<vmem>>, %arg22: memref<4x16xbf16, #tpu.memory_space<vmem>>, %arg23: memref<1x16xf32, #tpu.memory_space<vmem>>, %arg24: memref<1x16xf32, #tpu.memory_space<vmem>>, %arg25: memref<16x16xbf16, #tpu.memory_space<vmem>>, %arg26: memref<1x16xf32, #tpu.memory_space<vmem>>, %arg27: memref<1x16xf32, #tpu.memory_space<vmem>>, %arg28: memref<16x4xbf16, #tpu.memory_space<vmem>>, %arg29: memref<1x4xf32, #tpu.memory_space<vmem>>, %arg30: memref<1x4xf32, #tpu.memory_space<vmem>>, %arg31: memref<7x4x4xbf16, #tpu.memory_space<vmem>>, %arg32: memref<1x4xf32, #tpu.memory_space<vmem>>, %arg33: memref<1x4xf32, #tpu.memory_space<vmem>>, %arg34: memref<7x4x4xbf16, #tpu.memory_space<vmem>>, %arg35: memref<1x4xf32, #tpu.memory_space<vmem>>, %arg36: memref<1x4xf32, #tpu.memory_space<vmem>>, %arg37: memref<4x16xbf16, #tpu.memory_space<vmem>>, %arg38: memref<1x16xf32, #tpu.memory_space<vmem>>, %arg39: memref<1x16xf32, #tpu.memory_space<vmem>>, %arg40: memref<16x16xbf16, #tpu.memory_space<vmem>>, %arg41: memref<1x16xf32, #tpu.memory_space<vmem>>, %arg42: memref<1x16xf32, #tpu.memory_space<vmem>>, %arg43: memref<1x4x64x16xf32, #tpu.memory_space<vmem>>, %arg44: memref<112x16xf32, #tpu.memory_space<vmem>>, %arg45: memref<112x4xf32, #tpu.memory_space<vmem>>) attributes {dimension_semantics = [#tpu.dimension_semantics<parallel>], iteration_bounds = array<i64: 2>, scalar_prefetch = 0 : i64, scratch_operands = 2 : i64, tpu.core_type = #tpu.core_type<tc>, window_params = [{transform_indices = @transform_0, window_bounds = array<i64: 1, 64, 8>}, {pipeline_mode = #tpu.pipeline_mode<synchronous>, transform_indices = @transform_1, window_bounds = array<i64: 64, 1>}, {pipeline_mode = #tpu.pipeline_mode<synchronous>, transform_indices = @transform_2, window_bounds = array<i64: 64, 1>}, {pipeline_mode = #tpu.pipeline_mode<synchronous>, transform_indices = @transform_3, window_bounds = array<i64: 8, 16>}, {pipeline_mode = #tpu.pipeline_mode<synchronous>, transform_indices = @transform_4, window_bounds = array<i64: 1, 16>}, {pipeline_mode = #tpu.pipeline_mode<synchronous>, transform_indices = @transform_5, window_bounds = array<i64: 1, 16>}, {pipeline_mode = #tpu.pipeline_mode<synchronous>, transform_indices = @transform_6, window_bounds = array<i64: 8, 16>}, {pipeline_mode = #tpu.pipeline_mode<synchronous>, transform_indices = @transform_7, window_bounds = array<i64: 1, 16>}, {pipeline_mode = #tpu.pipeline_mode<synchronous>, transform_indices = @transform_8, window_bounds = array<i64: 1, 16>}, {pipeline_mode = #tpu.pipeline_mode<synchronous>, transform_indices = @transform_9, window_bounds = array<i64: 16, 16>}, {pipeline_mode = #tpu.pipeline_mode<synchronous>, transform_indices = @transform_10, window_bounds = array<i64: 1, 16>}, {pipeline_mode = #tpu.pipeline_mode<synchronous>, transform_indices = @transform_11, window_bounds = array<i64: 1, 16>}, {pipeline_mode = #tpu.pipeline_mode<synchronous>, transform_indices = @transform_12, window_bounds = array<i64: 16, 4>}, {pipeline_mode = #tpu.pipeline_mode<synchronous>, transform_indices = @transform_13, window_bounds = array<i64: 1, 4>}, {pipeline_mode = #tpu.pipeline_mode<synchronous>, transform_indices = @transform_14, window_bounds = array<i64: 1, 4>}, {pipeline_mode = #tpu.pipeline_mode<synchronous>, transform_indices = @transform_15, window_bounds = array<i64: 7, 4, 4>}, {pipeline_mode = #tpu.pipeline_mode<synchronous>, transform_indices = @transform_16, window_bounds = array<i64: 1, 4>}, {pipeline_mode = #tpu.pipeline_mode<synchronous>, transform_indices = @transform_17, window_bounds = array<i64: 1, 4>}, {pipeline_mode = #tpu.pipeline_mode<synchronous>, transform_indices = @transform_18, window_bounds = array<i64: 7, 4, 4>}, {pipeline_mode = #tpu.pipeline_mode<synchronous>, transform_indices = @transform_19, window_bounds = array<i64: 1, 4>}, {pipeline_mode = #tpu.pipeline_mode<synchronous>, transform_indices = @transform_20, window_bounds = array<i64: 1, 4>}, {pipeline_mode = #tpu.pipeline_mode<synchronous>, transform_indices = @transform_21, window_bounds = array<i64: 4, 16>}, {pipeline_mode = #tpu.pipeline_mode<synchronous>, transform_indices = @transform_22, window_bounds = array<i64: 1, 16>}, {pipeline_mode = #tpu.pipeline_mode<synchronous>, transform_indices = @transform_23, window_bounds = array<i64: 1, 16>}, {pipeline_mode = #tpu.pipeline_mode<synchronous>, transform_indices = @transform_24, window_bounds = array<i64: 16, 16>}, {pipeline_mode = #tpu.pipeline_mode<synchronous>, transform_indices = @transform_25, window_bounds = array<i64: 1, 16>}, {pipeline_mode = #tpu.pipeline_mode<synchronous>, transform_indices = @transform_26, window_bounds = array<i64: 1, 16>}, {pipeline_mode = #tpu.pipeline_mode<synchronous>, transform_indices = @transform_27, window_bounds = array<i64: 16, 4>}, {pipeline_mode = #tpu.pipeline_mode<synchronous>, transform_indices = @transform_28, window_bounds = array<i64: 1, 4>}, {pipeline_mode = #tpu.pipeline_mode<synchronous>, transform_indices = @transform_29, window_bounds = array<i64: 1, 4>}, {pipeline_mode = #tpu.pipeline_mode<synchronous>, transform_indices = @transform_30, window_bounds = array<i64: 7, 4, 4>}, {pipeline_mode = #tpu.pipeline_mode<synchronous>, transform_indices = @transform_31, window_bounds = array<i64: 1, 4>}, {pipeline_mode = #tpu.pipeline_mode<synchronous>, transform_indices = @transform_32, window_bounds = array<i64: 1, 4>}, {pipeline_mode = #tpu.pipeline_mode<synchronous>, transform_indices = @transform_33, window_bounds = array<i64: 7, 4, 4>}, {pipeline_mode = #tpu.pipeline_mode<synchronous>, transform_indices = @transform_34, window_bounds = array<i64: 1, 4>}, {pipeline_mode = #tpu.pipeline_mode<synchronous>, transform_indices = @transform_35, window_bounds = array<i64: 1, 4>}, {pipeline_mode = #tpu.pipeline_mode<synchronous>, transform_indices = @transform_36, window_bounds = array<i64: 4, 16>}, {pipeline_mode = #tpu.pipeline_mode<synchronous>, transform_indices = @transform_37, window_bounds = array<i64: 1, 16>}, {pipeline_mode = #tpu.pipeline_mode<synchronous>, transform_indices = @transform_38, window_bounds = array<i64: 1, 16>}, {pipeline_mode = #tpu.pipeline_mode<synchronous>, transform_indices = @transform_39, window_bounds = array<i64: 16, 16>}, {pipeline_mode = #tpu.pipeline_mode<synchronous>, transform_indices = @transform_40, window_bounds = array<i64: 1, 16>}, {pipeline_mode = #tpu.pipeline_mode<synchronous>, transform_indices = @transform_41, window_bounds = array<i64: 1, 16>}, {transform_indices = @transform_42, window_bounds = array<i64: 1, 4, 64, 16>}]} {
    %cst = arith.constant 0.000000e+00 : f32
    %0 = vector.broadcast %cst : f32 to vector<112x16xf32>
    %c0 = arith.constant 0 : index
    %c0_0 = arith.constant 0 : index
    %1 = vector.load %arg44[%c0, %c0_0] : memref<112x16xf32, #tpu.memory_space<vmem>>, vector<112x16xf32>
    tpu.vector_store %arg44[%c0, %c0_0], %0 {strides = array<i32>} : memref<112x16xf32, #tpu.memory_space<vmem>>, vector<112x16xf32>,
    %cst_1 = arith.constant 0.000000e+00 : f32
    %2 = vector.broadcast %cst_1 : f32 to vector<112x4xf32>
    %c0_2 = arith.constant 0 : index
    %c0_3 = arith.constant 0 : index
    %3 = vector.load %arg45[%c0_2, %c0_3] : memref<112x4xf32, #tpu.memory_space<vmem>>, vector<112x4xf32>
    tpu.vector_store %arg45[%c0_2, %c0_3], %2 {strides = array<i32>} : memref<112x4xf32, #tpu.memory_space<vmem>>, vector<112x4xf32>,
    %c0_4 = arith.constant 0 : index
    %c0_5 = arith.constant 0 : index
    %c0_6 = arith.constant 0 : index
    %4 = vector.load %arg1[%c0_4, %c0_5, %c0_6] : memref<1x64x8xf32, #tpu.memory_space<vmem>>, vector<1x64x8xf32>
    %5 = vector.shape_cast %4 : vector<1x64x8xf32> to vector<64x8xf32>
    %c0_7 = arith.constant 0 : index
    %c0_8 = arith.constant 0 : index
    %6 = vector.load %arg2[%c0_7, %c0_8] : memref<64x1xf32, #tpu.memory_space<vmem>>, vector<64x1xf32>
    %c0_9 = arith.constant 0 : index
    %c0_10 = arith.constant 0 : index
    %7 = vector.load %arg3[%c0_9, %c0_10] : memref<64x1xf32, #tpu.memory_space<vmem>>, vector<64x1xf32>
    %cst_11 = arith.constant 0.000000e+00 : f32
    %8 = vector.broadcast %cst_11 : f32 to vector<64x8xf32>
    %9 = arith.maximumf %5, %8 : vector<64x8xf32>
    %10 = arith.truncf %9 : vector<64x8xf32> to vector<64x8xbf16>
    %c0_12 = arith.constant 0 : index
    %c0_13 = arith.constant 0 : index
    %11 = vector.load %arg4[%c0_12, %c0_13] : memref<8x16xbf16, #tpu.memory_space<vmem>>, vector<8x16xbf16>
    %cst_14 = arith.constant dense<0.000000e+00> : vector<64x16xf32>
    %12 = tpu.matmul %10, %11, %cst_14 {dimension_numbers = #tpu.dot_dimension_numbers<[1], [0], [0], [1], [0, 0, 1, 1], [], []>} : vector<64x8xbf16>, vector<8x16xbf16>, vector<64x16xf32> -> vector<64x16xf32>
    %c0_15 = arith.constant 0 : index
    %c0_16 = arith.constant 0 : index
    %13 = vector.load %arg5[%c0_15, %c0_16] : memref<1x16xf32, #tpu.memory_space<vmem>>, vector<1x16xf32>
    %14 = vector.broadcast %13 : vector<1x16xf32> to vector<64x16xf32>
    %15 = arith.mulf %12, %14 : vector<64x16xf32>
    %c0_17 = arith.constant 0 : index
    %c0_18 = arith.constant 0 : index
    %16 = vector.load %arg6[%c0_17, %c0_18] : memref<1x16xf32, #tpu.memory_space<vmem>>, vector<1x16xf32>
    %17 = vector.broadcast %16 : vector<1x16xf32> to vector<64x16xf32>
    %18 = arith.addf %15, %17 : vector<64x16xf32>
    %cst_19 = arith.constant 0.000000e+00 : f32
    %19 = vector.broadcast %cst_19 : f32 to vector<64x8xf32>
    %20 = arith.maximumf %5, %19 : vector<64x8xf32>
    %21 = arith.truncf %20 : vector<64x8xf32> to vector<64x8xbf16>
    %c0_20 = arith.constant 0 : index
    %c0_21 = arith.constant 0 : index
    %22 = vector.load %arg7[%c0_20, %c0_21] : memref<8x16xbf16, #tpu.memory_space<vmem>>, vector<8x16xbf16>
    %cst_22 = arith.constant dense<0.000000e+00> : vector<64x16xf32>
    %23 = tpu.matmul %21, %22, %cst_22 {dimension_numbers = #tpu.dot_dimension_numbers<[1], [0], [0], [1], [0, 0, 1, 1], [], []>} : vector<64x8xbf16>, vector<8x16xbf16>, vector<64x16xf32> -> vector<64x16xf32>
    %c0_23 = arith.constant 0 : index
    %c0_24 = arith.constant 0 : index
    %24 = vector.load %arg8[%c0_23, %c0_24] : memref<1x16xf32, #tpu.memory_space<vmem>>, vector<1x16xf32>
    %25 = vector.broadcast %24 : vector<1x16xf32> to vector<64x16xf32>
    %26 = arith.mulf %23, %25 : vector<64x16xf32>
    %c0_25 = arith.constant 0 : index
    %c0_26 = arith.constant 0 : index
    %27 = vector.load %arg9[%c0_25, %c0_26] : memref<1x16xf32, #tpu.memory_space<vmem>>, vector<1x16xf32>
    %28 = vector.broadcast %27 : vector<1x16xf32> to vector<64x16xf32>
    %29 = arith.addf %26, %28 : vector<64x16xf32>
    %cst_27 = arith.constant 0.000000e+00 : f32
    %30 = vector.broadcast %cst_27 : f32 to vector<64x16xf32>
    %31 = arith.maximumf %29, %30 : vector<64x16xf32>
    %32 = arith.truncf %31 : vector<64x16xf32> to vector<64x16xbf16>
    %c0_28 = arith.constant 0 : index
    %c0_29 = arith.constant 0 : index
    %33 = vector.load %arg10[%c0_28, %c0_29] : memref<16x16xbf16, #tpu.memory_space<vmem>>, vector<16x16xbf16>
    %cst_30 = arith.constant dense<0.000000e+00> : vector<64x16xf32>
    %34 = tpu.matmul %32, %33, %cst_30 {dimension_numbers = #tpu.dot_dimension_numbers<[1], [0], [0], [1], [0, 0, 1, 1], [], []>} : vector<64x16xbf16>, vector<16x16xbf16>, vector<64x16xf32> -> vector<64x16xf32>
    %c0_31 = arith.constant 0 : index
    %c0_32 = arith.constant 0 : index
    %35 = vector.load %arg11[%c0_31, %c0_32] : memref<1x16xf32, #tpu.memory_space<vmem>>, vector<1x16xf32>
    %36 = vector.broadcast %35 : vector<1x16xf32> to vector<64x16xf32>
    %37 = arith.mulf %34, %36 : vector<64x16xf32>
    %c0_33 = arith.constant 0 : index
    %c0_34 = arith.constant 0 : index
    %38 = vector.load %arg12[%c0_33, %c0_34] : memref<1x16xf32, #tpu.memory_space<vmem>>, vector<1x16xf32>
    %39 = vector.broadcast %38 : vector<1x16xf32> to vector<64x16xf32>
    %40 = arith.addf %37, %39 : vector<64x16xf32>
    %c24 = arith.constant 24 : index
    %c0_35 = arith.constant 0 : index
    %41 = vector.load %arg44[%c24, %c0_35] : memref<112x16xf32, #tpu.memory_space<vmem>>, vector<64x16xf32>
    tpu.vector_store %arg44[%c24, %c0_35], %29 {strides = array<i32>} : memref<112x16xf32, #tpu.memory_space<vmem>>, vector<64x16xf32>,
    %c23 = arith.constant 23 : index
    %c0_36 = arith.constant 0 : index
    %42 = vector.load %arg44[%c23, %c0_36] : memref<112x16xf32, #tpu.memory_space<vmem>>, vector<64x16xf32>
    %43 = vector.shape_cast %6 : vector<64x1xf32> to vector<64x1xf32>
    %44 = vector.broadcast %43 : vector<64x1xf32> to vector<64x16xf32>
    %cst_37 = arith.constant -1.000000e+00 : f32
    %45 = vector.broadcast %cst_37 : f32 to vector<64x16xf32>
    %46 = arith.addf %44, %45 : vector<64x16xf32>
    %cst_38 = arith.constant 0.000000e+00 : f32
    %47 = vector.broadcast %cst_38 : f32 to vector<64x16xf32>
    %48 = arith.cmpf oge, %46, %47 : vector<64x16xf32>
    %cst_39 = arith.constant -1.000000e+00 : f32
    %49 = vector.broadcast %cst_39 : f32 to vector<64x16xf32>
    %50 = arith.addf %44, %49 : vector<64x16xf32>
    %cst_40 = arith.constant 7.000000e+00 : f32
    %51 = vector.broadcast %cst_40 : f32 to vector<64x16xf32>
    %52 = arith.cmpf ole, %50, %51 : vector<64x16xf32>
    %53 = arith.andi %48, %52 : vector<64x16xi1>
    %cst_41 = arith.constant 0.000000e+00 : f32
    %54 = vector.broadcast %cst_41 : f32 to vector<64x16xf32>
    %55 = arith.select %53, %42, %54 : vector<64x16xi1>, vector<64x16xf32>
    %c25 = arith.constant 25 : index
    %c0_42 = arith.constant 0 : index
    %56 = vector.load %arg44[%c25, %c0_42] : memref<112x16xf32, #tpu.memory_space<vmem>>, vector<64x16xf32>
    %57 = vector.shape_cast %6 : vector<64x1xf32> to vector<64x1xf32>
    %58 = vector.broadcast %57 : vector<64x1xf32> to vector<64x16xf32>
    %cst_43 = arith.constant 1.000000e+00 : f32
    %59 = vector.broadcast %cst_43 : f32 to vector<64x16xf32>
    %60 = arith.addf %58, %59 : vector<64x16xf32>
    %cst_44 = arith.constant 0.000000e+00 : f32
    %61 = vector.broadcast %cst_44 : f32 to vector<64x16xf32>
    %62 = arith.cmpf oge, %60, %61 : vector<64x16xf32>
    %cst_45 = arith.constant 1.000000e+00 : f32
    %63 = vector.broadcast %cst_45 : f32 to vector<64x16xf32>
    %64 = arith.addf %58, %63 : vector<64x16xf32>
    %cst_46 = arith.constant 7.000000e+00 : f32
    %65 = vector.broadcast %cst_46 : f32 to vector<64x16xf32>
    %66 = arith.cmpf ole, %64, %65 : vector<64x16xf32>
    %67 = arith.andi %62, %66 : vector<64x16xi1>
    %cst_47 = arith.constant 0.000000e+00 : f32
    %68 = vector.broadcast %cst_47 : f32 to vector<64x16xf32>
    %69 = arith.select %67, %56, %68 : vector<64x16xi1>, vector<64x16xf32>
    %70 = arith.addf %29, %55 : vector<64x16xf32>
    %71 = arith.addf %70, %69 : vector<64x16xf32>
    %c24_48 = arith.constant 24 : index
    %c0_49 = arith.constant 0 : index
    %72 = vector.load %arg44[%c24_48, %c0_49] : memref<112x16xf32, #tpu.memory_space<vmem>>, vector<64x16xf32>
    tpu.vector_store %arg44[%c24_48, %c0_49], %71 {strides = array<i32>} : memref<112x16xf32, #tpu.memory_space<vmem>>, vector<64x16xf32>,
    %c16 = arith.constant 16 : index
    %c0_50 = arith.constant 0 : index
    %73 = vector.load %arg44[%c16, %c0_50] : memref<112x16xf32, #tpu.memory_space<vmem>>, vector<64x16xf32>
    %c32 = arith.constant 32 : index
    %c0_51 = arith.constant 0 : index
    %74 = vector.load %arg44[%c32, %c0_51] : memref<112x16xf32, #tpu.memory_space<vmem>>, vector<64x16xf32>
    %75 = arith.addf %71, %73 : vector<64x16xf32>
    %76 = arith.addf %75, %74 : vector<64x16xf32>
    %77 = vector.broadcast %7 : vector<64x1xf32> to vector<64x16xf32>
    %78 = arith.mulf %76, %77 : vector<64x16xf32>
    %79 = arith.addf %40, %78 : vector<64x16xf32>
    %cst_52 = arith.constant 0.000000e+00 : f32
    %80 = vector.broadcast %cst_52 : f32 to vector<64x16xf32>
    %81 = arith.maximumf %18, %80 : vector<64x16xf32>
    %82 = arith.truncf %81 : vector<64x16xf32> to vector<64x16xbf16>
    %c0_53 = arith.constant 0 : index
    %c0_54 = arith.constant 0 : index
    %83 = vector.load %arg13[%c0_53, %c0_54] : memref<16x4xbf16, #tpu.memory_space<vmem>>, vector<16x4xbf16>
    %cst_55 = arith.constant dense<0.000000e+00> : vector<64x4xf32>
    %84 = tpu.matmul %82, %83, %cst_55 {dimension_numbers = #tpu.dot_dimension_numbers<[1], [0], [0], [1], [0, 0, 1, 1], [], []>} : vector<64x16xbf16>, vector<16x4xbf16>, vector<64x4xf32> -> vector<64x4xf32>
    %c0_56 = arith.constant 0 : index
    %c0_57 = arith.constant 0 : index
    %85 = vector.load %arg14[%c0_56, %c0_57] : memref<1x4xf32, #tpu.memory_space<vmem>>, vector<1x4xf32>
    %86 = vector.broadcast %85 : vector<1x4xf32> to vector<64x4xf32>
    %87 = arith.mulf %84, %86 : vector<64x4xf32>
    %c0_58 = arith.constant 0 : index
    %c0_59 = arith.constant 0 : index
    %88 = vector.load %arg15[%c0_58, %c0_59] : memref<1x4xf32, #tpu.memory_space<vmem>>, vector<1x4xf32>
    %89 = vector.broadcast %88 : vector<1x4xf32> to vector<64x4xf32>
    %90 = arith.addf %87, %89 : vector<64x4xf32>
    %cst_60 = arith.constant 0.000000e+00 : f32
    %91 = vector.broadcast %cst_60 : f32 to vector<64x4xf32>
    %92 = arith.maximumf %90, %91 : vector<64x4xf32>
    %c24_61 = arith.constant 24 : index
    %c0_62 = arith.constant 0 : index
    %93 = vector.load %arg45[%c24_61, %c0_62] : memref<112x4xf32, #tpu.memory_space<vmem>>, vector<64x4xf32>
    tpu.vector_store %arg45[%c24_61, %c0_62], %92 {strides = array<i32>} : memref<112x4xf32, #tpu.memory_space<vmem>>, vector<64x4xf32>,
    %c21 = arith.constant 21 : index
    %c0_63 = arith.constant 0 : index
    %94 = vector.load %arg45[%c21, %c0_63] : memref<112x4xf32, #tpu.memory_space<vmem>>, vector<64x4xf32>
    %95 = vector.shape_cast %6 : vector<64x1xf32> to vector<64x1xf32>
    %96 = vector.broadcast %95 : vector<64x1xf32> to vector<64x4xf32>
    %cst_64 = arith.constant -3.000000e+00 : f32
    %97 = vector.broadcast %cst_64 : f32 to vector<64x4xf32>
    %98 = arith.addf %96, %97 : vector<64x4xf32>
    %cst_65 = arith.constant 0.000000e+00 : f32
    %99 = vector.broadcast %cst_65 : f32 to vector<64x4xf32>
    %100 = arith.cmpf oge, %98, %99 : vector<64x4xf32>
    %cst_66 = arith.constant -3.000000e+00 : f32
    %101 = vector.broadcast %cst_66 : f32 to vector<64x4xf32>
    %102 = arith.addf %96, %101 : vector<64x4xf32>
    %cst_67 = arith.constant 7.000000e+00 : f32
    %103 = vector.broadcast %cst_67 : f32 to vector<64x4xf32>
    %104 = arith.cmpf ole, %102, %103 : vector<64x4xf32>
    %105 = arith.andi %100, %104 : vector<64x4xi1>
    %cst_68 = arith.constant 0.000000e+00 : f32
    %106 = vector.broadcast %cst_68 : f32 to vector<64x4xf32>
    %107 = arith.select %105, %94, %106 : vector<64x4xi1>, vector<64x4xf32>
    %c22 = arith.constant 22 : index
    %c0_69 = arith.constant 0 : index
    %108 = vector.load %arg45[%c22, %c0_69] : memref<112x4xf32, #tpu.memory_space<vmem>>, vector<64x4xf32>
    %109 = vector.shape_cast %6 : vector<64x1xf32> to vector<64x1xf32>
    %110 = vector.broadcast %109 : vector<64x1xf32> to vector<64x4xf32>
    %cst_70 = arith.constant -2.000000e+00 : f32
    %111 = vector.broadcast %cst_70 : f32 to vector<64x4xf32>
    %112 = arith.addf %110, %111 : vector<64x4xf32>
    %cst_71 = arith.constant 0.000000e+00 : f32
    %113 = vector.broadcast %cst_71 : f32 to vector<64x4xf32>
    %114 = arith.cmpf oge, %112, %113 : vector<64x4xf32>
    %cst_72 = arith.constant -2.000000e+00 : f32
    %115 = vector.broadcast %cst_72 : f32 to vector<64x4xf32>
    %116 = arith.addf %110, %115 : vector<64x4xf32>
    %cst_73 = arith.constant 7.000000e+00 : f32
    %117 = vector.broadcast %cst_73 : f32 to vector<64x4xf32>
    %118 = arith.cmpf ole, %116, %117 : vector<64x4xf32>
    %119 = arith.andi %114, %118 : vector<64x4xi1>
    %cst_74 = arith.constant 0.000000e+00 : f32
    %120 = vector.broadcast %cst_74 : f32 to vector<64x4xf32>
    %121 = arith.select %119, %108, %120 : vector<64x4xi1>, vector<64x4xf32>
    %c23_75 = arith.constant 23 : index
    %c0_76 = arith.constant 0 : index
    %122 = vector.load %arg45[%c23_75, %c0_76] : memref<112x4xf32, #tpu.memory_space<vmem>>, vector<64x4xf32>
    %123 = vector.shape_cast %6 : vector<64x1xf32> to vector<64x1xf32>
    %124 = vector.broadcast %123 : vector<64x1xf32> to vector<64x4xf32>
    %cst_77 = arith.constant -1.000000e+00 : f32
    %125 = vector.broadcast %cst_77 : f32 to vector<64x4xf32>
    %126 = arith.addf %124, %125 : vector<64x4xf32>
    %cst_78 = arith.constant 0.000000e+00 : f32
    %127 = vector.broadcast %cst_78 : f32 to vector<64x4xf32>
    %128 = arith.cmpf oge, %126, %127 : vector<64x4xf32>
    %cst_79 = arith.constant -1.000000e+00 : f32
    %129 = vector.broadcast %cst_79 : f32 to vector<64x4xf32>
    %130 = arith.addf %124, %129 : vector<64x4xf32>
    %cst_80 = arith.constant 7.000000e+00 : f32
    %131 = vector.broadcast %cst_80 : f32 to vector<64x4xf32>
    %132 = arith.cmpf ole, %130, %131 : vector<64x4xf32>
    %133 = arith.andi %128, %132 : vector<64x4xi1>
    %cst_81 = arith.constant 0.000000e+00 : f32
    %134 = vector.broadcast %cst_81 : f32 to vector<64x4xf32>
    %135 = arith.select %133, %122, %134 : vector<64x4xi1>, vector<64x4xf32>
    %c24_82 = arith.constant 24 : index
    %c0_83 = arith.constant 0 : index
    %136 = vector.load %arg45[%c24_82, %c0_83] : memref<112x4xf32, #tpu.memory_space<vmem>>, vector<64x4xf32>
    %c25_84 = arith.constant 25 : index
    %c0_85 = arith.constant 0 : index
    %137 = vector.load %arg45[%c25_84, %c0_85] : memref<112x4xf32, #tpu.memory_space<vmem>>, vector<64x4xf32>
    %138 = vector.shape_cast %6 : vector<64x1xf32> to vector<64x1xf32>
    %139 = vector.broadcast %138 : vector<64x1xf32> to vector<64x4xf32>
    %cst_86 = arith.constant 1.000000e+00 : f32
    %140 = vector.broadcast %cst_86 : f32 to vector<64x4xf32>
    %141 = arith.addf %139, %140 : vector<64x4xf32>
    %cst_87 = arith.constant 0.000000e+00 : f32
    %142 = vector.broadcast %cst_87 : f32 to vector<64x4xf32>
    %143 = arith.cmpf oge, %141, %142 : vector<64x4xf32>
    %cst_88 = arith.constant 1.000000e+00 : f32
    %144 = vector.broadcast %cst_88 : f32 to vector<64x4xf32>
    %145 = arith.addf %139, %144 : vector<64x4xf32>
    %cst_89 = arith.constant 7.000000e+00 : f32
    %146 = vector.broadcast %cst_89 : f32 to vector<64x4xf32>
    %147 = arith.cmpf ole, %145, %146 : vector<64x4xf32>
    %148 = arith.andi %143, %147 : vector<64x4xi1>
    %cst_90 = arith.constant 0.000000e+00 : f32
    %149 = vector.broadcast %cst_90 : f32 to vector<64x4xf32>
    %150 = arith.select %148, %137, %149 : vector<64x4xi1>, vector<64x4xf32>
    %c26 = arith.constant 26 : index
    %c0_91 = arith.constant 0 : index
    %151 = vector.load %arg45[%c26, %c0_91] : memref<112x4xf32, #tpu.memory_space<vmem>>, vector<64x4xf32>
    %152 = vector.shape_cast %6 : vector<64x1xf32> to vector<64x1xf32>
    %153 = vector.broadcast %152 : vector<64x1xf32> to vector<64x4xf32>
    %cst_92 = arith.constant 2.000000e+00 : f32
    %154 = vector.broadcast %cst_92 : f32 to vector<64x4xf32>
    %155 = arith.addf %153, %154 : vector<64x4xf32>
    %cst_93 = arith.constant 0.000000e+00 : f32
    %156 = vector.broadcast %cst_93 : f32 to vector<64x4xf32>
    %157 = arith.cmpf oge, %155, %156 : vector<64x4xf32>
    %cst_94 = arith.constant 2.000000e+00 : f32
    %158 = vector.broadcast %cst_94 : f32 to vector<64x4xf32>
    %159 = arith.addf %153, %158 : vector<64x4xf32>
    %cst_95 = arith.constant 7.000000e+00 : f32
    %160 = vector.broadcast %cst_95 : f32 to vector<64x4xf32>
    %161 = arith.cmpf ole, %159, %160 : vector<64x4xf32>
    %162 = arith.andi %157, %161 : vector<64x4xi1>
    %cst_96 = arith.constant 0.000000e+00 : f32
    %163 = vector.broadcast %cst_96 : f32 to vector<64x4xf32>
    %164 = arith.select %162, %151, %163 : vector<64x4xi1>, vector<64x4xf32>
    %c27 = arith.constant 27 : index
    %c0_97 = arith.constant 0 : index
    %165 = vector.load %arg45[%c27, %c0_97] : memref<112x4xf32, #tpu.memory_space<vmem>>, vector<64x4xf32>
    %166 = vector.shape_cast %6 : vector<64x1xf32> to vector<64x1xf32>
    %167 = vector.broadcast %166 : vector<64x1xf32> to vector<64x4xf32>
    %cst_98 = arith.constant 3.000000e+00 : f32
    %168 = vector.broadcast %cst_98 : f32 to vector<64x4xf32>
    %169 = arith.addf %167, %168 : vector<64x4xf32>
    %cst_99 = arith.constant 0.000000e+00 : f32
    %170 = vector.broadcast %cst_99 : f32 to vector<64x4xf32>
    %171 = arith.cmpf oge, %169, %170 : vector<64x4xf32>
    %cst_100 = arith.constant 3.000000e+00 : f32
    %172 = vector.broadcast %cst_100 : f32 to vector<64x4xf32>
    %173 = arith.addf %167, %172 : vector<64x4xf32>
    %cst_101 = arith.constant 7.000000e+00 : f32
    %174 = vector.broadcast %cst_101 : f32 to vector<64x4xf32>
    %175 = arith.cmpf ole, %173, %174 : vector<64x4xf32>
    %176 = arith.andi %171, %175 : vector<64x4xi1>
    %cst_102 = arith.constant 0.000000e+00 : f32
    %177 = vector.broadcast %cst_102 : f32 to vector<64x4xf32>
    %178 = arith.select %176, %165, %177 : vector<64x4xi1>, vector<64x4xf32>
    %179 = arith.truncf %107 : vector<64x4xf32> to vector<64x4xbf16>
    %c0_103 = arith.constant 0 : index
    %c0_104 = arith.constant 0 : index
    %c0_105 = arith.constant 0 : index
    %180 = vector.load %arg16[%c0_103, %c0_104, %c0_105] : memref<7x4x4xbf16, #tpu.memory_space<vmem>>, vector<1x4x4xbf16>
    %181 = vector.shape_cast %180 : vector<1x4x4xbf16> to vector<4x4xbf16>
    %cst_106 = arith.constant dense<0.000000e+00> : vector<64x4xf32>
    %182 = tpu.matmul %179, %181, %cst_106 {dimension_numbers = #tpu.dot_dimension_numbers<[1], [0], [0], [1], [0, 0, 1, 1], [], []>} : vector<64x4xbf16>, vector<4x4xbf16>, vector<64x4xf32> -> vector<64x4xf32>
    %183 = arith.truncf %121 : vector<64x4xf32> to vector<64x4xbf16>
    %c1 = arith.constant 1 : index
    %c0_107 = arith.constant 0 : index
    %c0_108 = arith.constant 0 : index
    %184 = vector.load %arg16[%c1, %c0_107, %c0_108] : memref<7x4x4xbf16, #tpu.memory_space<vmem>>, vector<1x4x4xbf16>
    %185 = vector.shape_cast %184 : vector<1x4x4xbf16> to vector<4x4xbf16>
    %cst_109 = arith.constant dense<0.000000e+00> : vector<64x4xf32>
    %186 = tpu.matmul %183, %185, %cst_109 {dimension_numbers = #tpu.dot_dimension_numbers<[1], [0], [0], [1], [0, 0, 1, 1], [], []>} : vector<64x4xbf16>, vector<4x4xbf16>, vector<64x4xf32> -> vector<64x4xf32>
    %187 = arith.addf %182, %186 : vector<64x4xf32>
    %188 = arith.truncf %135 : vector<64x4xf32> to vector<64x4xbf16>
    %c2 = arith.constant 2 : index
    %c0_110 = arith.constant 0 : index
    %c0_111 = arith.constant 0 : index
    %189 = vector.load %arg16[%c2, %c0_110, %c0_111] : memref<7x4x4xbf16, #tpu.memory_space<vmem>>, vector<1x4x4xbf16>
    %190 = vector.shape_cast %189 : vector<1x4x4xbf16> to vector<4x4xbf16>
    %cst_112 = arith.constant dense<0.000000e+00> : vector<64x4xf32>
    %191 = tpu.matmul %188, %190, %cst_112 {dimension_numbers = #tpu.dot_dimension_numbers<[1], [0], [0], [1], [0, 0, 1, 1], [], []>} : vector<64x4xbf16>, vector<4x4xbf16>, vector<64x4xf32> -> vector<64x4xf32>
    %192 = arith.addf %187, %191 : vector<64x4xf32>
    %193 = arith.truncf %136 : vector<64x4xf32> to vector<64x4xbf16>
    %c3 = arith.constant 3 : index
    %c0_113 = arith.constant 0 : index
    %c0_114 = arith.constant 0 : index
    %194 = vector.load %arg16[%c3, %c0_113, %c0_114] : memref<7x4x4xbf16, #tpu.memory_space<vmem>>, vector<1x4x4xbf16>
    %195 = vector.shape_cast %194 : vector<1x4x4xbf16> to vector<4x4xbf16>
    %cst_115 = arith.constant dense<0.000000e+00> : vector<64x4xf32>
    %196 = tpu.matmul %193, %195, %cst_115 {dimension_numbers = #tpu.dot_dimension_numbers<[1], [0], [0], [1], [0, 0, 1, 1], [], []>} : vector<64x4xbf16>, vector<4x4xbf16>, vector<64x4xf32> -> vector<64x4xf32>
    %197 = arith.addf %192, %196 : vector<64x4xf32>
    %198 = arith.truncf %150 : vector<64x4xf32> to vector<64x4xbf16>
    %c4 = arith.constant 4 : index
    %c0_116 = arith.constant 0 : index
    %c0_117 = arith.constant 0 : index
    %199 = vector.load %arg16[%c4, %c0_116, %c0_117] : memref<7x4x4xbf16, #tpu.memory_space<vmem>>, vector<1x4x4xbf16>
    %200 = vector.shape_cast %199 : vector<1x4x4xbf16> to vector<4x4xbf16>
    %cst_118 = arith.constant dense<0.000000e+00> : vector<64x4xf32>
    %201 = tpu.matmul %198, %200, %cst_118 {dimension_numbers = #tpu.dot_dimension_numbers<[1], [0], [0], [1], [0, 0, 1, 1], [], []>} : vector<64x4xbf16>, vector<4x4xbf16>, vector<64x4xf32> -> vector<64x4xf32>
    %202 = arith.addf %197, %201 : vector<64x4xf32>
    %203 = arith.truncf %164 : vector<64x4xf32> to vector<64x4xbf16>
    %c5 = arith.constant 5 : index
    %c0_119 = arith.constant 0 : index
    %c0_120 = arith.constant 0 : index
    %204 = vector.load %arg16[%c5, %c0_119, %c0_120] : memref<7x4x4xbf16, #tpu.memory_space<vmem>>, vector<1x4x4xbf16>
    %205 = vector.shape_cast %204 : vector<1x4x4xbf16> to vector<4x4xbf16>
    %cst_121 = arith.constant dense<0.000000e+00> : vector<64x4xf32>
    %206 = tpu.matmul %203, %205, %cst_121 {dimension_numbers = #tpu.dot_dimension_numbers<[1], [0], [0], [1], [0, 0, 1, 1], [], []>} : vector<64x4xbf16>, vector<4x4xbf16>, vector<64x4xf32> -> vector<64x4xf32>
    %207 = arith.addf %202, %206 : vector<64x4xf32>
    %208 = arith.truncf %178 : vector<64x4xf32> to vector<64x4xbf16>
    %c6 = arith.constant 6 : index
    %c0_122 = arith.constant 0 : index
    %c0_123 = arith.constant 0 : index
    %209 = vector.load %arg16[%c6, %c0_122, %c0_123] : memref<7x4x4xbf16, #tpu.memory_space<vmem>>, vector<1x4x4xbf16>
    %210 = vector.shape_cast %209 : vector<1x4x4xbf16> to vector<4x4xbf16>
    %cst_124 = arith.constant dense<0.000000e+00> : vector<64x4xf32>
    %211 = tpu.matmul %208, %210, %cst_124 {dimension_numbers = #tpu.dot_dimension_numbers<[1], [0], [0], [1], [0, 0, 1, 1], [], []>} : vector<64x4xbf16>, vector<4x4xbf16>, vector<64x4xf32> -> vector<64x4xf32>
    %212 = arith.addf %207, %211 : vector<64x4xf32>
    %c0_125 = arith.constant 0 : index
    %c0_126 = arith.constant 0 : index
    %213 = vector.load %arg17[%c0_125, %c0_126] : memref<1x4xf32, #tpu.memory_space<vmem>>, vector<1x4xf32>
    %214 = vector.broadcast %213 : vector<1x4xf32> to vector<64x4xf32>
    %215 = arith.mulf %212, %214 : vector<64x4xf32>
    %c0_127 = arith.constant 0 : index
    %c0_128 = arith.constant 0 : index
    %216 = vector.load %arg18[%c0_127, %c0_128] : memref<1x4xf32, #tpu.memory_space<vmem>>, vector<1x4xf32>
    %217 = vector.broadcast %216 : vector<1x4xf32> to vector<64x4xf32>
    %218 = arith.addf %215, %217 : vector<64x4xf32>
    %cst_129 = arith.constant 0.000000e+00 : f32
    %219 = vector.broadcast %cst_129 : f32 to vector<64x4xf32>
    %220 = arith.maximumf %218, %219 : vector<64x4xf32>
    %c24_130 = arith.constant 24 : index
    %c0_131 = arith.constant 0 : index
    %221 = vector.load %arg45[%c24_130, %c0_131] : memref<112x4xf32, #tpu.memory_space<vmem>>, vector<64x4xf32>
    tpu.vector_store %arg45[%c24_130, %c0_131], %220 {strides = array<i32>} : memref<112x4xf32, #tpu.memory_space<vmem>>, vector<64x4xf32>,
    %c0_132 = arith.constant 0 : index
    %c0_133 = arith.constant 0 : index
    %222 = vector.load %arg45[%c0_132, %c0_133] : memref<112x4xf32, #tpu.memory_space<vmem>>, vector<64x4xf32>
    %c8 = arith.constant 8 : index
    %c0_134 = arith.constant 0 : index
    %223 = vector.load %arg45[%c8, %c0_134] : memref<112x4xf32, #tpu.memory_space<vmem>>, vector<64x4xf32>
    %c16_135 = arith.constant 16 : index
    %c0_136 = arith.constant 0 : index
    %224 = vector.load %arg45[%c16_135, %c0_136] : memref<112x4xf32, #tpu.memory_space<vmem>>, vector<64x4xf32>
    %c24_137 = arith.constant 24 : index
    %c0_138 = arith.constant 0 : index
    %225 = vector.load %arg45[%c24_137, %c0_138] : memref<112x4xf32, #tpu.memory_space<vmem>>, vector<64x4xf32>
    %c32_139 = arith.constant 32 : index
    %c0_140 = arith.constant 0 : index
    %226 = vector.load %arg45[%c32_139, %c0_140] : memref<112x4xf32, #tpu.memory_space<vmem>>, vector<64x4xf32>
    %c40 = arith.constant 40 : index
    %c0_141 = arith.constant 0 : index
    %227 = vector.load %arg45[%c40, %c0_141] : memref<112x4xf32, #tpu.memory_space<vmem>>, vector<64x4xf32>
    %c48 = arith.constant 48 : index
    %c0_142 = arith.constant 0 : index
    %228 = vector.load %arg45[%c48, %c0_142] : memref<112x4xf32, #tpu.memory_space<vmem>>, vector<64x4xf32>
    %229 = arith.truncf %222 : vector<64x4xf32> to vector<64x4xbf16>
    %c0_143 = arith.constant 0 : index
    %c0_144 = arith.constant 0 : index
    %c0_145 = arith.constant 0 : index
    %230 = vector.load %arg19[%c0_143, %c0_144, %c0_145] : memref<7x4x4xbf16, #tpu.memory_space<vmem>>, vector<1x4x4xbf16>
    %231 = vector.shape_cast %230 : vector<1x4x4xbf16> to vector<4x4xbf16>
    %cst_146 = arith.constant dense<0.000000e+00> : vector<64x4xf32>
    %232 = tpu.matmul %229, %231, %cst_146 {dimension_numbers = #tpu.dot_dimension_numbers<[1], [0], [0], [1], [0, 0, 1, 1], [], []>} : vector<64x4xbf16>, vector<4x4xbf16>, vector<64x4xf32> -> vector<64x4xf32>
    %233 = arith.truncf %223 : vector<64x4xf32> to vector<64x4xbf16>
    %c1_147 = arith.constant 1 : index
    %c0_148 = arith.constant 0 : index
    %c0_149 = arith.constant 0 : index
    %234 = vector.load %arg19[%c1_147, %c0_148, %c0_149] : memref<7x4x4xbf16, #tpu.memory_space<vmem>>, vector<1x4x4xbf16>
    %235 = vector.shape_cast %234 : vector<1x4x4xbf16> to vector<4x4xbf16>
    %cst_150 = arith.constant dense<0.000000e+00> : vector<64x4xf32>
    %236 = tpu.matmul %233, %235, %cst_150 {dimension_numbers = #tpu.dot_dimension_numbers<[1], [0], [0], [1], [0, 0, 1, 1], [], []>} : vector<64x4xbf16>, vector<4x4xbf16>, vector<64x4xf32> -> vector<64x4xf32>
    %237 = arith.addf %232, %236 : vector<64x4xf32>
    %238 = arith.truncf %224 : vector<64x4xf32> to vector<64x4xbf16>
    %c2_151 = arith.constant 2 : index
    %c0_152 = arith.constant 0 : index
    %c0_153 = arith.constant 0 : index
    %239 = vector.load %arg19[%c2_151, %c0_152, %c0_153] : memref<7x4x4xbf16, #tpu.memory_space<vmem>>, vector<1x4x4xbf16>
    %240 = vector.shape_cast %239 : vector<1x4x4xbf16> to vector<4x4xbf16>
    %cst_154 = arith.constant dense<0.000000e+00> : vector<64x4xf32>
    %241 = tpu.matmul %238, %240, %cst_154 {dimension_numbers = #tpu.dot_dimension_numbers<[1], [0], [0], [1], [0, 0, 1, 1], [], []>} : vector<64x4xbf16>, vector<4x4xbf16>, vector<64x4xf32> -> vector<64x4xf32>
    %242 = arith.addf %237, %241 : vector<64x4xf32>
    %243 = arith.truncf %225 : vector<64x4xf32> to vector<64x4xbf16>
    %c3_155 = arith.constant 3 : index
    %c0_156 = arith.constant 0 : index
    %c0_157 = arith.constant 0 : index
    %244 = vector.load %arg19[%c3_155, %c0_156, %c0_157] : memref<7x4x4xbf16, #tpu.memory_space<vmem>>, vector<1x4x4xbf16>
    %245 = vector.shape_cast %244 : vector<1x4x4xbf16> to vector<4x4xbf16>
    %cst_158 = arith.constant dense<0.000000e+00> : vector<64x4xf32>
    %246 = tpu.matmul %243, %245, %cst_158 {dimension_numbers = #tpu.dot_dimension_numbers<[1], [0], [0], [1], [0, 0, 1, 1], [], []>} : vector<64x4xbf16>, vector<4x4xbf16>, vector<64x4xf32> -> vector<64x4xf32>
    %247 = arith.addf %242, %246 : vector<64x4xf32>
    %248 = arith.truncf %226 : vector<64x4xf32> to vector<64x4xbf16>
    %c4_159 = arith.constant 4 : index
    %c0_160 = arith.constant 0 : index
    %c0_161 = arith.constant 0 : index
    %249 = vector.load %arg19[%c4_159, %c0_160, %c0_161] : memref<7x4x4xbf16, #tpu.memory_space<vmem>>, vector<1x4x4xbf16>
    %250 = vector.shape_cast %249 : vector<1x4x4xbf16> to vector<4x4xbf16>
    %cst_162 = arith.constant dense<0.000000e+00> : vector<64x4xf32>
    %251 = tpu.matmul %248, %250, %cst_162 {dimension_numbers = #tpu.dot_dimension_numbers<[1], [0], [0], [1], [0, 0, 1, 1], [], []>} : vector<64x4xbf16>, vector<4x4xbf16>, vector<64x4xf32> -> vector<64x4xf32>
    %252 = arith.addf %247, %251 : vector<64x4xf32>
    %253 = arith.truncf %227 : vector<64x4xf32> to vector<64x4xbf16>
    %c5_163 = arith.constant 5 : index
    %c0_164 = arith.constant 0 : index
    %c0_165 = arith.constant 0 : index
    %254 = vector.load %arg19[%c5_163, %c0_164, %c0_165] : memref<7x4x4xbf16, #tpu.memory_space<vmem>>, vector<1x4x4xbf16>
    %255 = vector.shape_cast %254 : vector<1x4x4xbf16> to vector<4x4xbf16>
    %cst_166 = arith.constant dense<0.000000e+00> : vector<64x4xf32>
    %256 = tpu.matmul %253, %255, %cst_166 {dimension_numbers = #tpu.dot_dimension_numbers<[1], [0], [0], [1], [0, 0, 1, 1], [], []>} : vector<64x4xbf16>, vector<4x4xbf16>, vector<64x4xf32> -> vector<64x4xf32>
    %257 = arith.addf %252, %256 : vector<64x4xf32>
    %258 = arith.truncf %228 : vector<64x4xf32> to vector<64x4xbf16>
    %c6_167 = arith.constant 6 : index
    %c0_168 = arith.constant 0 : index
    %c0_169 = arith.constant 0 : index
    %259 = vector.load %arg19[%c6_167, %c0_168, %c0_169] : memref<7x4x4xbf16, #tpu.memory_space<vmem>>, vector<1x4x4xbf16>
    %260 = vector.shape_cast %259 : vector<1x4x4xbf16> to vector<4x4xbf16>
    %cst_170 = arith.constant dense<0.000000e+00> : vector<64x4xf32>
    %261 = tpu.matmul %258, %260, %cst_170 {dimension_numbers = #tpu.dot_dimension_numbers<[1], [0], [0], [1], [0, 0, 1, 1], [], []>} : vector<64x4xbf16>, vector<4x4xbf16>, vector<64x4xf32> -> vector<64x4xf32>
    %262 = arith.addf %257, %261 : vector<64x4xf32>
    %c0_171 = arith.constant 0 : index
    %c0_172 = arith.constant 0 : index
    %263 = vector.load %arg20[%c0_171, %c0_172] : memref<1x4xf32, #tpu.memory_space<vmem>>, vector<1x4xf32>
    %264 = vector.broadcast %263 : vector<1x4xf32> to vector<64x4xf32>
    %265 = arith.mulf %262, %264 : vector<64x4xf32>
    %c0_173 = arith.constant 0 : index
    %c0_174 = arith.constant 0 : index
    %266 = vector.load %arg21[%c0_173, %c0_174] : memref<1x4xf32, #tpu.memory_space<vmem>>, vector<1x4xf32>
    %267 = vector.broadcast %266 : vector<1x4xf32> to vector<64x4xf32>
    %268 = arith.addf %265, %267 : vector<64x4xf32>
    %cst_175 = arith.constant 0.000000e+00 : f32
    %269 = vector.broadcast %cst_175 : f32 to vector<64x4xf32>
    %270 = arith.maximumf %268, %269 : vector<64x4xf32>
    %271 = arith.truncf %270 : vector<64x4xf32> to vector<64x4xbf16>
    %c0_176 = arith.constant 0 : index
    %c0_177 = arith.constant 0 : index
    %272 = vector.load %arg22[%c0_176, %c0_177] : memref<4x16xbf16, #tpu.memory_space<vmem>>, vector<4x16xbf16>
    %cst_178 = arith.constant dense<0.000000e+00> : vector<64x16xf32>
    %273 = tpu.matmul %271, %272, %cst_178 {dimension_numbers = #tpu.dot_dimension_numbers<[1], [0], [0], [1], [0, 0, 1, 1], [], []>} : vector<64x4xbf16>, vector<4x16xbf16>, vector<64x16xf32> -> vector<64x16xf32>
    %c0_179 = arith.constant 0 : index
    %c0_180 = arith.constant 0 : index
    %274 = vector.load %arg23[%c0_179, %c0_180] : memref<1x16xf32, #tpu.memory_space<vmem>>, vector<1x16xf32>
    %275 = vector.broadcast %274 : vector<1x16xf32> to vector<64x16xf32>
    %276 = arith.mulf %273, %275 : vector<64x16xf32>
    %c0_181 = arith.constant 0 : index
    %c0_182 = arith.constant 0 : index
    %277 = vector.load %arg24[%c0_181, %c0_182] : memref<1x16xf32, #tpu.memory_space<vmem>>, vector<1x16xf32>
    %278 = vector.broadcast %277 : vector<1x16xf32> to vector<64x16xf32>
    %279 = arith.addf %276, %278 : vector<64x16xf32>
    %280 = arith.addf %29, %279 : vector<64x16xf32>
    %cst_183 = arith.constant 0.000000e+00 : f32
    %281 = vector.broadcast %cst_183 : f32 to vector<64x16xf32>
    %282 = arith.maximumf %18, %281 : vector<64x16xf32>
    %283 = arith.truncf %282 : vector<64x16xf32> to vector<64x16xbf16>
    %c0_184 = arith.constant 0 : index
    %c0_185 = arith.constant 0 : index
    %284 = vector.load %arg25[%c0_184, %c0_185] : memref<16x16xbf16, #tpu.memory_space<vmem>>, vector<16x16xbf16>
    %cst_186 = arith.constant dense<0.000000e+00> : vector<64x16xf32>
    %285 = tpu.matmul %283, %284, %cst_186 {dimension_numbers = #tpu.dot_dimension_numbers<[1], [0], [0], [1], [0, 0, 1, 1], [], []>} : vector<64x16xbf16>, vector<16x16xbf16>, vector<64x16xf32> -> vector<64x16xf32>
    %c0_187 = arith.constant 0 : index
    %c0_188 = arith.constant 0 : index
    %286 = vector.load %arg26[%c0_187, %c0_188] : memref<1x16xf32, #tpu.memory_space<vmem>>, vector<1x16xf32>
    %287 = vector.broadcast %286 : vector<1x16xf32> to vector<64x16xf32>
    %288 = arith.mulf %285, %287 : vector<64x16xf32>
    %c0_189 = arith.constant 0 : index
    %c0_190 = arith.constant 0 : index
    %289 = vector.load %arg27[%c0_189, %c0_190] : memref<1x16xf32, #tpu.memory_space<vmem>>, vector<1x16xf32>
    %290 = vector.broadcast %289 : vector<1x16xf32> to vector<64x16xf32>
    %291 = arith.addf %288, %290 : vector<64x16xf32>
    %cst_191 = arith.constant 0.000000e+00 : f32
    %292 = vector.broadcast %cst_191 : f32 to vector<64x16xf32>
    %293 = arith.maximumf %18, %292 : vector<64x16xf32>
    %294 = arith.truncf %293 : vector<64x16xf32> to vector<64x16xbf16>
    %c0_192 = arith.constant 0 : index
    %c0_193 = arith.constant 0 : index
    %295 = vector.load %arg28[%c0_192, %c0_193] : memref<16x4xbf16, #tpu.memory_space<vmem>>, vector<16x4xbf16>
    %cst_194 = arith.constant dense<0.000000e+00> : vector<64x4xf32>
    %296 = tpu.matmul %294, %295, %cst_194 {dimension_numbers = #tpu.dot_dimension_numbers<[1], [0], [0], [1], [0, 0, 1, 1], [], []>} : vector<64x16xbf16>, vector<16x4xbf16>, vector<64x4xf32> -> vector<64x4xf32>
    %c0_195 = arith.constant 0 : index
    %c0_196 = arith.constant 0 : index
    %297 = vector.load %arg29[%c0_195, %c0_196] : memref<1x4xf32, #tpu.memory_space<vmem>>, vector<1x4xf32>
    %298 = vector.broadcast %297 : vector<1x4xf32> to vector<64x4xf32>
    %299 = arith.mulf %296, %298 : vector<64x4xf32>
    %c0_197 = arith.constant 0 : index
    %c0_198 = arith.constant 0 : index
    %300 = vector.load %arg30[%c0_197, %c0_198] : memref<1x4xf32, #tpu.memory_space<vmem>>, vector<1x4xf32>
    %301 = vector.broadcast %300 : vector<1x4xf32> to vector<64x4xf32>
    %302 = arith.addf %299, %301 : vector<64x4xf32>
    %cst_199 = arith.constant 0.000000e+00 : f32
    %303 = vector.broadcast %cst_199 : f32 to vector<64x4xf32>
    %304 = arith.maximumf %302, %303 : vector<64x4xf32>
    %c24_200 = arith.constant 24 : index
    %c0_201 = arith.constant 0 : index
    %305 = vector.load %arg45[%c24_200, %c0_201] : memref<112x4xf32, #tpu.memory_space<vmem>>, vector<64x4xf32>
    tpu.vector_store %arg45[%c24_200, %c0_201], %304 {strides = array<i32>} : memref<112x4xf32, #tpu.memory_space<vmem>>, vector<64x4xf32>,
    %c21_202 = arith.constant 21 : index
    %c0_203 = arith.constant 0 : index
    %306 = vector.load %arg45[%c21_202, %c0_203] : memref<112x4xf32, #tpu.memory_space<vmem>>, vector<64x4xf32>
    %307 = vector.shape_cast %6 : vector<64x1xf32> to vector<64x1xf32>
    %308 = vector.broadcast %307 : vector<64x1xf32> to vector<64x4xf32>
    %cst_204 = arith.constant -3.000000e+00 : f32
    %309 = vector.broadcast %cst_204 : f32 to vector<64x4xf32>
    %310 = arith.addf %308, %309 : vector<64x4xf32>
    %cst_205 = arith.constant 0.000000e+00 : f32
    %311 = vector.broadcast %cst_205 : f32 to vector<64x4xf32>
    %312 = arith.cmpf oge, %310, %311 : vector<64x4xf32>
    %cst_206 = arith.constant -3.000000e+00 : f32
    %313 = vector.broadcast %cst_206 : f32 to vector<64x4xf32>
    %314 = arith.addf %308, %313 : vector<64x4xf32>
    %cst_207 = arith.constant 7.000000e+00 : f32
    %315 = vector.broadcast %cst_207 : f32 to vector<64x4xf32>
    %316 = arith.cmpf ole, %314, %315 : vector<64x4xf32>
    %317 = arith.andi %312, %316 : vector<64x4xi1>
    %cst_208 = arith.constant 0.000000e+00 : f32
    %318 = vector.broadcast %cst_208 : f32 to vector<64x4xf32>
    %319 = arith.select %317, %306, %318 : vector<64x4xi1>, vector<64x4xf32>
    %c22_209 = arith.constant 22 : index
    %c0_210 = arith.constant 0 : index
    %320 = vector.load %arg45[%c22_209, %c0_210] : memref<112x4xf32, #tpu.memory_space<vmem>>, vector<64x4xf32>
    %321 = vector.shape_cast %6 : vector<64x1xf32> to vector<64x1xf32>
    %322 = vector.broadcast %321 : vector<64x1xf32> to vector<64x4xf32>
    %cst_211 = arith.constant -2.000000e+00 : f32
    %323 = vector.broadcast %cst_211 : f32 to vector<64x4xf32>
    %324 = arith.addf %322, %323 : vector<64x4xf32>
    %cst_212 = arith.constant 0.000000e+00 : f32
    %325 = vector.broadcast %cst_212 : f32 to vector<64x4xf32>
    %326 = arith.cmpf oge, %324, %325 : vector<64x4xf32>
    %cst_213 = arith.constant -2.000000e+00 : f32
    %327 = vector.broadcast %cst_213 : f32 to vector<64x4xf32>
    %328 = arith.addf %322, %327 : vector<64x4xf32>
    %cst_214 = arith.constant 7.000000e+00 : f32
    %329 = vector.broadcast %cst_214 : f32 to vector<64x4xf32>
    %330 = arith.cmpf ole, %328, %329 : vector<64x4xf32>
    %331 = arith.andi %326, %330 : vector<64x4xi1>
    %cst_215 = arith.constant 0.000000e+00 : f32
    %332 = vector.broadcast %cst_215 : f32 to vector<64x4xf32>
    %333 = arith.select %331, %320, %332 : vector<64x4xi1>, vector<64x4xf32>
    %c23_216 = arith.constant 23 : index
    %c0_217 = arith.constant 0 : index
    %334 = vector.load %arg45[%c23_216, %c0_217] : memref<112x4xf32, #tpu.memory_space<vmem>>, vector<64x4xf32>
    %335 = vector.shape_cast %6 : vector<64x1xf32> to vector<64x1xf32>
    %336 = vector.broadcast %335 : vector<64x1xf32> to vector<64x4xf32>
    %cst_218 = arith.constant -1.000000e+00 : f32
    %337 = vector.broadcast %cst_218 : f32 to vector<64x4xf32>
    %338 = arith.addf %336, %337 : vector<64x4xf32>
    %cst_219 = arith.constant 0.000000e+00 : f32
    %339 = vector.broadcast %cst_219 : f32 to vector<64x4xf32>
    %340 = arith.cmpf oge, %338, %339 : vector<64x4xf32>
    %cst_220 = arith.constant -1.000000e+00 : f32
    %341 = vector.broadcast %cst_220 : f32 to vector<64x4xf32>
    %342 = arith.addf %336, %341 : vector<64x4xf32>
    %cst_221 = arith.constant 7.000000e+00 : f32
    %343 = vector.broadcast %cst_221 : f32 to vector<64x4xf32>
    %344 = arith.cmpf ole, %342, %343 : vector<64x4xf32>
    %345 = arith.andi %340, %344 : vector<64x4xi1>
    %cst_222 = arith.constant 0.000000e+00 : f32
    %346 = vector.broadcast %cst_222 : f32 to vector<64x4xf32>
    %347 = arith.select %345, %334, %346 : vector<64x4xi1>, vector<64x4xf32>
    %c24_223 = arith.constant 24 : index
    %c0_224 = arith.constant 0 : index
    %348 = vector.load %arg45[%c24_223, %c0_224] : memref<112x4xf32, #tpu.memory_space<vmem>>, vector<64x4xf32>
    %c25_225 = arith.constant 25 : index
    %c0_226 = arith.constant 0 : index
    %349 = vector.load %arg45[%c25_225, %c0_226] : memref<112x4xf32, #tpu.memory_space<vmem>>, vector<64x4xf32>
    %350 = vector.shape_cast %6 : vector<64x1xf32> to vector<64x1xf32>
    %351 = vector.broadcast %350 : vector<64x1xf32> to vector<64x4xf32>
    %cst_227 = arith.constant 1.000000e+00 : f32
    %352 = vector.broadcast %cst_227 : f32 to vector<64x4xf32>
    %353 = arith.addf %351, %352 : vector<64x4xf32>
    %cst_228 = arith.constant 0.000000e+00 : f32
    %354 = vector.broadcast %cst_228 : f32 to vector<64x4xf32>
    %355 = arith.cmpf oge, %353, %354 : vector<64x4xf32>
    %cst_229 = arith.constant 1.000000e+00 : f32
    %356 = vector.broadcast %cst_229 : f32 to vector<64x4xf32>
    %357 = arith.addf %351, %356 : vector<64x4xf32>
    %cst_230 = arith.constant 7.000000e+00 : f32
    %358 = vector.broadcast %cst_230 : f32 to vector<64x4xf32>
    %359 = arith.cmpf ole, %357, %358 : vector<64x4xf32>
    %360 = arith.andi %355, %359 : vector<64x4xi1>
    %cst_231 = arith.constant 0.000000e+00 : f32
    %361 = vector.broadcast %cst_231 : f32 to vector<64x4xf32>
    %362 = arith.select %360, %349, %361 : vector<64x4xi1>, vector<64x4xf32>
    %c26_232 = arith.constant 26 : index
    %c0_233 = arith.constant 0 : index
    %363 = vector.load %arg45[%c26_232, %c0_233] : memref<112x4xf32, #tpu.memory_space<vmem>>, vector<64x4xf32>
    %364 = vector.shape_cast %6 : vector<64x1xf32> to vector<64x1xf32>
    %365 = vector.broadcast %364 : vector<64x1xf32> to vector<64x4xf32>
    %cst_234 = arith.constant 2.000000e+00 : f32
    %366 = vector.broadcast %cst_234 : f32 to vector<64x4xf32>
    %367 = arith.addf %365, %366 : vector<64x4xf32>
    %cst_235 = arith.constant 0.000000e+00 : f32
    %368 = vector.broadcast %cst_235 : f32 to vector<64x4xf32>
    %369 = arith.cmpf oge, %367, %368 : vector<64x4xf32>
    %cst_236 = arith.constant 2.000000e+00 : f32
    %370 = vector.broadcast %cst_236 : f32 to vector<64x4xf32>
    %371 = arith.addf %365, %370 : vector<64x4xf32>
    %cst_237 = arith.constant 7.000000e+00 : f32
    %372 = vector.broadcast %cst_237 : f32 to vector<64x4xf32>
    %373 = arith.cmpf ole, %371, %372 : vector<64x4xf32>
    %374 = arith.andi %369, %373 : vector<64x4xi1>
    %cst_238 = arith.constant 0.000000e+00 : f32
    %375 = vector.broadcast %cst_238 : f32 to vector<64x4xf32>
    %376 = arith.select %374, %363, %375 : vector<64x4xi1>, vector<64x4xf32>
    %c27_239 = arith.constant 27 : index
    %c0_240 = arith.constant 0 : index
    %377 = vector.load %arg45[%c27_239, %c0_240] : memref<112x4xf32, #tpu.memory_space<vmem>>, vector<64x4xf32>
    %378 = vector.shape_cast %6 : vector<64x1xf32> to vector<64x1xf32>
    %379 = vector.broadcast %378 : vector<64x1xf32> to vector<64x4xf32>
    %cst_241 = arith.constant 3.000000e+00 : f32
    %380 = vector.broadcast %cst_241 : f32 to vector<64x4xf32>
    %381 = arith.addf %379, %380 : vector<64x4xf32>
    %cst_242 = arith.constant 0.000000e+00 : f32
    %382 = vector.broadcast %cst_242 : f32 to vector<64x4xf32>
    %383 = arith.cmpf oge, %381, %382 : vector<64x4xf32>
    %cst_243 = arith.constant 3.000000e+00 : f32
    %384 = vector.broadcast %cst_243 : f32 to vector<64x4xf32>
    %385 = arith.addf %379, %384 : vector<64x4xf32>
    %cst_244 = arith.constant 7.000000e+00 : f32
    %386 = vector.broadcast %cst_244 : f32 to vector<64x4xf32>
    %387 = arith.cmpf ole, %385, %386 : vector<64x4xf32>
    %388 = arith.andi %383, %387 : vector<64x4xi1>
    %cst_245 = arith.constant 0.000000e+00 : f32
    %389 = vector.broadcast %cst_245 : f32 to vector<64x4xf32>
    %390 = arith.select %388, %377, %389 : vector<64x4xi1>, vector<64x4xf32>
    %391 = arith.truncf %319 : vector<64x4xf32> to vector<64x4xbf16>
    %c0_246 = arith.constant 0 : index
    %c0_247 = arith.constant 0 : index
    %c0_248 = arith.constant 0 : index
    %392 = vector.load %arg31[%c0_246, %c0_247, %c0_248] : memref<7x4x4xbf16, #tpu.memory_space<vmem>>, vector<1x4x4xbf16>
    %393 = vector.shape_cast %392 : vector<1x4x4xbf16> to vector<4x4xbf16>
    %cst_249 = arith.constant dense<0.000000e+00> : vector<64x4xf32>
    %394 = tpu.matmul %391, %393, %cst_249 {dimension_numbers = #tpu.dot_dimension_numbers<[1], [0], [0], [1], [0, 0, 1, 1], [], []>} : vector<64x4xbf16>, vector<4x4xbf16>, vector<64x4xf32> -> vector<64x4xf32>
    %395 = arith.truncf %333 : vector<64x4xf32> to vector<64x4xbf16>
    %c1_250 = arith.constant 1 : index
    %c0_251 = arith.constant 0 : index
    %c0_252 = arith.constant 0 : index
    %396 = vector.load %arg31[%c1_250, %c0_251, %c0_252] : memref<7x4x4xbf16, #tpu.memory_space<vmem>>, vector<1x4x4xbf16>
    %397 = vector.shape_cast %396 : vector<1x4x4xbf16> to vector<4x4xbf16>
    %cst_253 = arith.constant dense<0.000000e+00> : vector<64x4xf32>
    %398 = tpu.matmul %395, %397, %cst_253 {dimension_numbers = #tpu.dot_dimension_numbers<[1], [0], [0], [1], [0, 0, 1, 1], [], []>} : vector<64x4xbf16>, vector<4x4xbf16>, vector<64x4xf32> -> vector<64x4xf32>
    %399 = arith.addf %394, %398 : vector<64x4xf32>
    %400 = arith.truncf %347 : vector<64x4xf32> to vector<64x4xbf16>
    %c2_254 = arith.constant 2 : index
    %c0_255 = arith.constant 0 : index
    %c0_256 = arith.constant 0 : index
    %401 = vector.load %arg31[%c2_254, %c0_255, %c0_256] : memref<7x4x4xbf16, #tpu.memory_space<vmem>>, vector<1x4x4xbf16>
    %402 = vector.shape_cast %401 : vector<1x4x4xbf16> to vector<4x4xbf16>
    %cst_257 = arith.constant dense<0.000000e+00> : vector<64x4xf32>
    %403 = tpu.matmul %400, %402, %cst_257 {dimension_numbers = #tpu.dot_dimension_numbers<[1], [0], [0], [1], [0, 0, 1, 1], [], []>} : vector<64x4xbf16>, vector<4x4xbf16>, vector<64x4xf32> -> vector<64x4xf32>
    %404 = arith.addf %399, %403 : vector<64x4xf32>
    %405 = arith.truncf %348 : vector<64x4xf32> to vector<64x4xbf16>
    %c3_258 = arith.constant 3 : index
    %c0_259 = arith.constant 0 : index
    %c0_260 = arith.constant 0 : index
    %406 = vector.load %arg31[%c3_258, %c0_259, %c0_260] : memref<7x4x4xbf16, #tpu.memory_space<vmem>>, vector<1x4x4xbf16>
    %407 = vector.shape_cast %406 : vector<1x4x4xbf16> to vector<4x4xbf16>
    %cst_261 = arith.constant dense<0.000000e+00> : vector<64x4xf32>
    %408 = tpu.matmul %405, %407, %cst_261 {dimension_numbers = #tpu.dot_dimension_numbers<[1], [0], [0], [1], [0, 0, 1, 1], [], []>} : vector<64x4xbf16>, vector<4x4xbf16>, vector<64x4xf32> -> vector<64x4xf32>
    %409 = arith.addf %404, %408 : vector<64x4xf32>
    %410 = arith.truncf %362 : vector<64x4xf32> to vector<64x4xbf16>
    %c4_262 = arith.constant 4 : index
    %c0_263 = arith.constant 0 : index
    %c0_264 = arith.constant 0 : index
    %411 = vector.load %arg31[%c4_262, %c0_263, %c0_264] : memref<7x4x4xbf16, #tpu.memory_space<vmem>>, vector<1x4x4xbf16>
    %412 = vector.shape_cast %411 : vector<1x4x4xbf16> to vector<4x4xbf16>
    %cst_265 = arith.constant dense<0.000000e+00> : vector<64x4xf32>
    %413 = tpu.matmul %410, %412, %cst_265 {dimension_numbers = #tpu.dot_dimension_numbers<[1], [0], [0], [1], [0, 0, 1, 1], [], []>} : vector<64x4xbf16>, vector<4x4xbf16>, vector<64x4xf32> -> vector<64x4xf32>
    %414 = arith.addf %409, %413 : vector<64x4xf32>
    %415 = arith.truncf %376 : vector<64x4xf32> to vector<64x4xbf16>
    %c5_266 = arith.constant 5 : index
    %c0_267 = arith.constant 0 : index
    %c0_268 = arith.constant 0 : index
    %416 = vector.load %arg31[%c5_266, %c0_267, %c0_268] : memref<7x4x4xbf16, #tpu.memory_space<vmem>>, vector<1x4x4xbf16>
    %417 = vector.shape_cast %416 : vector<1x4x4xbf16> to vector<4x4xbf16>
    %cst_269 = arith.constant dense<0.000000e+00> : vector<64x4xf32>
    %418 = tpu.matmul %415, %417, %cst_269 {dimension_numbers = #tpu.dot_dimension_numbers<[1], [0], [0], [1], [0, 0, 1, 1], [], []>} : vector<64x4xbf16>, vector<4x4xbf16>, vector<64x4xf32> -> vector<64x4xf32>
    %419 = arith.addf %414, %418 : vector<64x4xf32>
    %420 = arith.truncf %390 : vector<64x4xf32> to vector<64x4xbf16>
    %c6_270 = arith.constant 6 : index
    %c0_271 = arith.constant 0 : index
    %c0_272 = arith.constant 0 : index
    %421 = vector.load %arg31[%c6_270, %c0_271, %c0_272] : memref<7x4x4xbf16, #tpu.memory_space<vmem>>, vector<1x4x4xbf16>
    %422 = vector.shape_cast %421 : vector<1x4x4xbf16> to vector<4x4xbf16>
    %cst_273 = arith.constant dense<0.000000e+00> : vector<64x4xf32>
    %423 = tpu.matmul %420, %422, %cst_273 {dimension_numbers = #tpu.dot_dimension_numbers<[1], [0], [0], [1], [0, 0, 1, 1], [], []>} : vector<64x4xbf16>, vector<4x4xbf16>, vector<64x4xf32> -> vector<64x4xf32>
    %424 = arith.addf %419, %423 : vector<64x4xf32>
    %c0_274 = arith.constant 0 : index
    %c0_275 = arith.constant 0 : index
    %425 = vector.load %arg32[%c0_274, %c0_275] : memref<1x4xf32, #tpu.memory_space<vmem>>, vector<1x4xf32>
    %426 = vector.broadcast %425 : vector<1x4xf32> to vector<64x4xf32>
    %427 = arith.mulf %424, %426 : vector<64x4xf32>
    %c0_276 = arith.constant 0 : index
    %c0_277 = arith.constant 0 : index
    %428 = vector.load %arg33[%c0_276, %c0_277] : memref<1x4xf32, #tpu.memory_space<vmem>>, vector<1x4xf32>
    %429 = vector.broadcast %428 : vector<1x4xf32> to vector<64x4xf32>
    %430 = arith.addf %427, %429 : vector<64x4xf32>
    %cst_278 = arith.constant 0.000000e+00 : f32
    %431 = vector.broadcast %cst_278 : f32 to vector<64x4xf32>
    %432 = arith.maximumf %430, %431 : vector<64x4xf32>
    %c24_279 = arith.constant 24 : index
    %c0_280 = arith.constant 0 : index
    %433 = vector.load %arg45[%c24_279, %c0_280] : memref<112x4xf32, #tpu.memory_space<vmem>>, vector<64x4xf32>
    tpu.vector_store %arg45[%c24_279, %c0_280], %432 {strides = array<i32>} : memref<112x4xf32, #tpu.memory_space<vmem>>, vector<64x4xf32>,
    %c0_281 = arith.constant 0 : index
    %c0_282 = arith.constant 0 : index
    %434 = vector.load %arg45[%c0_281, %c0_282] : memref<112x4xf32, #tpu.memory_space<vmem>>, vector<64x4xf32>
    %c8_283 = arith.constant 8 : index
    %c0_284 = arith.constant 0 : index
    %435 = vector.load %arg45[%c8_283, %c0_284] : memref<112x4xf32, #tpu.memory_space<vmem>>, vector<64x4xf32>
    %c16_285 = arith.constant 16 : index
    %c0_286 = arith.constant 0 : index
    %436 = vector.load %arg45[%c16_285, %c0_286] : memref<112x4xf32, #tpu.memory_space<vmem>>, vector<64x4xf32>
    %c24_287 = arith.constant 24 : index
    %c0_288 = arith.constant 0 : index
    %437 = vector.load %arg45[%c24_287, %c0_288] : memref<112x4xf32, #tpu.memory_space<vmem>>, vector<64x4xf32>
    %c32_289 = arith.constant 32 : index
    %c0_290 = arith.constant 0 : index
    %438 = vector.load %arg45[%c32_289, %c0_290] : memref<112x4xf32, #tpu.memory_space<vmem>>, vector<64x4xf32>
    %c40_291 = arith.constant 40 : index
    %c0_292 = arith.constant 0 : index
    %439 = vector.load %arg45[%c40_291, %c0_292] : memref<112x4xf32, #tpu.memory_space<vmem>>, vector<64x4xf32>
    %c48_293 = arith.constant 48 : index
    %c0_294 = arith.constant 0 : index
    %440 = vector.load %arg45[%c48_293, %c0_294] : memref<112x4xf32, #tpu.memory_space<vmem>>, vector<64x4xf32>
    %441 = arith.truncf %434 : vector<64x4xf32> to vector<64x4xbf16>
    %c0_295 = arith.constant 0 : index
    %c0_296 = arith.constant 0 : index
    %c0_297 = arith.constant 0 : index
    %442 = vector.load %arg34[%c0_295, %c0_296, %c0_297] : memref<7x4x4xbf16, #tpu.memory_space<vmem>>, vector<1x4x4xbf16>
    %443 = vector.shape_cast %442 : vector<1x4x4xbf16> to vector<4x4xbf16>
    %cst_298 = arith.constant dense<0.000000e+00> : vector<64x4xf32>
    %444 = tpu.matmul %441, %443, %cst_298 {dimension_numbers = #tpu.dot_dimension_numbers<[1], [0], [0], [1], [0, 0, 1, 1], [], []>} : vector<64x4xbf16>, vector<4x4xbf16>, vector<64x4xf32> -> vector<64x4xf32>
    %445 = arith.truncf %435 : vector<64x4xf32> to vector<64x4xbf16>
    %c1_299 = arith.constant 1 : index
    %c0_300 = arith.constant 0 : index
    %c0_301 = arith.constant 0 : index
    %446 = vector.load %arg34[%c1_299, %c0_300, %c0_301] : memref<7x4x4xbf16, #tpu.memory_space<vmem>>, vector<1x4x4xbf16>
    %447 = vector.shape_cast %446 : vector<1x4x4xbf16> to vector<4x4xbf16>
    %cst_302 = arith.constant dense<0.000000e+00> : vector<64x4xf32>
    %448 = tpu.matmul %445, %447, %cst_302 {dimension_numbers = #tpu.dot_dimension_numbers<[1], [0], [0], [1], [0, 0, 1, 1], [], []>} : vector<64x4xbf16>, vector<4x4xbf16>, vector<64x4xf32> -> vector<64x4xf32>
    %449 = arith.addf %444, %448 : vector<64x4xf32>
    %450 = arith.truncf %436 : vector<64x4xf32> to vector<64x4xbf16>
    %c2_303 = arith.constant 2 : index
    %c0_304 = arith.constant 0 : index
    %c0_305 = arith.constant 0 : index
    %451 = vector.load %arg34[%c2_303, %c0_304, %c0_305] : memref<7x4x4xbf16, #tpu.memory_space<vmem>>, vector<1x4x4xbf16>
    %452 = vector.shape_cast %451 : vector<1x4x4xbf16> to vector<4x4xbf16>
    %cst_306 = arith.constant dense<0.000000e+00> : vector<64x4xf32>
    %453 = tpu.matmul %450, %452, %cst_306 {dimension_numbers = #tpu.dot_dimension_numbers<[1], [0], [0], [1], [0, 0, 1, 1], [], []>} : vector<64x4xbf16>, vector<4x4xbf16>, vector<64x4xf32> -> vector<64x4xf32>
    %454 = arith.addf %449, %453 : vector<64x4xf32>
    %455 = arith.truncf %437 : vector<64x4xf32> to vector<64x4xbf16>
    %c3_307 = arith.constant 3 : index
    %c0_308 = arith.constant 0 : index
    %c0_309 = arith.constant 0 : index
    %456 = vector.load %arg34[%c3_307, %c0_308, %c0_309] : memref<7x4x4xbf16, #tpu.memory_space<vmem>>, vector<1x4x4xbf16>
    %457 = vector.shape_cast %456 : vector<1x4x4xbf16> to vector<4x4xbf16>
    %cst_310 = arith.constant dense<0.000000e+00> : vector<64x4xf32>
    %458 = tpu.matmul %455, %457, %cst_310 {dimension_numbers = #tpu.dot_dimension_numbers<[1], [0], [0], [1], [0, 0, 1, 1], [], []>} : vector<64x4xbf16>, vector<4x4xbf16>, vector<64x4xf32> -> vector<64x4xf32>
    %459 = arith.addf %454, %458 : vector<64x4xf32>
    %460 = arith.truncf %438 : vector<64x4xf32> to vector<64x4xbf16>
    %c4_311 = arith.constant 4 : index
    %c0_312 = arith.constant 0 : index
    %c0_313 = arith.constant 0 : index
    %461 = vector.load %arg34[%c4_311, %c0_312, %c0_313] : memref<7x4x4xbf16, #tpu.memory_space<vmem>>, vector<1x4x4xbf16>
    %462 = vector.shape_cast %461 : vector<1x4x4xbf16> to vector<4x4xbf16>
    %cst_314 = arith.constant dense<0.000000e+00> : vector<64x4xf32>
    %463 = tpu.matmul %460, %462, %cst_314 {dimension_numbers = #tpu.dot_dimension_numbers<[1], [0], [0], [1], [0, 0, 1, 1], [], []>} : vector<64x4xbf16>, vector<4x4xbf16>, vector<64x4xf32> -> vector<64x4xf32>
    %464 = arith.addf %459, %463 : vector<64x4xf32>
    %465 = arith.truncf %439 : vector<64x4xf32> to vector<64x4xbf16>
    %c5_315 = arith.constant 5 : index
    %c0_316 = arith.constant 0 : index
    %c0_317 = arith.constant 0 : index
    %466 = vector.load %arg34[%c5_315, %c0_316, %c0_317] : memref<7x4x4xbf16, #tpu.memory_space<vmem>>, vector<1x4x4xbf16>
    %467 = vector.shape_cast %466 : vector<1x4x4xbf16> to vector<4x4xbf16>
    %cst_318 = arith.constant dense<0.000000e+00> : vector<64x4xf32>
    %468 = tpu.matmul %465, %467, %cst_318 {dimension_numbers = #tpu.dot_dimension_numbers<[1], [0], [0], [1], [0, 0, 1, 1], [], []>} : vector<64x4xbf16>, vector<4x4xbf16>, vector<64x4xf32> -> vector<64x4xf32>
    %469 = arith.addf %464, %468 : vector<64x4xf32>
    %470 = arith.truncf %440 : vector<64x4xf32> to vector<64x4xbf16>
    %c6_319 = arith.constant 6 : index
    %c0_320 = arith.constant 0 : index
    %c0_321 = arith.constant 0 : index
    %471 = vector.load %arg34[%c6_319, %c0_320, %c0_321] : memref<7x4x4xbf16, #tpu.memory_space<vmem>>, vector<1x4x4xbf16>
    %472 = vector.shape_cast %471 : vector<1x4x4xbf16> to vector<4x4xbf16>
    %cst_322 = arith.constant dense<0.000000e+00> : vector<64x4xf32>
    %473 = tpu.matmul %470, %472, %cst_322 {dimension_numbers = #tpu.dot_dimension_numbers<[1], [0], [0], [1], [0, 0, 1, 1], [], []>} : vector<64x4xbf16>, vector<4x4xbf16>, vector<64x4xf32> -> vector<64x4xf32>
    %474 = arith.addf %469, %473 : vector<64x4xf32>
    %c0_323 = arith.constant 0 : index
    %c0_324 = arith.constant 0 : index
    %475 = vector.load %arg35[%c0_323, %c0_324] : memref<1x4xf32, #tpu.memory_space<vmem>>, vector<1x4xf32>
    %476 = vector.broadcast %475 : vector<1x4xf32> to vector<64x4xf32>
    %477 = arith.mulf %474, %476 : vector<64x4xf32>
    %c0_325 = arith.constant 0 : index
    %c0_326 = arith.constant 0 : index
    %478 = vector.load %arg36[%c0_325, %c0_326] : memref<1x4xf32, #tpu.memory_space<vmem>>, vector<1x4xf32>
    %479 = vector.broadcast %478 : vector<1x4xf32> to vector<64x4xf32>
    %480 = arith.addf %477, %479 : vector<64x4xf32>
    %cst_327 = arith.constant 0.000000e+00 : f32
    %481 = vector.broadcast %cst_327 : f32 to vector<64x4xf32>
    %482 = arith.maximumf %480, %481 : vector<64x4xf32>
    %483 = arith.truncf %482 : vector<64x4xf32> to vector<64x4xbf16>
    %c0_328 = arith.constant 0 : index
    %c0_329 = arith.constant 0 : index
    %484 = vector.load %arg37[%c0_328, %c0_329] : memref<4x16xbf16, #tpu.memory_space<vmem>>, vector<4x16xbf16>
    %cst_330 = arith.constant dense<0.000000e+00> : vector<64x16xf32>
    %485 = tpu.matmul %483, %484, %cst_330 {dimension_numbers = #tpu.dot_dimension_numbers<[1], [0], [0], [1], [0, 0, 1, 1], [], []>} : vector<64x4xbf16>, vector<4x16xbf16>, vector<64x16xf32> -> vector<64x16xf32>
    %c0_331 = arith.constant 0 : index
    %c0_332 = arith.constant 0 : index
    %486 = vector.load %arg38[%c0_331, %c0_332] : memref<1x16xf32, #tpu.memory_space<vmem>>, vector<1x16xf32>
    %487 = vector.broadcast %486 : vector<1x16xf32> to vector<64x16xf32>
    %488 = arith.mulf %485, %487 : vector<64x16xf32>
    %c0_333 = arith.constant 0 : index
    %c0_334 = arith.constant 0 : index
    %489 = vector.load %arg39[%c0_333, %c0_334] : memref<1x16xf32, #tpu.memory_space<vmem>>, vector<1x16xf32>
    %490 = vector.broadcast %489 : vector<1x16xf32> to vector<64x16xf32>
    %491 = arith.addf %488, %490 : vector<64x16xf32>
    %492 = arith.addf %291, %491 : vector<64x16xf32>
    %c24_335 = arith.constant 24 : index
    %c0_336 = arith.constant 0 : index
    %493 = vector.load %arg44[%c24_335, %c0_336] : memref<112x16xf32, #tpu.memory_space<vmem>>, vector<64x16xf32>
    tpu.vector_store %arg44[%c24_335, %c0_336], %79 {strides = array<i32>} : memref<112x16xf32, #tpu.memory_space<vmem>>, vector<64x16xf32>,
    %c23_337 = arith.constant 23 : index
    %c0_338 = arith.constant 0 : index
    %494 = vector.load %arg44[%c23_337, %c0_338] : memref<112x16xf32, #tpu.memory_space<vmem>>, vector<64x16xf32>
    %495 = vector.shape_cast %6 : vector<64x1xf32> to vector<64x1xf32>
    %496 = vector.broadcast %495 : vector<64x1xf32> to vector<64x16xf32>
    %cst_339 = arith.constant -1.000000e+00 : f32
    %497 = vector.broadcast %cst_339 : f32 to vector<64x16xf32>
    %498 = arith.addf %496, %497 : vector<64x16xf32>
    %cst_340 = arith.constant 0.000000e+00 : f32
    %499 = vector.broadcast %cst_340 : f32 to vector<64x16xf32>
    %500 = arith.cmpf oge, %498, %499 : vector<64x16xf32>
    %cst_341 = arith.constant -1.000000e+00 : f32
    %501 = vector.broadcast %cst_341 : f32 to vector<64x16xf32>
    %502 = arith.addf %496, %501 : vector<64x16xf32>
    %cst_342 = arith.constant 7.000000e+00 : f32
    %503 = vector.broadcast %cst_342 : f32 to vector<64x16xf32>
    %504 = arith.cmpf ole, %502, %503 : vector<64x16xf32>
    %505 = arith.andi %500, %504 : vector<64x16xi1>
    %cst_343 = arith.constant 0.000000e+00 : f32
    %506 = vector.broadcast %cst_343 : f32 to vector<64x16xf32>
    %507 = arith.select %505, %494, %506 : vector<64x16xi1>, vector<64x16xf32>
    %c25_344 = arith.constant 25 : index
    %c0_345 = arith.constant 0 : index
    %508 = vector.load %arg44[%c25_344, %c0_345] : memref<112x16xf32, #tpu.memory_space<vmem>>, vector<64x16xf32>
    %509 = vector.shape_cast %6 : vector<64x1xf32> to vector<64x1xf32>
    %510 = vector.broadcast %509 : vector<64x1xf32> to vector<64x16xf32>
    %cst_346 = arith.constant 1.000000e+00 : f32
    %511 = vector.broadcast %cst_346 : f32 to vector<64x16xf32>
    %512 = arith.addf %510, %511 : vector<64x16xf32>
    %cst_347 = arith.constant 0.000000e+00 : f32
    %513 = vector.broadcast %cst_347 : f32 to vector<64x16xf32>
    %514 = arith.cmpf oge, %512, %513 : vector<64x16xf32>
    %cst_348 = arith.constant 1.000000e+00 : f32
    %515 = vector.broadcast %cst_348 : f32 to vector<64x16xf32>
    %516 = arith.addf %510, %515 : vector<64x16xf32>
    %cst_349 = arith.constant 7.000000e+00 : f32
    %517 = vector.broadcast %cst_349 : f32 to vector<64x16xf32>
    %518 = arith.cmpf ole, %516, %517 : vector<64x16xf32>
    %519 = arith.andi %514, %518 : vector<64x16xi1>
    %cst_350 = arith.constant 0.000000e+00 : f32
    %520 = vector.broadcast %cst_350 : f32 to vector<64x16xf32>
    %521 = arith.select %519, %508, %520 : vector<64x16xi1>, vector<64x16xf32>
    %522 = arith.addf %79, %507 : vector<64x16xf32>
    %523 = arith.addf %522, %521 : vector<64x16xf32>
    %c24_351 = arith.constant 24 : index
    %c0_352 = arith.constant 0 : index
    %524 = vector.load %arg44[%c24_351, %c0_352] : memref<112x16xf32, #tpu.memory_space<vmem>>, vector<64x16xf32>
    tpu.vector_store %arg44[%c24_351, %c0_352], %523 {strides = array<i32>} : memref<112x16xf32, #tpu.memory_space<vmem>>, vector<64x16xf32>,
    %c16_353 = arith.constant 16 : index
    %c0_354 = arith.constant 0 : index
    %525 = vector.load %arg44[%c16_353, %c0_354] : memref<112x16xf32, #tpu.memory_space<vmem>>, vector<64x16xf32>
    %c32_355 = arith.constant 32 : index
    %c0_356 = arith.constant 0 : index
    %526 = vector.load %arg44[%c32_355, %c0_356] : memref<112x16xf32, #tpu.memory_space<vmem>>, vector<64x16xf32>
    %527 = arith.addf %523, %525 : vector<64x16xf32>
    %528 = arith.addf %527, %526 : vector<64x16xf32>
    %529 = vector.broadcast %7 : vector<64x1xf32> to vector<64x16xf32>
    %530 = arith.mulf %528, %529 : vector<64x16xf32>
    %531 = arith.addf %530, %79 : vector<64x16xf32>
    %c24_357 = arith.constant 24 : index
    %c0_358 = arith.constant 0 : index
    %532 = vector.load %arg44[%c24_357, %c0_358] : memref<112x16xf32, #tpu.memory_space<vmem>>, vector<64x16xf32>
    tpu.vector_store %arg44[%c24_357, %c0_358], %29 {strides = array<i32>} : memref<112x16xf32, #tpu.memory_space<vmem>>, vector<64x16xf32>,
    %c23_359 = arith.constant 23 : index
    %c0_360 = arith.constant 0 : index
    %533 = vector.load %arg44[%c23_359, %c0_360] : memref<112x16xf32, #tpu.memory_space<vmem>>, vector<64x16xf32>
    %534 = vector.shape_cast %6 : vector<64x1xf32> to vector<64x1xf32>
    %535 = vector.broadcast %534 : vector<64x1xf32> to vector<64x16xf32>
    %cst_361 = arith.constant -1.000000e+00 : f32
    %536 = vector.broadcast %cst_361 : f32 to vector<64x16xf32>
    %537 = arith.addf %535, %536 : vector<64x16xf32>
    %cst_362 = arith.constant 0.000000e+00 : f32
    %538 = vector.broadcast %cst_362 : f32 to vector<64x16xf32>
    %539 = arith.cmpf oge, %537, %538 : vector<64x16xf32>
    %cst_363 = arith.constant -1.000000e+00 : f32
    %540 = vector.broadcast %cst_363 : f32 to vector<64x16xf32>
    %541 = arith.addf %535, %540 : vector<64x16xf32>
    %cst_364 = arith.constant 7.000000e+00 : f32
    %542 = vector.broadcast %cst_364 : f32 to vector<64x16xf32>
    %543 = arith.cmpf ole, %541, %542 : vector<64x16xf32>
    %544 = arith.andi %539, %543 : vector<64x16xi1>
    %cst_365 = arith.constant 0.000000e+00 : f32
    %545 = vector.broadcast %cst_365 : f32 to vector<64x16xf32>
    %546 = arith.select %544, %533, %545 : vector<64x16xi1>, vector<64x16xf32>
    %c25_366 = arith.constant 25 : index
    %c0_367 = arith.constant 0 : index
    %547 = vector.load %arg44[%c25_366, %c0_367] : memref<112x16xf32, #tpu.memory_space<vmem>>, vector<64x16xf32>
    %548 = vector.shape_cast %6 : vector<64x1xf32> to vector<64x1xf32>
    %549 = vector.broadcast %548 : vector<64x1xf32> to vector<64x16xf32>
    %cst_368 = arith.constant 1.000000e+00 : f32
    %550 = vector.broadcast %cst_368 : f32 to vector<64x16xf32>
    %551 = arith.addf %549, %550 : vector<64x16xf32>
    %cst_369 = arith.constant 0.000000e+00 : f32
    %552 = vector.broadcast %cst_369 : f32 to vector<64x16xf32>
    %553 = arith.cmpf oge, %551, %552 : vector<64x16xf32>
    %cst_370 = arith.constant 1.000000e+00 : f32
    %554 = vector.broadcast %cst_370 : f32 to vector<64x16xf32>
    %555 = arith.addf %549, %554 : vector<64x16xf32>
    %cst_371 = arith.constant 7.000000e+00 : f32
    %556 = vector.broadcast %cst_371 : f32 to vector<64x16xf32>
    %557 = arith.cmpf ole, %555, %556 : vector<64x16xf32>
    %558 = arith.andi %553, %557 : vector<64x16xi1>
    %cst_372 = arith.constant 0.000000e+00 : f32
    %559 = vector.broadcast %cst_372 : f32 to vector<64x16xf32>
    %560 = arith.select %558, %547, %559 : vector<64x16xi1>, vector<64x16xf32>
    %561 = arith.addf %29, %546 : vector<64x16xf32>
    %562 = arith.addf %561, %560 : vector<64x16xf32>
    %c24_373 = arith.constant 24 : index
    %c0_374 = arith.constant 0 : index
    %563 = vector.load %arg44[%c24_373, %c0_374] : memref<112x16xf32, #tpu.memory_space<vmem>>, vector<64x16xf32>
    tpu.vector_store %arg44[%c24_373, %c0_374], %562 {strides = array<i32>} : memref<112x16xf32, #tpu.memory_space<vmem>>, vector<64x16xf32>,
    %c16_375 = arith.constant 16 : index
    %c0_376 = arith.constant 0 : index
    %564 = vector.load %arg44[%c16_375, %c0_376] : memref<112x16xf32, #tpu.memory_space<vmem>>, vector<64x16xf32>
    %c32_377 = arith.constant 32 : index
    %c0_378 = arith.constant 0 : index
    %565 = vector.load %arg44[%c32_377, %c0_378] : memref<112x16xf32, #tpu.memory_space<vmem>>, vector<64x16xf32>
    %566 = arith.addf %562, %564 : vector<64x16xf32>
    %567 = arith.addf %566, %565 : vector<64x16xf32>
    %568 = vector.broadcast %7 : vector<64x1xf32> to vector<64x16xf32>
    %569 = arith.mulf %567, %568 : vector<64x16xf32>
    %cst_379 = arith.constant 0.000000e+00 : f32
    %570 = vector.broadcast %cst_379 : f32 to vector<64x16xf32>
    %571 = arith.maximumf %531, %570 : vector<64x16xf32>
    %572 = arith.truncf %571 : vector<64x16xf32> to vector<64x16xbf16>
    %c0_380 = arith.constant 0 : index
    %c0_381 = arith.constant 0 : index
    %573 = vector.load %arg40[%c0_380, %c0_381] : memref<16x16xbf16, #tpu.memory_space<vmem>>, vector<16x16xbf16>
    %cst_382 = arith.constant dense<0.000000e+00> : vector<64x16xf32>
    %574 = tpu.matmul %572, %573, %cst_382 {dimension_numbers = #tpu.dot_dimension_numbers<[1], [0], [0], [1], [0, 0, 1, 1], [], []>} : vector<64x16xbf16>, vector<16x16xbf16>, vector<64x16xf32> -> vector<64x16xf32>
    %c0_383 = arith.constant 0 : index
    %c0_384 = arith.constant 0 : index
    %575 = vector.load %arg41[%c0_383, %c0_384] : memref<1x16xf32, #tpu.memory_space<vmem>>, vector<1x16xf32>
    %576 = vector.broadcast %575 : vector<1x16xf32> to vector<64x16xf32>
    %577 = arith.mulf %574, %576 : vector<64x16xf32>
    %c0_385 = arith.constant 0 : index
    %c0_386 = arith.constant 0 : index
    %578 = vector.load %arg42[%c0_385, %c0_386] : memref<1x16xf32, #tpu.memory_space<vmem>>, vector<1x16xf32>
    %579 = vector.broadcast %578 : vector<1x16xf32> to vector<64x16xf32>
    %580 = arith.addf %577, %579 : vector<64x16xf32>
    %581 = arith.addf %569, %580 : vector<64x16xf32>
    %c0_387 = arith.constant 0 : index
    %c0_388 = arith.constant 0 : index
    %c0_389 = arith.constant 0 : index
    %c0_390 = arith.constant 0 : index
    %582 = vector.load %arg43[%c0_387, %c0_388, %c0_389, %c0_390] : memref<1x4x64x16xf32, #tpu.memory_space<vmem>>, vector<1x1x64x16xf32>
    %583 = vector.shape_cast %582 : vector<1x1x64x16xf32> to vector<64x16xf32>
    %584 = vector.shape_cast %18 : vector<64x16xf32> to vector<1x1x64x16xf32>
    tpu.vector_store %arg43[%c0_387, %c0_388, %c0_389, %c0_390], %584 {strides = array<i32>} : memref<1x4x64x16xf32, #tpu.memory_space<vmem>>, vector<1x1x64x16xf32>,
    %c0_391 = arith.constant 0 : index
    %c1_392 = arith.constant 1 : index
    %c0_393 = arith.constant 0 : index
    %c0_394 = arith.constant 0 : index
    %585 = vector.load %arg43[%c0_391, %c1_392, %c0_393, %c0_394] : memref<1x4x64x16xf32, #tpu.memory_space<vmem>>, vector<1x1x64x16xf32>
    %586 = vector.shape_cast %585 : vector<1x1x64x16xf32> to vector<64x16xf32>
    %587 = vector.shape_cast %280 : vector<64x16xf32> to vector<1x1x64x16xf32>
    tpu.vector_store %arg43[%c0_391, %c1_392, %c0_393, %c0_394], %587 {strides = array<i32>} : memref<1x4x64x16xf32, #tpu.memory_space<vmem>>, vector<1x1x64x16xf32>,
    %c0_395 = arith.constant 0 : index
    %c2_396 = arith.constant 2 : index
    %c0_397 = arith.constant 0 : index
    %c0_398 = arith.constant 0 : index
    %588 = vector.load %arg43[%c0_395, %c2_396, %c0_397, %c0_398] : memref<1x4x64x16xf32, #tpu.memory_space<vmem>>, vector<1x1x64x16xf32>
    %589 = vector.shape_cast %588 : vector<1x1x64x16xf32> to vector<64x16xf32>
    %590 = vector.shape_cast %492 : vector<64x16xf32> to vector<1x1x64x16xf32>
    tpu.vector_store %arg43[%c0_395, %c2_396, %c0_397, %c0_398], %590 {strides = array<i32>} : memref<1x4x64x16xf32, #tpu.memory_space<vmem>>, vector<1x1x64x16xf32>,
    %c0_399 = arith.constant 0 : index
    %c3_400 = arith.constant 3 : index
    %c0_401 = arith.constant 0 : index
    %c0_402 = arith.constant 0 : index
    %591 = vector.load %arg43[%c0_399, %c3_400, %c0_401, %c0_402] : memref<1x4x64x16xf32, #tpu.memory_space<vmem>>, vector<1x1x64x16xf32>
    %592 = vector.shape_cast %591 : vector<1x1x64x16xf32> to vector<64x16xf32>
    %593 = vector.shape_cast %581 : vector<64x16xf32> to vector<1x1x64x16xf32>
    tpu.vector_store %arg43[%c0_399, %c3_400, %c0_401, %c0_402], %593 {strides = array<i32>} : memref<1x4x64x16xf32, #tpu.memory_space<vmem>>, vector<1x1x64x16xf32>,
    return
  }
  func.func @transform_0(%arg0: i32) -> (i32, i32, i32) {
    %c0_i32 = arith.constant 0 : i32
    %c0_i32_0 = arith.constant 0 : i32
    %c0_i32_1 = arith.constant 0 : i32
    return %arg0, %c0_i32, %c0_i32_0 : i32, i32, i32
  }
  func.func @transform_1(%arg0: i32) -> (i32, i32) {
    %c0_i32 = arith.constant 0 : i32
    %c0_i32_0 = arith.constant 0 : i32
    %c0_i32_1 = arith.constant 0 : i32
    return %c0_i32, %c0_i32_0 : i32, i32
  }
  func.func @transform_2(%arg0: i32) -> (i32, i32) {
    %c0_i32 = arith.constant 0 : i32
    %c0_i32_0 = arith.constant 0 : i32
    %c0_i32_1 = arith.constant 0 : i32
    return %c0_i32, %c0_i32_0 : i32, i32
  }
  func.func @transform_3(%arg0: i32) -> (i32, i32) {
    %c0_i32 = arith.constant 0 : i32
    %c0_i32_0 = arith.constant 0 : i32
    %c0_i32_1 = arith.constant 0 : i32
    return %c0_i32, %c0_i32_0 : i32, i32
  }
  func.func @transform_4(%arg0: i32) -> (i32, i32) {
    %c0_i32 = arith.constant 0 : i32
    %c0_i32_0 = arith.constant 0 : i32
    %c0_i32_1 = arith.constant 0 : i32
    return %c0_i32, %c0_i32_0 : i32, i32
  }
  func.func @transform_5(%arg0: i32) -> (i32, i32) {
    %c0_i32 = arith.constant 0 : i32
    %c0_i32_0 = arith.constant 0 : i32
    %c0_i32_1 = arith.constant 0 : i32
    return %c0_i32, %c0_i32_0 : i32, i32
  }
  func.func @transform_6(%arg0: i32) -> (i32, i32) {
    %c0_i32 = arith.constant 0 : i32
    %c0_i32_0 = arith.constant 0 : i32
    %c0_i32_1 = arith.constant 0 : i32
    return %c0_i32, %c0_i32_0 : i32, i32
  }
  func.func @transform_7(%arg0: i32) -> (i32, i32) {
    %c0_i32 = arith.constant 0 : i32
    %c0_i32_0 = arith.constant 0 : i32
    %c0_i32_1 = arith.constant 0 : i32
    return %c0_i32, %c0_i32_0 : i32, i32
  }
  func.func @transform_8(%arg0: i32) -> (i32, i32) {
    %c0_i32 = arith.constant 0 : i32
    %c0_i32_0 = arith.constant 0 : i32
    %c0_i32_1 = arith.constant 0 : i32
    return %c0_i32, %c0_i32_0 : i32, i32
  }
  func.func @transform_9(%arg0: i32) -> (i32, i32) {
    %c0_i32 = arith.constant 0 : i32
    %c0_i32_0 = arith.constant 0 : i32
    %c0_i32_1 = arith.constant 0 : i32
    return %c0_i32, %c0_i32_0 : i32, i32
  }
  func.func @transform_10(%arg0: i32) -> (i32, i32) {
    %c0_i32 = arith.constant 0 : i32
    %c0_i32_0 = arith.constant 0 : i32
    %c0_i32_1 = arith.constant 0 : i32
    return %c0_i32, %c0_i32_0 : i32, i32
  }
  func.func @transform_11(%arg0: i32) -> (i32, i32) {
    %c0_i32 = arith.constant 0 : i32
    %c0_i32_0 = arith.constant 0 : i32
    %c0_i32_1 = arith.constant 0 : i32
    return %c0_i32, %c0_i32_0 : i32, i32
  }
  func.func @transform_12(%arg0: i32) -> (i32, i32) {
    %c0_i32 = arith.constant 0 : i32
    %c0_i32_0 = arith.constant 0 : i32
    %c0_i32_1 = arith.constant 0 : i32
    return %c0_i32, %c0_i32_0 : i32, i32
  }
  func.func @transform_13(%arg0: i32) -> (i32, i32) {
    %c0_i32 = arith.constant 0 : i32
    %c0_i32_0 = arith.constant 0 : i32
    %c0_i32_1 = arith.constant 0 : i32
    return %c0_i32, %c0_i32_0 : i32, i32
  }
  func.func @transform_14(%arg0: i32) -> (i32, i32) {
    %c0_i32 = arith.constant 0 : i32
    %c0_i32_0 = arith.constant 0 : i32
    %c0_i32_1 = arith.constant 0 : i32
    return %c0_i32, %c0_i32_0 : i32, i32
  }
  func.func @transform_15(%arg0: i32) -> (i32, i32, i32) {
    %c0_i32 = arith.constant 0 : i32
    %c0_i32_0 = arith.constant 0 : i32
    %c0_i32_1 = arith.constant 0 : i32
    %c0_i32_2 = arith.constant 0 : i32
    return %c0_i32, %c0_i32_0, %c0_i32_1 : i32, i32, i32
  }
  func.func @transform_16(%arg0: i32) -> (i32, i32) {
    %c0_i32 = arith.constant 0 : i32
    %c0_i32_0 = arith.constant 0 : i32
    %c0_i32_1 = arith.constant 0 : i32
    return %c0_i32, %c0_i32_0 : i32, i32
  }
  func.func @transform_17(%arg0: i32) -> (i32, i32) {
    %c0_i32 = arith.constant 0 : i32
    %c0_i32_0 = arith.constant 0 : i32
    %c0_i32_1 = arith.constant 0 : i32
    return %c0_i32, %c0_i32_0 : i32, i32
  }
  func.func @transform_18(%arg0: i32) -> (i32, i32, i32) {
    %c0_i32 = arith.constant 0 : i32
    %c0_i32_0 = arith.constant 0 : i32
    %c0_i32_1 = arith.constant 0 : i32
    %c0_i32_2 = arith.constant 0 : i32
    return %c0_i32, %c0_i32_0, %c0_i32_1 : i32, i32, i32
  }
  func.func @transform_19(%arg0: i32) -> (i32, i32) {
    %c0_i32 = arith.constant 0 : i32
    %c0_i32_0 = arith.constant 0 : i32
    %c0_i32_1 = arith.constant 0 : i32
    return %c0_i32, %c0_i32_0 : i32, i32
  }
  func.func @transform_20(%arg0: i32) -> (i32, i32) {
    %c0_i32 = arith.constant 0 : i32
    %c0_i32_0 = arith.constant 0 : i32
    %c0_i32_1 = arith.constant 0 : i32
    return %c0_i32, %c0_i32_0 : i32, i32
  }
  func.func @transform_21(%arg0: i32) -> (i32, i32) {
    %c0_i32 = arith.constant 0 : i32
    %c0_i32_0 = arith.constant 0 : i32
    %c0_i32_1 = arith.constant 0 : i32
    return %c0_i32, %c0_i32_0 : i32, i32
  }
  func.func @transform_22(%arg0: i32) -> (i32, i32) {
    %c0_i32 = arith.constant 0 : i32
    %c0_i32_0 = arith.constant 0 : i32
    %c0_i32_1 = arith.constant 0 : i32
    return %c0_i32, %c0_i32_0 : i32, i32
  }
  func.func @transform_23(%arg0: i32) -> (i32, i32) {
    %c0_i32 = arith.constant 0 : i32
    %c0_i32_0 = arith.constant 0 : i32
    %c0_i32_1 = arith.constant 0 : i32
    return %c0_i32, %c0_i32_0 : i32, i32
  }
  func.func @transform_24(%arg0: i32) -> (i32, i32) {
    %c0_i32 = arith.constant 0 : i32
    %c0_i32_0 = arith.constant 0 : i32
    %c0_i32_1 = arith.constant 0 : i32
    return %c0_i32, %c0_i32_0 : i32, i32
  }
  func.func @transform_25(%arg0: i32) -> (i32, i32) {
    %c0_i32 = arith.constant 0 : i32
    %c0_i32_0 = arith.constant 0 : i32
    %c0_i32_1 = arith.constant 0 : i32
    return %c0_i32, %c0_i32_0 : i32, i32
  }
  func.func @transform_26(%arg0: i32) -> (i32, i32) {
    %c0_i32 = arith.constant 0 : i32
    %c0_i32_0 = arith.constant 0 : i32
    %c0_i32_1 = arith.constant 0 : i32
    return %c0_i32, %c0_i32_0 : i32, i32
  }
  func.func @transform_27(%arg0: i32) -> (i32, i32) {
    %c0_i32 = arith.constant 0 : i32
    %c0_i32_0 = arith.constant 0 : i32
    %c0_i32_1 = arith.constant 0 : i32
    return %c0_i32, %c0_i32_0 : i32, i32
  }
  func.func @transform_28(%arg0: i32) -> (i32, i32) {
    %c0_i32 = arith.constant 0 : i32
    %c0_i32_0 = arith.constant 0 : i32
    %c0_i32_1 = arith.constant 0 : i32
    return %c0_i32, %c0_i32_0 : i32, i32
  }
  func.func @transform_29(%arg0: i32) -> (i32, i32) {
    %c0_i32 = arith.constant 0 : i32
    %c0_i32_0 = arith.constant 0 : i32
    %c0_i32_1 = arith.constant 0 : i32
    return %c0_i32, %c0_i32_0 : i32, i32
  }
  func.func @transform_30(%arg0: i32) -> (i32, i32, i32) {
    %c0_i32 = arith.constant 0 : i32
    %c0_i32_0 = arith.constant 0 : i32
    %c0_i32_1 = arith.constant 0 : i32
    %c0_i32_2 = arith.constant 0 : i32
    return %c0_i32, %c0_i32_0, %c0_i32_1 : i32, i32, i32
  }
  func.func @transform_31(%arg0: i32) -> (i32, i32) {
    %c0_i32 = arith.constant 0 : i32
    %c0_i32_0 = arith.constant 0 : i32
    %c0_i32_1 = arith.constant 0 : i32
    return %c0_i32, %c0_i32_0 : i32, i32
  }
  func.func @transform_32(%arg0: i32) -> (i32, i32) {
    %c0_i32 = arith.constant 0 : i32
    %c0_i32_0 = arith.constant 0 : i32
    %c0_i32_1 = arith.constant 0 : i32
    return %c0_i32, %c0_i32_0 : i32, i32
  }
  func.func @transform_33(%arg0: i32) -> (i32, i32, i32) {
    %c0_i32 = arith.constant 0 : i32
    %c0_i32_0 = arith.constant 0 : i32
    %c0_i32_1 = arith.constant 0 : i32
    %c0_i32_2 = arith.constant 0 : i32
    return %c0_i32, %c0_i32_0, %c0_i32_1 : i32, i32, i32
  }
  func.func @transform_34(%arg0: i32) -> (i32, i32) {
    %c0_i32 = arith.constant 0 : i32
    %c0_i32_0 = arith.constant 0 : i32
    %c0_i32_1 = arith.constant 0 : i32
    return %c0_i32, %c0_i32_0 : i32, i32
  }
  func.func @transform_35(%arg0: i32) -> (i32, i32) {
    %c0_i32 = arith.constant 0 : i32
    %c0_i32_0 = arith.constant 0 : i32
    %c0_i32_1 = arith.constant 0 : i32
    return %c0_i32, %c0_i32_0 : i32, i32
  }
  func.func @transform_36(%arg0: i32) -> (i32, i32) {
    %c0_i32 = arith.constant 0 : i32
    %c0_i32_0 = arith.constant 0 : i32
    %c0_i32_1 = arith.constant 0 : i32
    return %c0_i32, %c0_i32_0 : i32, i32
  }
  func.func @transform_37(%arg0: i32) -> (i32, i32) {
    %c0_i32 = arith.constant 0 : i32
    %c0_i32_0 = arith.constant 0 : i32
    %c0_i32_1 = arith.constant 0 : i32
    return %c0_i32, %c0_i32_0 : i32, i32
  }
  func.func @transform_38(%arg0: i32) -> (i32, i32) {
    %c0_i32 = arith.constant 0 : i32
    %c0_i32_0 = arith.constant 0 : i32
    %c0_i32_1 = arith.constant 0 : i32
    return %c0_i32, %c0_i32_0 : i32, i32
  }
  func.func @transform_39(%arg0: i32) -> (i32, i32) {
    %c0_i32 = arith.constant 0 : i32
    %c0_i32_0 = arith.constant 0 : i32
    %c0_i32_1 = arith.constant 0 : i32
    return %c0_i32, %c0_i32_0 : i32, i32
  }
  func.func @transform_40(%arg0: i32) -> (i32, i32) {
    %c0_i32 = arith.constant 0 : i32
    %c0_i32_0 = arith.constant 0 : i32
    %c0_i32_1 = arith.constant 0 : i32
    return %c0_i32, %c0_i32_0 : i32, i32
  }
  func.func @transform_41(%arg0: i32) -> (i32, i32) {
    %c0_i32 = arith.constant 0 : i32
    %c0_i32_0 = arith.constant 0 : i32
    %c0_i32_1 = arith.constant 0 : i32
    return %c0_i32, %c0_i32_0 : i32, i32
  }
  func.func @transform_42(%arg0: i32) -> (i32, i32, i32, i32) {
    %c0_i32 = arith.constant 0 : i32
    %c0_i32_0 = arith.constant 0 : i32
    %c0_i32_1 = arith.constant 0 : i32
    %c0_i32_2 = arith.constant 0 : i32
    return %arg0, %c0_i32, %c0_i32_0, %c0_i32_1 : i32, i32, i32, i32
  }
}

</mosaic_0001>

<bundles_post_ra>
// kernel: cell_forward.1
= control target key start
LH: loop header
LB: loop body
LE: loop exit
PB: predicated region body
PF: predicated region fallthrough
CT: control target
= control target key end

     0   :  { %s7143_s6 = smov 1   ;;  %s7144_s10 = smov 2   ;;  %s9022_s0 = inlined_call_operand.smem [shape: u32[43], index: -1, kind: input, shape index: {}] }
   0x1   :  { %s7196_s5 = sld [smem:[%s9022_s0]]   ;;  %s7145_s14 = smov 3  }
   0x2   :  { %s7201_s9 = sld [smem:[%s9022_s0 + %s7143_s6]]   ;;  %s7146_s18 = smov 4  }
   0x3   :  { %s7206_s13 = sld [smem:[%s9022_s0 + %s7144_s10]]   ;;  %s7147_s22 = smov 5  }
   0x4   :  { %s7211_s17 = sld [smem:[%s9022_s0 + %s7145_s14]]   ;;  %s7148_s26 = smov 6  }
   0x5   :  { %s7216_s21 = sld [smem:[%s9022_s0 + %s7146_s18]]   ;;  %s7149_s30 = smov 7  }
   0x6   :  { %s7221_s25 = sld [smem:[%s9022_s0 + %s7147_s22]]   ;;  %s7150_s4 = smov 8  }
   0x7   :  { %s7226_s29 = sld [smem:[%s9022_s0 + %s7148_s26]]   ;;  %s7151_s10 = smov 9  }
   0x8   :  { %s7231_s3 = sld [smem:[%s9022_s0 + %s7149_s30]]   ;;  %s7152_s15 = smov 10  }
   0x9   :  { %s7236_s8 = sld [smem:[%s9022_s0 + %s7150_s4]]   ;;  %s7153_s20 = smov 11  }
   0xa   :  { %s7241_s14 = sld [smem:[%s9022_s0 + %s7151_s10]]   ;;  %s7154_s26 = smov 12  }
   0xb   :  { %s7246_s19 = sld [smem:[%s9022_s0 + %s7152_s15]]   ;;  %s7155_s1 = smov 13  }
   0xc   :  { %s7251_s24 = sld [smem:[%s9022_s0 + %s7153_s20]]   ;;  %s7156_s7 = smov 14  }
   0xd   :  { %s7256_s30 = sld [smem:[%s9022_s0 + %s7154_s26]]   ;;  %s7157_s15 = smov 15  }
   0xe   :  { %s7261_s6 = sld [smem:[%s9022_s0 + %s7155_s1]]   ;;  %s7158_s22 = smov 16  }
   0xf   :  { %s7266_s12 = sld [smem:[%s9022_s0 + %s7156_s7]]   ;;  %s7159_s28 = smov 17  }
  0x10   :  { %s7271_s20 = sld [smem:[%s9022_s0 + %s7157_s15]]   ;;  %s7160_s7 = smov 18  }
  0x11   :  { %9188 = sst [smem:[#allocation7_spill]] %s7246_s19  ;;  %s7161_s15 = smov 19  }
  0x12   :  { %9189 = sst [smem:[#allocation8_spill]] %s7251_s24 }
  0x13   :  { %s7276_s27 = sld [smem:[%s9022_s0 + %s7158_s22]]   ;;  %s7162_s22 = smov 20  }
  0x14   :  { %s7281_s4 = sld [smem:[%s9022_s0 + %s7159_s28]]   ;;  %s7163_s28 = smov 21  }
  0x15   :  { %s7286_s24 = sld [smem:[%s9022_s0 + %s7160_s7]]   ;;  %s7164_s7 = smov 22  }
  0x16   :  { %s7291_s19 = sld [smem:[%s9022_s0 + %s7161_s15]]   ;;  %s7165_s15 = smov 23  }
  0x19   :  { %9190 = sst [smem:[#allocation9_spill]] %s7276_s27 }
  0x1a   :  { %9191 = sst [smem:[#allocation10_spill]] %s7281_s4 }
  0x1b   :  { %9192 = sst [smem:[#allocation11_spill]] %s7286_s24 }
  0x1c   :  { %9193 = sst [smem:[#allocation12_spill]] %s7291_s19 }
  0x1d   :  { %s7296_s27 = sld [smem:[%s9022_s0 + %s7162_s22]]   ;;  %s7166_s22 = smov 24  }
  0x1e   :  { %s7301_s4 = sld [smem:[%s9022_s0 + %s7163_s28]]   ;;  %s7167_s28 = smov 25  }
  0x1f   :  { %s7306_s24 = sld [smem:[%s9022_s0 + %s7164_s7]]   ;;  %s7168_s7 = smov 26  }
  0x20   :  { %s7311_s19 = sld [smem:[%s9022_s0 + %s7165_s15]]   ;;  %s7169_s15 = smov 27  }
  0x23   :  { %9194 = sst [smem:[#allocation13_spill]] %s7296_s27 }
  0x24   :  { %9195 = sst [smem:[#allocation14_spill]] %s7301_s4 }
  0x25   :  { %9196 = sst [smem:[#allocation15_spill]] %s7306_s24 }
  0x26   :  { %9197 = sst [smem:[#allocation16_spill]] %s7311_s19 }
  0x27   :  { %s7316_s27 = sld [smem:[%s9022_s0 + %s7166_s22]]   ;;  %s7170_s22 = smov 28  }
  0x28   :  { %s7321_s4 = sld [smem:[%s9022_s0 + %s7167_s28]]   ;;  %s7171_s28 = smov 29  }
  0x29   :  { %s7326_s24 = sld [smem:[%s9022_s0 + %s7168_s7]]   ;;  %s7172_s7 = smov 30  }
  0x2a   :  { %s7331_s19 = sld [smem:[%s9022_s0 + %s7169_s15]]   ;;  %s7173_s15 = smov 31  }
  0x2d   :  { %9198 = sst [smem:[#allocation17_spill]] %s7316_s27 }
  0x2e   :  { %9199 = sst [smem:[#allocation18_spill]] %s7321_s4 }
  0x2f   :  { %9200 = sst [smem:[#allocation19_spill]] %s7326_s24 }
  0x30   :  { %9201 = sst [smem:[#allocation20_spill]] %s7331_s19 }
  0x31   :  { %s7336_s27 = sld [smem:[%s9022_s0 + %s7170_s22]]   ;;  %s7174_s22 = smov 32  }
  0x32   :  { %s7341_s4 = sld [smem:[%s9022_s0 + %s7171_s28]]   ;;  %s7175_s28 = smov 33  }
  0x33   :  { %s7346_s24 = sld [smem:[%s9022_s0 + %s7172_s7]]   ;;  %s7176_s7 = smov 34  }
  0x34   :  { %s7351_s19 = sld [smem:[%s9022_s0 + %s7173_s15]]   ;;  %s7177_s15 = smov 35  }
  0x37   :  { %9202 = sst [smem:[#allocation21_spill]] %s7336_s27 }
  0x38   :  { %9203 = sst [smem:[#allocation22_spill]] %s7341_s4 }
  0x39   :  { %9204 = sst [smem:[#allocation23_spill]] %s7346_s24 }
  0x3a   :  { %9205 = sst [smem:[#allocation24_spill]] %s7351_s19 }
  0x3b   :  { %s7356_s27 = sld [smem:[%s9022_s0 + %s7174_s22]]   ;;  %s7178_s22 = smov 36  }
  0x3c   :  { %s7361_s4 = sld [smem:[%s9022_s0 + %s7175_s28]]   ;;  %s7179_s28 = smov 37  }
  0x3d   :  { %s7366_s24 = sld [smem:[%s9022_s0 + %s7176_s7]]   ;;  %s7180_s7 = smov 38  }
  0x3e   :  { %s7371_s19 = sld [smem:[%s9022_s0 + %s7177_s15]]   ;;  %s7181_s15 = smov 39  }
  0x41   :  { %9206 = sst [smem:[#allocation25_spill]] %s7356_s27 }
  0x42   :  { %9207 = sst [smem:[#allocation26_spill]] %s7361_s4 }
  0x43   :  { %9208 = sst [smem:[#allocation27_spill]] %s7366_s24 }
  0x44   :  { %9209 = sst [smem:[#allocation28_spill]] %s7371_s19 }
  0x45   :  { %s7376_s27 = sld [smem:[%s9022_s0 + %s7178_s22]]   ;;  %s7182_s22 = smov 40  }
  0x46   :  { %s7381_s4 = sld [smem:[%s9022_s0 + %s7179_s28]]   ;;  %s7183_s28 = smov 41  }
  0x47   :  { %s7386_s24 = sld [smem:[%s9022_s0 + %s7180_s7]]   ;;  %s7184_s7 = smov 42  }
  0x48   :  { %s7391_s19 = sld [smem:[%s9022_s0 + %s7181_s15]]  }
  0x4b   :  { %9210 = sst [smem:[#allocation29_spill]] %s7376_s27 }
  0x4c   :  { %9211 = sst [smem:[#allocation30_spill]] %s7381_s4 }
  0x4d   :  { %9212 = sst [smem:[#allocation31_spill]] %s7386_s24 }
  0x4e   :  { %s7396_s27 = sld [smem:[%s9022_s0 + %s7182_s22]]  }
  0x4f   :  { %s7401_s4 = sld [smem:[%s9022_s0 + %s7183_s28]]  }
  0x50   :  { %s7406_s24 = sld [smem:[%s9022_s0 + %s7184_s7]]  }
  0x51   :  { %90 = vsyncpa [#allocation5], 0  ;;  %s7408_s15 = smov 0  }
  0x52 LB: > { %s7414_s16 = sadd.s32 4294967295, %s7141_s15   ;;  %p6009_p0 = scmp.ge.s32.totalorder %s7141_s15, 1  ;;  %s7141_s15 = sphi %s7408_s15, %s96_s15  }
  0x53   : > { %p1014_p1 = scmp.lt.s32.totalorder %s7141_s15, 3  ;;  %p9026_p3 = scmp.eq.s32.totalorder %s7414_s16, 0 }
  0x54   : > { %s7185_s18 = smov [#allocation4]  }
  0x55   : > { %p7418_p2 = pnand %p6009_p0, %p1014_p1  ;;  %s1147_s22 = sshll.u32 %s7185_s18, 4  ;;  %s1148_s22 = int_to_ptr.vmem [resolvable:$true] %s1147_s22 }
  0x56   : > { %s7103_s26 = scalar_lea.hbm %s7401_s4, 16 }
  0x57   : > { %s9213_s0 = scalar_select %p7418_p2, 1, 0 }
  0x58   : > { %p7035_p4 = pneg %p7418_p2  ;;  %p7104_p6 = scmp.ne.s32.totalorder %s7401_s4, %s7103_s26 }
  0x59   : > { %p7110_p10 = scmp.lt.u32.totalorder %s7103_s26, %s7401_s4 }
  0x5a   : > { %p7427_p5 = pnand %p9026_p3, %p7035_p4 }
  0x5c   : > { %p7105_p7 = pneg %p7427_p5 }
  0x5e   : > { %p7106_p8 = pnand %p7105_p7, %p7104_p6 }
  0x60   : > { %p7107_p9 = pneg %p7106_p8 }
  0x62   : > { %p7112_p11 = pnand %p7110_p10, %p7107_p9 }
  0x64   : > { %7115 = shalt.err (!%p7112_p11)
}
  0x65   : > { %s7116_s28 = scalar_lea.vmem %s1148_s22, 16  ;;  %s7123_s1 = scalar_lea.vmem %s1148_s22, 32 }
  0x66   : > { %p7117_p12 = scmp.ne.s32.totalorder %s1148_s22, %s7116_s28  ;;  %p7124_p1 = scmp.lt.s32.totalorder %s1148_s22, %s1148_s22 }
  0x67   : > { %p7125_p4 = scmp.lt.s32.totalorder %s7123_s1, %s7116_s28 }
  0x68   : > { %p7119_p13 = pnand %p7117_p12, %p7105_p7 }
  0x69   : > { %p7126_p3 = por %p7125_p4, %p7124_p1 }
  0x6a   : > { %p7120_p0 = pneg %p7119_p13 }
  0x6c   : > { %p7127_p2 = pnand %p7126_p3, %p7120_p0 }
  0x6e   : > { %7130 = shalt.err (!%p7127_p2)
}
  0x6f   : > { %7038 = dma.hbm_to_vmem [thread:$0]  (!%p7427_p5), %s7401_s4, 16, %s1148_s22, [#allocation5]  }
  0x70   : > { %p9215_p6 = scmp.ne.s32.totalorder %s9213_s0, 0 }
  0x72   : > { %1168 = sbr.rel (%p9215_p6) target bundleno = 2385 (0x951), region = 188 }
  0x79   : > { %p9216_p8 = scmp.eq.s32.totalorder %s7414_s16, 0 }
  0x7b   : > { %7136 = dma.done.wait (%p9216_p8), [#allocation5], 16   ;;  %p9217_p9 = pmov %p9216_p8 }
  0x7c   : > { %vm9029_vm0 = vcmask 130048   ;;  %p1270_p7 = scmp.lt.s32.totalorder %s7414_s16, 1  ;;  %v7186_v0 = vmov 0.0   ;;  %vm1361_vm1 = vcmask 1043456   ;;  %v1347_v1 = vld [vmem:[%s7211_s17] sm:$0xf] }
  0x7d   : > { %7138 = vsyncadd (%p9217_p9), [#allocation5], 4294967280  ;;  %1284 = vst.msk [vmem:[#allocation2 + $0x10] sm:$0xff] %vm9029_vm0, %v7186_v0  ;;  %vm1348_vm2 = vcmask 64512   ;;  %6998 = vmatprep.subr.msk.bf16.mxu0 %vm1361_vm1, %v1347_v1  ;;  %6999 = vmatprep.subr.msk.bf16.mxu1 %vm1361_vm1, %v1347_v1  ;;  %v1363_v4 = vsel %vm1361_vm1, %v1347_v1, 0  ;;  %v7096_v23 = vld [vmem:[%s7256_s30] sm:$0xff]  }
  0x7e   : > { %1285 = vst.msk [vmem:[#allocation2 + $0x18] sm:$0xff] %vm9029_vm0, %v7186_v0  ;;  %1286 = vst.msk [vmem:[#allocation2 + $0x20] sm:$0xff] %vm9029_vm0, %v7186_v0  ;;  %s9834_s16 = smov (!%p1270_p7, %s7414_s16), 1  ;;  %6435 = vmatpush3.bf16.msra.mxu0 %v1363_v4  ;;  %6805 = vmatpush3.bf16.msra.mxu1 %v1363_v4  ;;  %v1460_v20 = vld [vmem:[%s7226_s29] sm:$0xf]  ;;  %v1321_v28 = vld [vmem:[%s7201_s9 + $0x10] sm:$0xff] }
  0x7f   : > { %1287 = vst.msk [vmem:[#allocation2 + $0x28] sm:$0xff] %vm9029_vm0, %v7186_v0  ;;  %1288 = vst.msk [vmem:[#allocation2 + $0x30] sm:$0xff] %vm9029_vm0, %v7186_v0  ;;  %s6247_s2 = sshll.u32 %s9834_s16, 6  ;;  %7000 = vmatprep.subr.msk.bf16.mxu1 %vm1361_vm1, %v1460_v20  ;;  %v1462_v22 = vsel %vm1361_vm1, %v1460_v20, 0  ;;  %v7097_v26 = vld [vmem:[%s7241_s14] sm:$0xff]   ;;  %v7187_v29 = vmov 0  }
  0x80   : > { %1289 = vst.msk [vmem:[#allocation2 + $0x38] sm:$0xff] %vm9029_vm0, %v7186_v0  ;;  %1290 = vst.msk [vmem:[#allocation2 + $0x40] sm:$0xff] %vm9029_vm0, %v7186_v0  ;;  %s1274_s7 = scalar_lea.vmem %s7196_s5, %s6247_s2  ;;  %6454 = vmatprep.subr.bf16.mxu0 %v7097_v26  ;;  %v1319_v27 = vld [vmem:[%s7201_s9] sm:$0xff]  ;;  %7094 = vset.pattern.permute.xlu0 %v7187_v29  ;;  %v1320_v30 = vld [vmem:[%s7201_s9 + $0x8] sm:$0xff]  ;;  %vm9028_vm3 = vcmask 31744   ;;  %s6248_s10 = sshll.u32 %s9834_s16, 8 }
  0x81   : > { %1291 = vst.msk [vmem:[#allocation2 + $0x48] sm:$0xff] %vm9029_vm0, %v7186_v0  ;;  %1292 = vst.msk [vmem:[#allocation2 + $0x50] sm:$0xff] %vm9029_vm0, %v7186_v0  ;;  %v1311_v2 = vld [vmem:[%s1274_s7] sm:$0xff]  ;;  %v1312_v3 = vld [vmem:[%s1274_s7 + $0x8] sm:$0xff]  ;;  %7095 = vset.pattern.permute.xlu1 %v7187_v29  ;;  %1704 = vperm.xlu0 %7094, %v1319_v27   ;;  %s7536_s11 = scalar_lea.vmem %s7406_s24, %s6248_s10  ;;  %s9284_s16 = sld [smem:[#allocation7_spill]] }
  0x82   : > { %1293 = vst.msk [vmem:[#allocation2 + $0x58] sm:$0xff] %vm9029_vm0, %v7186_v0  ;;  %v1335_v5 = vmax.f32 %v1311_v2, 0.0  ;;  %v1336_v6 = vmax.f32 %v1312_v3, 0.0  ;;  %v1315_v7 = vld [vmem:[%s1274_s7 + $0x20] sm:$0xff]  ;;  %v1316_v8 = vld [vmem:[%s1274_s7 + $0x28] sm:$0xff]  ;;  %v1313_v9 = vld [vmem:[%s1274_s7 + $0x10] sm:$0xff]  ;;  %1714 = vperm.xlu1 %7095, %v1321_v28  }
  0x83   : > { %v1339_v10 = vmax.f32 %v1315_v7, 0.0  ;;  %v1340_v11 = vmax.f32 %v1316_v8, 0.0  ;;  %v1314_v12 = vld [vmem:[%s1274_s7 + $0x18] sm:$0xff]  ;;  %v1337_v13 = vmax.f32 %v1313_v9, 0.0  ;;  %v1317_v14 = vld [vmem:[%s1274_s7 + $0x30] sm:$0xff]  ;;  %v1323_v32 = vld [vmem:[%s7201_s9 + $0x20] sm:$0xff] }
  0x84   : > { %v1318_v15 = vld [vmem:[%s1274_s7 + $0x38] sm:$0xff]  ;;  %v1343_v16 = vpack.c.bf16 %v1336_v6, %v1335_v5  ;;  %v1338_v17 = vmax.f32 %v1314_v12, 0.0  ;;  %v1341_v18 = vmax.f32 %v1317_v14, 0.0  ;;  %v1324_v33 = vld [vmem:[%s7201_s9 + $0x28] sm:$0xff]  ;;  %v1325_v34 = vld [vmem:[%s7201_s9 + $0x30] sm:$0xff]  ;;  %1302 = vst.msk [vmem:[#allocation3 + $0x28] sm:$0xff] %vm9028_vm3, %v7186_v0 }
  0x85   : > { %v1342_v19 = vmax.f32 %v1318_v15, 0.0  ;;  %v1345_v21 = vpack.c.bf16 %v1340_v11, %v1339_v10  ;;  %v1322_v31 = vld [vmem:[%s7201_s9 + $0x18] sm:$0xff]  ;;  %1709 = vperm.xlu0 %7094, %v1320_v30   ;;  %v1328_v36 = vld [vmem:[%s7206_s13 + $0x8] sm:$0xff]  ;;  %v1327_v37 = vld [vmem:[%s7206_s13] sm:$0xff]  ;;  %1297 = vst.msk [vmem:[#allocation3] sm:$0xff] %vm9028_vm3, %v7186_v0  ;;  %s9286_s0 = sld [smem:[#allocation8_spill]] }
  0x86   : > { %6436 = vmatprep.mubr.msk.bf16.mxu0 %vm1348_vm2, %v1343_v16  ;;  %v1344_v24 = vpack.c.bf16 %v1338_v17, %v1337_v13  ;;  %1719 = vperm.xlu1 %7095, %v1322_v31   ;;  %v1326_v35 = vld [vmem:[%s7201_s9 + $0x38] sm:$0xff]  ;;  %v1329_v39 = vld [vmem:[%s7206_s13 + $0x10] sm:$0xff]  ;;  %v1332_v40 = vld [vmem:[%s7206_s13 + $0x28] sm:$0xff]  ;;  %1298 = vst.msk [vmem:[#allocation3 + $0x8] sm:$0xff] %vm9028_vm3, %v7186_v0  ;;  %s9525_s18 = sld [smem:[#allocation11_spill]]  ;;  %s9531_s22 = sld [smem:[#allocation9_spill]] }
  0x87   : > { %v1346_v25 = vpack.c.bf16 %v1342_v19, %v1341_v18  ;;  %6440 = vmatprep.mubr.msk.bf16.mxu1 %vm1348_vm2, %v1345_v21  ;;  %v1330_v38 = vld [vmem:[%s7206_s13 + $0x18] sm:$0xff]  ;;  %v1331_v41 = vld [vmem:[%s7206_s13 + $0x20] sm:$0xff]  ;;  %v1333_v43 = vld [vmem:[%s7206_s13 + $0x30] sm:$0xff]  ;;  %1299 = vst.msk [vmem:[#allocation3 + $0x10] sm:$0xff] %vm9028_vm3, %v7186_v0  ;;  %s9535_s23 = sld [smem:[#allocation10_spill]]  ;;  %s9541_s26 = sld [smem:[#allocation14_spill]] }
  0x88   : > { %6437 = vmatmul.mubr.msk.bf16.vlgmr.msra.gmra.mrb[0].mxu0 %vm1348_vm2, %v1344_v24  ;;  %v1334_v42 = vld [vmem:[%s7206_s13 + $0x38] sm:$0xff]  ;;  %1300 = vst.msk [vmem:[#allocation3 + $0x18] sm:$0xff] %vm9028_vm3, %v7186_v0  ;;  %1301 = vst.msk [vmem:[#allocation3 + $0x20] sm:$0xff] %vm9028_vm3, %v7186_v0  ;;  %v6022_v44 = vld [vmem:[%s7216_s21] ss:$0 sm:$0xff]  ;;  %s9568_s28 = sld [smem:[#allocation17_spill]] }
  0x89   : > { %6441 = vmatmul.mubr.msk.bf16.vlgmr.msra.gmra.mrb[0].mxu1 %vm1348_vm2, %v1346_v25  ;;  %6455 = vmatpush3.bf16.msra.mxu0 %v7097_v26  ;;  %1303 = vst.msk [vmem:[#allocation3 + $0x30] sm:$0xff] %vm9028_vm3, %v7186_v0  ;;  %1304 = vst.msk [vmem:[#allocation3 + $0x38] sm:$0xff] %vm9028_vm3, %v7186_v0  ;;  %v6023_v46 = vld [vmem:[%s7221_s25] ss:$0 sm:$0xff]  ;;  %s9580_s1 = sld [smem:[#allocation20_spill]]  ;;  %s9585_s7 = sld [smem:[#allocation13_spill]] }
  0x8a   : > { %6445 = vmatpush3.bf16.msra.mxu1 %v1462_v22  ;;  %6446 = vmatprep.mubr.msk.bf16.mxu1 %vm1348_vm2, %v1343_v16  ;;  %1305 = vst.msk [vmem:[#allocation3 + $0x40] sm:$0xff] %vm9028_vm3, %v7186_v0  ;;  %1306 = vst.msk [vmem:[#allocation3 + $0x48] sm:$0xff] %vm9028_vm3, %v7186_v0  ;;  %v6028_v8 = vld [vmem:[%s7231_s3] ss:$0 sm:$0xff]  ;;  %s9581_s2 = sld [smem:[#allocation12_spill]]  ;;  %s9599_s10 = sld [smem:[#allocation23_spill]] }
  0x8b   : > { %6464 = vmatprep.subr.bf16.mxu1 %v7096_v23  ;;  %1724 = vperm.xlu0 %7094, %v1323_v32   ;;  %1307 = vst.msk [vmem:[#allocation3 + $0x50] sm:$0xff] %vm9028_vm3, %v7186_v0  ;;  %1308 = vst.msk [vmem:[#allocation3 + $0x58] sm:$0xff] %vm9028_vm3, %v7186_v0  ;;  %v6029_v16 = vld [vmem:[%s7236_s8] ss:$0 sm:$0xff] }
  0x8c   : > { %1729 = vperm.xlu1 %7095, %v1324_v33   ;;  %1309 = vst.msk [vmem:[#allocation3 + $0x60] sm:$0xff] %vm9028_vm3, %v7186_v0  ;;  %1310 = vst.msk [vmem:[#allocation3 + $0x68] sm:$0xff] %vm9028_vm3, %v7186_v0 }
  0x8f   : > { %1734 = vperm.xlu0 %7094, %v1325_v34  }
  0x90   : > { %1739 = vperm.xlu1 %7095, %v1326_v35  }
  0x91   : > { %6447 = vmatmul.mubr.msk.bf16.vlgmr.msra.gmra.mrb[4].mxu1 %vm1348_vm2, %v1344_v24 }
  0x92   : > { %6450 = vmatprep.mubr.msk.bf16.mxu1 %vm1348_vm2, %v1345_v21  ;;  %6465 = vmatpush3.bf16.msra.mxu1 %v7096_v23 }
  0x93   : > { %1882 = vperm.xlu0 %7094, %v1327_v37  }
  0x94   : > { %1887 = vperm.xlu1 %7095, %v1328_v36  }
  0x97   : > { %1892 = vperm.xlu0 %7094, %v1329_v39  }
  0x98   : > { %1897 = vperm.xlu1 %7095, %v1330_v38  }
  0x99   : > { %6451 = vmatmul.mubr.msk.bf16.gmra.mrb[8].mxu1 %vm1348_vm2, %v1346_v25 }
  0x9b   : > { %1902 = vperm.xlu0 %7094, %v1331_v41  }
  0x9c   : > { %1907 = vperm.xlu1 %7095, %v1332_v40  }
  0x9f   : > { %1912 = vperm.xlu0 %7094, %v1333_v43  }
  0xa0   : > { %1917 = vperm.xlu1 %7095, %v1334_v42  }
 0x15b   : > { %v6438_v45 = vpop.f32.mrb[0].mxu0 }
 0x15c   : > { %v6442_v47 = vpop.f32.mrb[0].mxu1  ;;  %v1439_v48 = vmul.f32 %v6438_v45, %v6022_v44  ;;  %v1399_v49 = vpop.f32.mrb[1].mxu0 }
 0x15d   : > { %v1443_v50 = vmul.f32 %v6442_v47, %v6022_v44  ;;  %v1415_v51 = vpop.f32.mrb[1].mxu1  ;;  %v1437_v52 = vmul.f32 %v6022_v44, %v1399_v49  ;;  %v6439_v53 = vpop.f32.mrb[2].mxu0 }
 0x15e   : > { %v1441_v54 = vmul.f32 %v6022_v44, %v1415_v51  ;;  %v6443_v55 = vpop.f32.mrb[2].mxu1  ;;  %v1454_v56 = vadd.f32 %v6023_v46, %v1439_v48  ;;  %v1440_v57 = vmul.f32 %v6439_v53, %v6022_v44  ;;  %v1402_v58 = vpop.f32.mrb[3].mxu0 }
 0x15f   : > { %v1458_v59 = vadd.f32 %v6023_v46, %v1443_v50  ;;  %v1444_v60 = vmul.f32 %v6443_v55, %v6022_v44  ;;  %v1418_v61 = vpop.f32.mrb[3].mxu1  ;;  %v1452_v62 = vadd.f32 %v6023_v46, %v1437_v52  ;;  %v1438_v63 = vmul.f32 %v6022_v44, %v1402_v58 }
 0x160   : > { %v1456_v0 = vadd.f32 %v6023_v46, %v1441_v54  ;;  %v1442_v1 = vmul.f32 %v6022_v44, %v1418_v61  ;;  %5865 = vst.msk [vmem:[%s7536_s11 + $0x10] sm:$0xff] %vm9029_vm0, %v1454_v56  ;;  %v1455_v2 = vadd.f32 %v6023_v46, %v1440_v57  ;;  %v1938_v9 = vmax.f32 %v1454_v56, 0.0  ;;  %v7616_v56 = vpop.permute.xlu0 %1704 }
 0x161   : > { %v1942_v3 = vmax.f32 %v1458_v59, 0.0  ;;  %5869 = vst.msk [vmem:[%s7536_s11 + $0x30] sm:$0xff] %vm9029_vm0, %v1458_v59  ;;  %v1459_v4 = vadd.f32 %v6023_v46, %v1444_v60  ;;  %5863 = vst.msk [vmem:[%s7536_s11] sm:$0xff] %vm9029_vm0, %v1452_v62  ;;  %v1453_v5 = vadd.f32 %v6023_v46, %v1438_v63  ;;  %v1936_v12 = vmax.f32 %v1452_v62, 0.0  ;;  %v7620_v59 = vpop.permute.xlu1 %1714 }
 0x162   : > { %v1940_v6 = vmax.f32 %v1456_v0, 0.0  ;;  %5867 = vst.msk [vmem:[%s7536_s11 + $0x20] sm:$0xff] %vm9029_vm0, %v1456_v0  ;;  %v1457_v7 = vadd.f32 %v6023_v46, %v1442_v1  ;;  %v1939_v10 = vmax.f32 %v1455_v2, 0.0  ;;  %5866 = vst.msk [vmem:[%s7536_s11 + $0x18] sm:$0xff] %vm9029_vm0, %v1455_v2  ;;  %v1742_v57 = vadd.f32 -1.0, %v7616_v56 }
 0x163   : > { %v1943_v11 = vmax.f32 %v1459_v4, 0.0  ;;  %5870 = vst.msk [vmem:[%s7536_s11 + $0x38] sm:$0xff] %vm9029_vm0, %v1459_v4  ;;  %v1937_v13 = vmax.f32 %v1453_v5, 0.0  ;;  %5864 = vst.msk [vmem:[%s7536_s11 + $0x8] sm:$0xff] %vm9029_vm0, %v1453_v5  ;;  %v1790_v58 = vadd.f32 1.0, %v7616_v56  ;;  %v1744_v61 = vadd.f32 -1.0, %v7620_v59 }
 0x164   : > { %v1941_v14 = vmax.f32 %v1457_v7, 0.0  ;;  %5868 = vst.msk [vmem:[%s7536_s11 + $0x28] sm:$0xff] %vm9029_vm0, %v1457_v7  ;;  %v6448_v15 = vpop.f32.mrb[4].mxu1  ;;  %v7556_v17 = vpack.c.bf16 %v1939_v10, %v1938_v9  ;;  %9230 = vst [vmem:[#allocation44_spill] sm:$0xff] %v7616_v56  ;;  %v1792_v62 = vadd.f32 1.0, %v7620_v59  ;;  %vm1750_vm4 = vcmp.ge.f32.partialorder %v1742_v57, 0.0 }
 0x165   : > { %v7558_v18 = vpack.c.bf16 %v1943_v11, %v1942_v3  ;;  %v1538_v19 = vmul.f32 %v6448_v15, %v6028_v8  ;;  %v1498_v20 = vpop.f32.mrb[5].mxu1  ;;  %v7560_v21 = vpack.c.bf16 %v1937_v13, %v1936_v12  ;;  %9231 = vst [vmem:[#allocation45_spill] sm:$0xff] %v7620_v59  ;;  %vm1758_vm5 = vcmp.le.f32.partialorder %v1742_v57, 7.0  ;;  %v7652_v13 = vpop.permute.xlu0 %1709 }
 0x166   : > { %9218 = vst [vmem:[#allocation32_spill] sm:$0xff] %v7556_v17  ;;  %v7562_v22 = vpack.c.bf16 %v1941_v14, %v1940_v6  ;;  %v1536_v23 = vmul.f32 %v6028_v8, %v1498_v20  ;;  %v6449_v24 = vpop.f32.mrb[6].mxu1  ;;  %vm1798_vm6 = vcmp.ge.f32.partialorder %v1790_v58, 0.0  ;;  %vm1806_vm7 = vcmp.le.f32.partialorder %v1790_v58, 7.0  ;;  %vm7624_vm8 = vmand %vm1750_vm4, %vm1758_vm5 }
 0x167   : > { %9219 = vst [vmem:[#allocation33_spill] sm:$0xff] %v7558_v18  ;;  %9220 = vst [vmem:[#allocation34_spill] sm:$0xff] %v7560_v21  ;;  %v7564_v25 = vadd.f32 %v6029_v16, %v1538_v19  ;;  %v1539_v26 = vmul.f32 %v6449_v24, %v6028_v8  ;;  %v1501_v27 = vpop.f32.mrb[7].mxu1  ;;  %6466 = vmatprep.mubr.msk.bf16.mxu1 %vm9029_vm0, %v7560_v21  ;;  %v9232_v0 = vmov 0  ;;  %vm1752_vm9 = vcmp.ge.f32.partialorder %v1744_v61, 0.0 }
 0x168   : > { %9221 = vst [vmem:[#allocation35_spill] sm:$0xff] %v7562_v22  ;;  %v7566_v28 = vadd.f32 %v6029_v16, %v1536_v23  ;;  %v1537_v29 = vmul.f32 %v6028_v8, %v1501_v27  ;;  %6467 = vmatmul.mubr.msk.bf16.vlgmr.msra.gmra.mrb[12].mxu1 %vm9029_vm0, %v7556_v17  ;;  %v9233_v0 = vsel %vm7624_vm8, 4294967295, %v9232_v0  ;;  %vm1760_vm10 = vcmp.le.f32.partialorder %v1744_v61, 7.0  ;;  %vm7630_vm13 = vmand %vm1798_vm6, %vm1806_vm7 }
 0x169   : > { %9222 = vst [vmem:[#allocation36_spill] sm:$0xff] %v7564_v25  ;;  %1688 = vst.msk [vmem:[#allocation2 + $0x28] sm:$0xff] %vm9029_vm0, %v7564_v25  ;;  %v7572_v30 = vadd.f32 %v6029_v16, %v1539_v26  ;;  %v1561_v31 = vmax.f32 %v7564_v25, 0.0  ;;  %6470 = vmatprep.mubr.msk.bf16.mxu1 %vm9029_vm0, %v7562_v22  ;;  %vm1800_vm11 = vcmp.ge.f32.partialorder %v1792_v62, 0.0  ;;  %vm1808_vm12 = vcmp.le.f32.partialorder %v1792_v62, 7.0  ;;  %v7671_v27 = vpop.permute.xlu0 %1724 }
 0x16a   : > { %9223 = vst [vmem:[#allocation37_spill] sm:$0xff] %v7566_v28  ;;  %1686 = vst.msk [vmem:[#allocation2 + $0x18] sm:$0xff] %vm9029_vm0, %v7566_v28  ;;  %v7579_v32 = vadd.f32 %v6029_v16, %v1537_v29  ;;  %v1559_v33 = vmax.f32 %v7566_v28, 0.0  ;;  %v9234_v3 = vmov 0  ;;  %v9236_v7 = vmov 0 }
 0x16b   : > { %9224 = vst [vmem:[#allocation38_spill] sm:$0xff] %v7572_v30  ;;  %1689 = vst.msk [vmem:[#allocation2 + $0x30] sm:$0xff] %vm9029_vm0, %v7572_v30  ;;  %v1562_v34 = vmax.f32 %v7572_v30, 0.0  ;;  %v9235_v3 = vsel %vm7630_vm13, 4294967295, %v9234_v3  ;;  %v9238_v9 = vmov 0  ;;  %v1743_v20 = vadd.f32 -1.0, %v7652_v13 }
 0x16c   : > { %9225 = vst [vmem:[#allocation39_spill] sm:$0xff] %v7579_v32  ;;  %1687 = vst.msk [vmem:[#allocation2 + $0x20] sm:$0xff] %vm9029_vm0, %v7579_v32  ;;  %v6452_v35 = vpop.f32.mrb[8].mxu1  ;;  %v1560_v36 = vmax.f32 %v7579_v32, 0.0  ;;  %v1791_v24 = vadd.f32 1.0, %v7652_v13  ;;  %v9257_v58 = vmov 0 }
 0x16d   : > { %v1542_v37 = vmul.f32 %v6452_v35, %v6028_v8  ;;  %v1514_v38 = vpop.f32.mrb[9].mxu1  ;;  %v1568_v39 = vpack.c.bf16 %v1562_v34, %v1561_v31  ;;  %vm7637_vm14 = vmand %vm1752_vm9, %vm1760_vm10  ;;  %9240 = vst [vmem:[#allocation46_spill] sm:$0xff] %v7652_v13  ;;  %vm1751_vm1 = vcmp.ge.f32.partialorder %v1743_v20, 0.0  ;;  %vm1759_vm2 = vcmp.le.f32.partialorder %v1743_v20, 7.0 }
 0x16e   : > { %v1540_v40 = vmul.f32 %v6028_v8, %v1514_v38  ;;  %v6453_v41 = vpop.f32.mrb[10].mxu1  ;;  %v1567_v42 = vpack.c.bf16 %v1560_v36, %v1559_v33  ;;  %v9237_v7 = vsel %vm7637_vm14, 4294967295, %v9236_v7  ;;  %vm7643_vm15 = vmand %vm1800_vm11, %vm1808_vm12  ;;  %9242 = vst [vmem:[#allocation48_spill] sm:$0xff] %v7671_v27  ;;  %vm1799_vm4 = vcmp.ge.f32.partialorder %v1791_v24, 0.0 }
 0x16f   : > { %v7590_v43 = vadd.f32 %v6029_v16, %v1542_v37  ;;  %v1543_v44 = vmul.f32 %v6453_v41, %v6028_v8  ;;  %v1517_v45 = vpop.f32.mrb[11].mxu1  ;;  %v9239_v9 = vsel %vm7643_vm15, 4294967295, %v9238_v9  ;;  %vm1807_vm5 = vcmp.le.f32.partialorder %v1791_v24, 7.0  ;;  %vm7678_vm9 = vmand %vm1751_vm1, %vm1759_vm2 }
 0x170   : > { %v7592_v46 = vadd.f32 %v6029_v16, %v1540_v40  ;;  %v1541_v47 = vmul.f32 %v6028_v8, %v1517_v45  ;;  %6456 = vmatprep.mubr.msk.bf16.mxu0 %vm9029_vm0, %v1567_v42  ;;  %6471 = vmatmul.mubr.msk.bf16.gmra.mrb[16].mxu1 %vm9029_vm0, %v7558_v18  ;;  %v1746_v31 = vadd.f32 -1.0, %v7671_v27  ;;  %v1794_v33 = vadd.f32 1.0, %v7671_v27  ;;  %vm7684_vm10 = vmand %vm1799_vm4, %vm1807_vm5  ;;  %v7688_v40 = vpop.permute.xlu0 %1734  ;;  %v7826_v18 = vld [vmem:[%s7261_s6] ss:$0 sm:$0xff] }
 0x171   : > { %9226 = vst [vmem:[#allocation40_spill] sm:$0xff] %v7590_v43  ;;  %1692 = vst.msk [vmem:[#allocation2 + $0x48] sm:$0xff] %vm9029_vm0, %v7590_v43  ;;  %v7597_v48 = vadd.f32 %v6029_v16, %v1543_v44  ;;  %6457 = vmatmul.mubr.msk.bf16.vlgmr.msra.gmra.mrb[4].mxu0 %vm9029_vm0, %v1568_v39  ;;  %v1565_v49 = vmax.f32 %v7590_v43, 0.0  ;;  %v1694_v60 = vld [vmem:[#allocation2 + $0x17] sm:$0xff]  ;;  %v9244_v35 = vmov 0  ;;  %v9246_v38 = vmov 0 }
 0x172   : > { %9227 = vst [vmem:[#allocation41_spill] sm:$0xff] %v7592_v46  ;;  %1690 = vst.msk [vmem:[#allocation2 + $0x38] sm:$0xff] %vm9029_vm0, %v7592_v46  ;;  %v7605_v50 = vadd.f32 %v6029_v16, %v1541_v47  ;;  %v1563_v51 = vmax.f32 %v7592_v46, 0.0  ;;  %v1774_v2 = vsel %vm7624_vm8, %v1694_v60, 0.0  ;;  %v1784_v4 = vld [vmem:[#allocation2 + $0x29] sm:$0xff]  ;;  %v7658_v16 = vpop.permute.xlu1 %1719  ;;  %v9245_v35 = vsel %vm7678_vm9, 4294967295, %v9244_v35 }
 0x173   : > { %9228 = vst [vmem:[#allocation42_spill] sm:$0xff] %v7597_v48  ;;  %1693 = vst.msk [vmem:[#allocation2 + $0x50] sm:$0xff] %vm9029_vm0, %v7597_v48  ;;  %v1566_v52 = vmax.f32 %v7597_v48, 0.0  ;;  %v1782_v63 = vld [vmem:[#allocation2 + $0x19] sm:$0xff]  ;;  %v1696_v1 = vld [vmem:[#allocation2 + $0x27] sm:$0xff]  ;;  %v1830_v6 = vadd.f32 %v1774_v2, %v7566_v28  ;;  %v1824_v11 = vsel %vm7643_vm15, %v1784_v4, 0.0 }
 0x174   : > { %9229 = vst [vmem:[#allocation43_spill] sm:$0xff] %v7605_v50  ;;  %1691 = vst.msk [vmem:[#allocation2 + $0x40] sm:$0xff] %vm9029_vm0, %v7605_v50  ;;  %v1564_v53 = vmax.f32 %v7605_v50, 0.0  ;;  %v1822_v5 = vsel %vm7630_vm13, %v1782_v63, 0.0  ;;  %v1776_v8 = vsel %vm7637_vm14, %v1696_v1, 0.0  ;;  %v7654_v14 = vld [vmem:[#allocation2 + $0x1f] sm:$0xff] }
 0x175   : > { %v1570_v54 = vpack.c.bf16 %v1566_v52, %v1565_v49  ;;  %v7647_v10 = vadd.f32 %v1830_v6, %v1822_v5  ;;  %v1832_v12 = vadd.f32 %v1776_v8, %v7564_v25  ;;  %9241 = vst [vmem:[#allocation47_spill] sm:$0xff] %v7658_v16  ;;  %v7662_v19 = vld [vmem:[#allocation2 + $0x2f] sm:$0xff]  ;;  %v7665_v23 = vld [vmem:[#allocation2 + $0x21] sm:$0xff]  ;;  %v1745_v26 = vadd.f32 -1.0, %v7658_v16  ;;  %9248 = vst [vmem:[#allocation50_spill] sm:$0xff] %v7688_v40 }
 0x176   : > { %v1569_v55 = vpack.c.bf16 %v1564_v53, %v1563_v51  ;;  %v1793_v29 = vadd.f32 1.0, %v7658_v16  ;;  %v7676_v34 = vpop.permute.xlu1 %1729  ;;  %v9247_v38 = vsel %vm7684_vm10, 4294967295, %v9246_v38  ;;  %vm1754_vm11 = vcmp.ge.f32.partialorder %v1746_v31, 0.0 }
 0x177   : > { %v7656_v15 = vadd.f32 %v1832_v12, %v1824_v11  ;;  %1846 = vst.msk [vmem:[#allocation2 + $0x18] sm:$0xff] %vm9029_vm0, %v7647_v10  ;;  %vm1753_vm6 = vcmp.ge.f32.partialorder %v1745_v26, 0.0  ;;  %vm1761_vm7 = vcmp.le.f32.partialorder %v1745_v26, 7.0  ;;  %9243 = vst [vmem:[#allocation49_spill] sm:$0xff] %v7676_v34  ;;  %v1747_v36 = vadd.f32 -1.0, %v7676_v34 }
 0x178   : > { %6460 = vmatprep.mubr.msk.bf16.mxu0 %vm9029_vm0, %v1569_v55  ;;  %v1795_v37 = vadd.f32 1.0, %v7676_v34  ;;  %vm1762_vm12 = vcmp.le.f32.partialorder %v1746_v31, 7.0  ;;  %vm1802_vm3 = vcmp.ge.f32.partialorder %v1794_v33, 0.0  ;;  %vm7691_vm1 = vmand %vm1753_vm6, %vm1761_vm7  ;;  %v9249_v41 = vmov 0 }
 0x179   : > { %6461 = vmatmul.mubr.msk.bf16.gmra.mrb[8].mxu0 %vm9029_vm0, %v1570_v54  ;;  %1848 = vst.msk [vmem:[#allocation2 + $0x28] sm:$0xff] %vm9029_vm0, %v7656_v15  ;;  %v1698_v39 = vld [vmem:[#allocation2 + $0x37] sm:$0xff]  ;;  %vm1810_vm0 = vcmp.le.f32.partialorder %v1794_v33, 7.0  ;;  %v9250_v41 = vsel %vm7691_vm1, 4294967295, %v9249_v41  ;;  %vm1801_vm2 = vcmp.ge.f32.partialorder %v1793_v29, 0.0  ;;  %vm1809_vm15 = vcmp.le.f32.partialorder %v1793_v29, 7.0  ;;  %vm7695_vm13 = vmand %vm1754_vm11, %vm1762_vm12 }
 0x17a   : > { %v9251_v44 = vmov 0  ;;  %vm1755_vm4 = vcmp.ge.f32.partialorder %v1747_v36, 0.0  ;;  %vm1763_vm5 = vcmp.le.f32.partialorder %v1747_v36, 7.0  ;;  %v1778_v45 = vsel %vm7695_vm13, %v1698_v39, 0.0  ;;  %vm7701_vm14 = vmand %vm1802_vm3, %vm1810_vm0  ;;  %v1788_v60 = vld [vmem:[#allocation2 + $0x49] sm:$0xff]  ;;  %v1785_v2 = vld [vmem:[#allocation2 + $0x31] sm:$0xff] }
 0x17b   : > { %v1786_v42 = vld [vmem:[#allocation2 + $0x39] sm:$0xff]  ;;  %v9252_v44 = vsel %vm7695_vm13, 4294967295, %v9251_v44  ;;  %v9253_v47 = vmov 0  ;;  %v1748_v49 = vadd.f32 -1.0, %v7688_v40  ;;  %v1796_v51 = vadd.f32 1.0, %v7688_v40  ;;  %vm7707_vm6 = vmand %vm1801_vm2, %vm1809_vm15  ;;  %v1700_v55 = vld [vmem:[#allocation2 + $0x47] sm:$0xff] }
 0x17c   : > { %v9254_v47 = vsel %vm7701_vm14, 4294967295, %v9253_v47  ;;  %v9255_v52 = vmov 0  ;;  %v1826_v53 = vsel %vm7701_vm14, %v1786_v42, 0.0  ;;  %v1834_v54 = vadd.f32 %v1778_v45, %v7592_v46  ;;  %v1699_v57 = vld [vmem:[#allocation2 + $0x3f] sm:$0xff]  ;;  %vm7714_vm0 = vmand %vm1755_vm4, %vm1763_vm5  ;;  %v1701_v26 = vld [vmem:[#allocation2 + $0x4f] sm:$0xff]  ;;  %v7768_v42 = vpop.permute.xlu1 %1739 }
 0x17d   : > { %v9256_v52 = vsel %vm7707_vm6, 4294967295, %v9255_v52  ;;  %vm1811_vm11 = vcmp.le.f32.partialorder %v1795_v37, 7.0  ;;  %v9258_v58 = vsel %vm7714_vm0, 4294967295, %v9257_v58  ;;  %vm1756_vm3 = vcmp.ge.f32.partialorder %v1748_v49, 0.0  ;;  %v1787_v8 = vld [vmem:[#allocation2 + $0x41] sm:$0xff]  ;;  %9273 = vst [vmem:[#allocation53_spill] sm:$0xff] %v7768_v42 }
 0x17e   : > { %vm1764_vm12 = vcmp.le.f32.partialorder %v1748_v49, 7.0  ;;  %vm1804_vm15 = vcmp.ge.f32.partialorder %v1796_v51, 0.0  ;;  %vm1812_vm2 = vcmp.le.f32.partialorder %v1796_v51, 7.0  ;;  %v7718_v61 = vadd.f32 %v1834_v54, %v1826_v53 }
 0x17f   : > { %vm7720_vm13 = vmand %vm1756_vm3, %vm1764_vm12  ;;  %v9259_v62 = vmov 0  ;;  %v9261_v1 = vmov 0  ;;  %vm9264_vm4 = vcmp.ge.f32.partialorder %v1795_v37, 0.0  ;;  %v9265_v4 = vmov 0 }
 0x180   : > { %v9260_v62 = vsel %vm7720_vm13, 4294967295, %v9259_v62  ;;  %v1780_v63 = vsel %vm7720_vm13, %v1700_v55, 0.0  ;;  %vm7726_vm7 = vmand %vm1804_vm15, %vm1812_vm2  ;;  %vm9268_vm3 = vcmask 130048   ;;  %v1775_v11 = vsel %vm7678_vm9, %v7654_v14, 0.0  ;;  %v1789_v55 = vld [vmem:[#allocation2 + $0x51] sm:$0xff] }
 0x181   : > { %v9262_v1 = vsel %vm7726_vm7, 4294967295, %v9261_v1  ;;  %vm7731_vm5 = vmand %vm9264_vm4, %vm1811_vm11  ;;  %v1828_v5 = vsel %vm7726_vm7, %v1788_v60, 0.0  ;;  %v1836_v6 = vadd.f32 %v1780_v63, %v7590_v43  ;;  %1850 = vst.msk [vmem:[#allocation2 + $0x38] sm:$0xff] %vm9268_vm3, %v7718_v61  ;;  %v1823_v20 = vsel %vm7684_vm10, %v7665_v23, 0.0 }
 0x182   : > { %9263 = vst [vmem:[#allocation51_spill] sm:$0xff] %v9262_v1  ;;  %v9266_v4 = vsel %vm7731_vm5, 4294967295, %v9265_v4  ;;  %v1831_v24 = vadd.f32 %v1775_v11, %v7579_v32  ;;  %v1777_v29 = vsel %vm7691_vm1, %v7662_v19, 0.0  ;;  %v1825_v31 = vsel %vm7707_vm6, %v1785_v2, 0.0  ;;  %vm9269_vm11 = vmmov %vm9268_vm3  ;;  %v6044_v2 = vld [vmem:[%s7271_s20 + $0x2] sm:$0x3] }
 0x183   : > { %9267 = vst [vmem:[#allocation52_spill] sm:$0xff] %v9266_v4  ;;  %v7743_v12 = vadd.f32 %v1836_v6, %v1828_v5  ;;  %v1779_v33 = vsel %vm7714_vm0, %v1699_v57, 0.0  ;;  %v1827_v14 = vsel %vm7731_vm5, %v1787_v8, 0.0  ;;  %v1833_v37 = vadd.f32 %v1777_v29, %v7572_v30  ;;  %vm9270_vm12 = vmmov %vm9268_vm3  ;;  %v7793_v6 = vld [vmem:[%s7271_s20] sm:$0x3]  ;;  %v7797_v8 = vpop.permute.xlu0 %1882 }
 0x184   : > { %v1839_v36 = vadd.f32 %v1831_v24, %v1823_v20  ;;  %v1835_v23 = vadd.f32 %v1779_v33, %v7605_v50  ;;  %vm9271_vm15 = vmmov %vm9268_vm3  ;;  %v1749_v45 = vadd.f32 -1.0, %v7768_v42  ;;  %v1797_v49 = vadd.f32 1.0, %v7768_v42  ;;  %9279 = vst [vmem:[#allocation55_spill] sm:$0xff] %v7797_v8  ;;  %v1855_v20 = vld [vmem:[#allocation2 + $0x18] sm:$0xff]  ;;  %v1857_v24 = vld [vmem:[#allocation2 + $0x28] sm:$0xff] }
 0x185   : > { %1852 = vst.msk [vmem:[#allocation2 + $0x48] sm:$0xff] %vm9269_vm11, %v7743_v12  ;;  %v1841_v19 = vadd.f32 %v1833_v37, %v1825_v31  ;;  %vm9272_vm2 = vmmov %vm9268_vm3  ;;  %v9274_v51 = vmov 0  ;;  %v9276_v53 = vmov 0  ;;  %v7802_v29 = vadd.f32 -3.0, %v7616_v56 }
 0x186   : > { %1847 = vst.msk [vmem:[#allocation2 + $0x20] sm:$0xff] %vm9270_vm12, %v1839_v36  ;;  %v7763_v39 = vadd.f32 %v1835_v23, %v1827_v14  ;;  %vm1757_vm4 = vcmp.ge.f32.partialorder %v1749_v45, 0.0  ;;  %vm1765_vm3 = vcmp.le.f32.partialorder %v1749_v45, 7.0  ;;  %vm1805_vm11 = vcmp.ge.f32.partialorder %v1797_v49, 0.0  ;;  %v7816_v45 = vpop.permute.xlu1 %1887 }
 0x187   : > { %1849 = vst.msk [vmem:[#allocation2 + $0x30] sm:$0xff] %vm9271_vm15, %v1841_v19  ;;  %vm1813_vm12 = vcmp.le.f32.partialorder %v1797_v49, 7.0  ;;  %vm7772_vm5 = vmand %vm1757_vm4, %vm1765_vm3  ;;  %vm9080_vm4 = vcmask 1041408   ;;  %v7799_v11 = vpop.permute.xlu0 %1892  ;;  %v7805_v31 = vadd.f32 -2.0, %v7616_v56  ;;  %v7808_v14 = vadd.f32 -3.0, %v7620_v59 }
 0x188   : > { %1851 = vst.msk [vmem:[#allocation2 + $0x40] sm:$0xff] %vm9272_vm2, %v7763_v39  ;;  %v9275_v51 = vsel %vm7772_vm5, 4294967295, %v9274_v51  ;;  %vm7776_vm15 = vmand %vm1805_vm11, %vm1813_vm12  ;;  %v1781_v54 = vsel %vm7772_vm5, %v1701_v26, 0.0  ;;  %7001 = vmatprep.subr.msk.bf16.mxu0 %vm9080_vm4, %v6044_v2  ;;  %v2336_v5 = vsel %vm9080_vm4, %v6044_v2, 0  ;;  %v1854_v26 = vld [vmem:[#allocation2 + $0x10] sm:$0xff]  ;;  %v7811_v37 = vadd.f32 -2.0, %v7620_v59 }
 0x189   : > { %v9277_v53 = vsel %vm7776_vm15, 4294967295, %v9276_v53  ;;  %v1837_v57 = vadd.f32 %v1781_v54, %v7597_v48  ;;  %v1829_v60 = vsel %vm7776_vm15, %v1789_v55, 0.0  ;;  %6475 = vmatpush3.bf16.msra.mxu0 %v2336_v5  ;;  %9280 = vst [vmem:[#allocation56_spill] sm:$0xff] %v7799_v11  ;;  %v7814_v23 = vadd.f32 -3.0, %v7652_v13  ;;  %9281 = vst [vmem:[#allocation57_spill] sm:$0xff] %v7816_v45 }
 0x18a   : > { %9278 = vst [vmem:[#allocation54_spill] sm:$0xff] %v9277_v53  ;;  %7002 = vmatprep.subr.msk.bf16.mxu0 %vm9080_vm4, %v7793_v6  ;;  %v1865_v49 = vadd.f32 %v1855_v20, %v1839_v36  ;;  %v7819_v55 = vadd.f32 -2.0, %v7652_v13  ;;  %v1867_v2 = vadd.f32 %v1857_v24, %v1841_v19  ;;  %v7829_v22 = vadd.f32 -2.0, %v7658_v16  ;;  %v1859_v36 = vld [vmem:[#allocation2 + $0x38] sm:$0xff] }
 0x18b   : > { %v7785_v63 = vadd.f32 %v1837_v57, %v1829_v60  ;;  %v7822_v57 = vadd.f32 -3.0, %v7658_v16  ;;  %v1864_v60 = vadd.f32 %v1854_v26, %v7647_v10  ;;  %v7832_v17 = vadd.f32 -3.0, %v7671_v27  ;;  %v7835_v21 = vpop.permute.xlu0 %1902  ;;  %v7848_v16 = vld [vmem:[%s7266_s12] ss:$0 sm:$0xff] }
 0x18c   : > { %9282 = vst [vmem:[#allocation58_spill] sm:$0xff] %v7835_v21  ;;  %v7839_v13 = vadd.f32 -2.0, %v7671_v27  ;;  %v7842_v10 = vadd.f32 -3.0, %v7676_v34  ;;  %v7845_v19 = vadd.f32 -2.0, %v7676_v34  ;;  %v7855_v43 = vadd.f32 -2.0, %v7688_v40  ;;  %v1861_v27 = vld [vmem:[#allocation2 + $0x48] sm:$0xff] }
 0x18d   : > { %1853 = vst.msk [vmem:[#allocation2 + $0x50] sm:$0xff] %vm9272_vm2, %v7785_v63  ;;  %v1856_v33 = vld [vmem:[#allocation2 + $0x20] sm:$0xff]  ;;  %v1875_v34 = vadd.f32 %v1867_v2, %v1859_v36  ;;  %v1869_v32 = vadd.f32 %v1859_v36, %v7763_v39  ;;  %v7872_v2 = vadd.f32 -2.0, %v7768_v42  ;;  %vm9287_vm4 = vcmask 31744  }
 0x18e   : > { %v1858_v5 = vld [vmem:[#allocation2 + $0x30] sm:$0xff]  ;;  %v1866_v20 = vadd.f32 %v1856_v33, %v7656_v15  ;;  %v7852_v15 = vadd.f32 -3.0, %v7688_v40  ;;  %v1872_v30 = vadd.f32 %v1864_v60, %v1856_v33  ;;  %v1871_v33 = vadd.f32 %v1861_v27, %v7785_v63  ;;  %vm9288_vm12 = vmmov %vm9287_vm4 }
 0x18f   : > { %v1860_v54 = vld [vmem:[#allocation2 + $0x40] sm:$0xff]  ;;  %v1868_v59 = vadd.f32 %v1858_v5, %v7718_v61  ;;  %v1873_v61 = vadd.f32 %v1865_v49, %v1857_v24  ;;  %v7881_v36 = vadd.f32 %v1869_v32, %v1861_v27  ;;  %vm9289_vm3 = vmmov %vm9287_vm4  ;;  %vm9298_vm2 = vcmp.ge.f32.partialorder %v7829_v22, 0.0 }
 0x190   : > { %v1870_v56 = vadd.f32 %v1860_v54, %v7743_v12  ;;  %v7862_v12 = vpop.permute.xlu1 %1897  ;;  %v1874_v40 = vadd.f32 %v1866_v20, %v1858_v5  ;;  %v7878_v5 = vpop.permute.xlu0 %1912  ;;  %v1920_v63 = vmul.f32 %v7797_v8, %v1872_v30  ;;  %vm9290_vm11 = vmmov %vm9289_vm3 }
 0x191   : > { %9283 = vst [vmem:[#allocation59_spill] sm:$0xff] %v7862_v12  ;;  %v1876_v24 = vadd.f32 %v1868_v59, %v1860_v54  ;;  %v1863_v54 = vld [vmem:[#allocation2 + $0x58] sm:$0xff]  ;;  %9285 = vst [vmem:[#allocation60_spill] sm:$0xff] %v7878_v5 }
 0x192   : > { %v1922_v20 = vmul.f32 %v7799_v11, %v1874_v40  ;;  %v7894_v32 = vadd.f32 %v1871_v33, %v1863_v54 }
 0x194   : > { %v1862_v48 = vld [vmem:[#allocation2 + $0x50] sm:$0xff] }
 0x195   : > { %v1878_v60 = vadd.f32 %v1870_v56, %v1862_v48  ;;  %v7885_v56 = vld [vmem:[%s9284_s16] ss:$0 sm:$0xff]  ;;  %s9603_s16 = sld [smem:[#allocation15_spill]] }
 0x197   : > { %v7897_v27 = vmul.f32 %v7878_v5, %v1878_v60  ;;  %v7917_v5 = vpop.permute.xlu1 %1907 }
 0x198   : > { %9291 = vst [vmem:[#allocation61_spill] sm:$0xff] %v7917_v5 }
 0x23b   : > { %v6468_v26 = vpop.f32.mrb[12].mxu1 }
 0x23c   : > { %v2042_v50 = vmul.f32 %v6468_v26, %v7826_v18  ;;  %v2002_v46 = vpop.f32.mrb[13].mxu1 }
 0x23d   : > { %v2040_v25 = vmul.f32 %v7826_v18, %v2002_v46  ;;  %v6469_v28 = vpop.f32.mrb[14].mxu1 }
 0x23e   : > { %v2057_v49 = vadd.f32 %v7848_v16, %v2042_v50  ;;  %v2043_v26 = vmul.f32 %v6469_v28, %v7826_v18  ;;  %v2005_v4 = vpop.f32.mrb[15].mxu1  ;;  %v7875_v50 = vmul.f32 %v7816_v45, %v1873_v61  ;;  %v7890_v61 = vmul.f32 %v7835_v21, %v1876_v24 }
 0x23f   : > { %v2055_v46 = vadd.f32 %v7848_v16, %v2040_v25  ;;  %v2041_v39 = vmul.f32 %v7826_v18, %v2005_v4  ;;  %v1923_v25 = vmul.f32 %v7862_v12, %v1875_v34 }
 0x240   : > { %v2065_v28 = vmax.f32 %v2057_v49, 0.0  ;;  %v2058_v59 = vadd.f32 %v7848_v16, %v2043_v26 }
 0x241   : > { %v2063_v4 = vmax.f32 %v2055_v46, 0.0  ;;  %v2056_v48 = vadd.f32 %v7848_v16, %v2041_v39  ;;  %v7900_v46 = vld [vmem:[%s9286_s0] ss:$0 sm:$0xff]  ;;  %s9604_s0 = sld [smem:[#allocation16_spill]] }
 0x242   : > { %2073 = vst.msk [vmem:[#allocation3 + $0x28] sm:$0xff] %vm9287_vm4, %v2065_v28  ;;  %v2066_v49 = vmax.f32 %v2058_v59, 0.0  ;;  %vm9292_vm4 = vcmp.le.f32.partialorder %v7811_v37, 7.0 }
 0x243   : > { %2071 = vst.msk [vmem:[#allocation3 + $0x18] sm:$0xff] %vm9288_vm12, %v2063_v4  ;;  %v2064_v34 = vmax.f32 %v2056_v48, 0.0  ;;  %v6472_v30 = vpop.f32.mrb[16].mxu1 }
 0x244   : > { %v6458_v26 = vpop.f32.mrb[4].mxu0  ;;  %2074 = vst.msk [vmem:[#allocation3 + $0x30] sm:$0xff] %vm9289_vm3, %v2066_v49  ;;  %v2046_v24 = vmul.f32 %v6472_v30, %v7826_v18  ;;  %v2018_v28 = vpop.f32.mrb[17].mxu1  ;;  %vm9293_vm3 = vcmp.ge.f32.partialorder %v7811_v37, 0.0 }
 0x245   : > { %v1665_v40 = vmul.f32 %v6458_v26, %v7885_v56  ;;  %v1625_v39 = vpop.f32.mrb[5].mxu0  ;;  %2072 = vst.msk [vmem:[#allocation3 + $0x20] sm:$0xff] %vm9290_vm11, %v2064_v34  ;;  %v2044_v60 = vmul.f32 %v7826_v18, %v2018_v28  ;;  %v6473_v54 = vpop.f32.mrb[18].mxu1  ;;  %vm7933_vm12 = vmand %vm9293_vm3, %vm9292_vm4  ;;  %vm9297_vm11 = vcmp.le.f32.partialorder %v7829_v22, 7.0  ;;  %vm9302_vm4 = vcmask 130048  }
 0x246   : > { %v1663_v33 = vmul.f32 %v7885_v56, %v1625_v39  ;;  %v6459_v59 = vpop.f32.mrb[6].mxu0  ;;  %v2061_v48 = vadd.f32 %v7848_v16, %v2046_v24  ;;  %v2047_v26 = vmul.f32 %v6473_v54, %v7826_v18  ;;  %v2021_v34 = vpop.f32.mrb[19].mxu1  ;;  %vm7945_vm7 = vmand %vm9298_vm2, %vm9297_vm11  ;;  %vm9303_vm3 = vcmask 31744  }
 0x247   : > { %v1680_v4 = vadd.f32 %v7900_v46, %v1665_v40  ;;  %v1666_v49 = vmul.f32 %v6459_v59, %v7885_v56  ;;  %v1628_v30 = vpop.f32.mrb[7].mxu0  ;;  %v2059_v28 = vadd.f32 %v7848_v16, %v2044_v60  ;;  %v2045_v11 = vmul.f32 %v7826_v18, %v2021_v34  ;;  %vm9304_vm13 = vmmov %vm9302_vm4 }
 0x248   : > { %v1678_v39 = vadd.f32 %v7900_v46, %v1663_v33  ;;  %v1664_v21 = vmul.f32 %v7885_v56, %v1628_v30  ;;  %v2069_v24 = vmax.f32 %v2061_v48, 0.0  ;;  %v2062_v54 = vadd.f32 %v7848_v16, %v2047_v26  ;;  %vm9305_vm2 = vmmov %vm9303_vm3 }
 0x249   : > { %v7925_v40 = vadd.f32 %v1922_v20, %v1680_v4  ;;  %v1681_v59 = vadd.f32 %v7900_v46, %v1666_v49  ;;  %v9294_v33 = vmov 0  ;;  %v2067_v60 = vmax.f32 %v2059_v28, 0.0  ;;  %vm9311_vm0 = vmmov %vm9304_vm13  ;;  %v7990_v28 = vpop.permute.xlu1 %1917 }
 0x24a   : > { %v9295_v33 = vsel %vm7933_vm12, 4294967295, %v9294_v33  ;;  %v7937_v18 = vadd.f32 %v1920_v63, %v1678_v39  ;;  %v1679_v30 = vadd.f32 %v7900_v46, %v1664_v21  ;;  %v2060_v20 = vadd.f32 %v7848_v16, %v2045_v11  ;;  %2077 = vst.msk [vmem:[#allocation3 + $0x48] sm:$0xff] %vm9303_vm3, %v2069_v24  ;;  %v2127_v48 = vld [vmem:[#allocation3 + $0x16] sm:$0xff]  ;;  %vm9312_vm5 = vmmov %vm9305_vm2 }
 0x24b   : > { %9296 = vst [vmem:[#allocation62_spill] sm:$0xff] %v9295_v33  ;;  %v9299_v4 = vmov 0  ;;  %5526 = vst.msk [vmem:[#allocation2 + $0x28] sm:$0xff] %vm9302_vm4, %v7925_v40  ;;  %v7952_v37 = vadd.f32 %v1923_v25, %v1681_v59  ;;  %v2070_v63 = vmax.f32 %v2062_v54, 0.0  ;;  %vm9306_vm11 = vcmp.le.f32.partialorder %v7805_v31, 7.0  ;;  %v2130_v25 = vld [vmem:[#allocation3 + $0x2e] sm:$0xff] }
 0x24c   : > { %v9300_v4 = vsel %vm7945_vm7, 4294967295, %v9299_v4  ;;  %5524 = vst.msk [vmem:[#allocation2 + $0x18] sm:$0xff] %vm9304_vm13, %v7937_v18  ;;  %v7960_v21 = vadd.f32 %v7875_v50, %v1679_v30  ;;  %v2068_v22 = vmax.f32 %v2060_v20, 0.0  ;;  %v6462_v16 = vpop.f32.mrb[8].mxu0  ;;  %vm9307_vm4 = vcmp.ge.f32.partialorder %v7805_v31, 0.0  ;;  %v2128_v49 = vld [vmem:[#allocation3 + $0x1e] sm:$0xff]  ;;  %vm9320_vm15 = vmmov %vm9312_vm5 }
 0x24d   : > { %9301 = vst [vmem:[#allocation63_spill] sm:$0xff] %v9300_v4  ;;  %2075 = vst.msk [vmem:[#allocation3 + $0x38] sm:$0xff] %vm9305_vm2, %v2067_v60  ;;  %v9308_v11 = vmov 0  ;;  %v1669_v31 = vmul.f32 %v6462_v16, %v7885_v56  ;;  %v1641_v50 = vpop.f32.mrb[9].mxu0  ;;  %v9315_v26 = vmov 0  ;;  %v2129_v34 = vld [vmem:[#allocation3 + $0x26] sm:$0xff] }
 0x24e   : > { %vm7966_vm3 = vmand %vm9307_vm4, %vm9306_vm11  ;;  %5527 = vst.msk [vmem:[#allocation2 + $0x30] sm:$0xff] %vm9311_vm0, %v7952_v37  ;;  %vm9313_vm11 = vcmp.le.f32.partialorder %v7819_v55, 7.0  ;;  %vm9314_vm4 = vcmp.ge.f32.partialorder %v7819_v55, 0.0  ;;  %v2170_v39 = vsel %vm7945_vm7, %v2130_v25, 0.0  ;;  %vm2158_vm0 = vcmp.le.f32.partialorder %v7872_v2, 7.0  ;;  %v6463_v24 = vpop.f32.mrb[10].mxu0 }
 0x24f   : > { %v9309_v11 = vsel %vm7966_vm3, 4294967295, %v9308_v11  ;;  %2078 = vst.msk [vmem:[#allocation3 + $0x50] sm:$0xff] %vm9312_vm5, %v2070_v63  ;;  %vm7982_vm14 = vmand %vm9314_vm4, %vm9313_vm11  ;;  %v1667_v55 = vmul.f32 %v7885_v56, %v1641_v50  ;;  %v2167_v59 = vsel %vm7966_vm3, %v2127_v48, 0.0  ;;  %v2169_v60 = vsel %vm7933_vm12, %v2129_v34, 0.0  ;;  %v1644_v63 = vpop.f32.mrb[11].mxu0 }
 0x250   : > { %9310 = vst [vmem:[#allocation64_spill] sm:$0xff] %v9309_v11  ;;  %v9316_v26 = vsel %vm7982_vm14, 4294967295, %v9315_v26  ;;  %9318 = vst [vmem:[#allocation66_spill] sm:$0xff] %v7990_v28  ;;  %v2168_v54 = vsel %vm7982_vm14, %v2128_v49, 0.0  ;;  %v1684_v30 = vadd.f32 %v7900_v46, %v1669_v31  ;;  %v1670_v20 = vmul.f32 %v6463_v24, %v7885_v56  ;;  %v8054_v24 = vld [vmem:[#allocation3 + $0x1d] sm:$0xff] }
 0x251   : > { %9317 = vst [vmem:[#allocation65_spill] sm:$0xff] %v9316_v26  ;;  %vm9319_vm2 = vmmov %vm9304_vm13  ;;  %v2316_v16 = vpack.c.bf16 %v2168_v54, %v2167_v59  ;;  %v1682_v25 = vadd.f32 %v7900_v46, %v1667_v55  ;;  %v1668_v50 = vmul.f32 %v7885_v56, %v1644_v63  ;;  %vm9323_vm11 = vcmp.ge.f32.partialorder %v7839_v13, 0.0  ;;  %v9418_v26 = vld [vmem:[#allocation42_spill] sm:$0xff] }
 0x252   : > { %5525 = vst.msk [vmem:[#allocation2 + $0x20] sm:$0xff] %vm9319_vm2, %v7960_v21  ;;  %vm9322_vm2 = vcmp.le.f32.partialorder %v7839_v13, 7.0  ;;  %v9324_v49 = vmov 0  ;;  %v8018_v31 = vadd.f32 -3.0, %v7768_v42  ;;  %v1927_v34 = vmul.f32 %v7990_v28, %v7894_v32  ;;  %v9420_v42 = vld [vmem:[#allocation41_spill] sm:$0xff] }
 0x253   : > { %2076 = vst.msk [vmem:[#allocation3 + $0x40] sm:$0xff] %vm9320_vm15, %v2068_v22  ;;  %v2317_v22 = vpack.c.bf16 %v2170_v39, %v2169_v60  ;;  %vm9321_vm15 = vcmask 1041408   ;;  %vm8012_vm4 = vmand %vm9323_vm11, %vm9322_vm2  ;;  %v8023_v56 = vadd.f32 %v7897_v27, %v1684_v30  ;;  %vm9328_vm2 = vcmp.le.f32.partialorder %v7845_v19, 7.0  ;;  %v8036_v39 = vld [vmem:[%s7271_s20 + $0x4] sm:$0x3] }
 0x254   : > { %v2416_v48 = vsel %vm9321_vm15, %v7793_v6, 0  ;;  %v9325_v49 = vsel %vm8012_vm4, 4294967295, %v9324_v49  ;;  %v1685_v6 = vadd.f32 %v7900_v46, %v1670_v20  ;;  %vm9327_vm15 = vmmov %vm9312_vm5  ;;  %vm9329_vm11 = vcmp.ge.f32.partialorder %v7845_v19, 0.0 }
 0x255   : > { %9326 = vst [vmem:[#allocation67_spill] sm:$0xff] %v9325_v49  ;;  %6476 = vmatprep.mubr.msk.bf16.mxu0 %vm9327_vm15, %v2316_v16  ;;  %vm8031_vm13 = vmand %vm9329_vm11, %vm9328_vm2  ;;  %v9330_v13 = vmov 0  ;;  %v1925_v32 = vmul.f32 %v7917_v5, %v7881_v36  ;;  %v8041_v27 = vadd.f32 %v7890_v61, %v1682_v25  ;;  %v1683_v55 = vadd.f32 %v7900_v46, %v1668_v50  ;;  %v5532_v36 = vld [vmem:[#allocation2 + $0x17] sm:$0xff]  ;;  %v2131_v46 = vld [vmem:[#allocation3 + $0x36] sm:$0xff] }
 0x256   : > { %v9331_v13 = vsel %vm8031_vm13, 4294967295, %v9330_v13  ;;  %6477 = vmatmul.mubr.msk.bf16.vlgmr.msra.gmra.mrb[12].mxu0 %vm9312_vm5, %v2317_v22  ;;  %vm9333_vm2 = vcmp.ge.f32.partialorder %v7872_v2, 0.0  ;;  %v9334_v19 = vmov 0  ;;  %vm9337_vm12 = vcmask 130048   ;;  %v5535_v60 = vld [vmem:[#allocation2 + $0x2f] sm:$0xff]  ;;  %v2134_v20 = vld [vmem:[#allocation3 + $0x4e] sm:$0xff] }
 0x257   : > { %9332 = vst [vmem:[#allocation68_spill] sm:$0xff] %v9331_v13  ;;  %vm8050_vm11 = vmand %vm9333_vm2, %vm2158_vm0  ;;  %v8058_v61 = vadd.f32 %v1927_v34, %v1685_v6  ;;  %6485 = vmatpush3.bf16.msra.mxu0 %v2416_v48  ;;  %vm2157_vm5 = vcmp.le.f32.partialorder %v7855_v43, 7.0  ;;  %vm9338_vm0 = vcmp.le.f32.partialorder %v7814_v23, 7.0  ;;  %vm9339_vm2 = vcmp.ge.f32.partialorder %v7814_v23, 0.0  ;;  %v5550_v30 = vld [vmem:[#allocation2 + $0x29] sm:$0xff] }
 0x258   : > { %v9335_v19 = vsel %vm8050_vm11, 4294967295, %v9334_v19  ;;  %5530 = vst.msk [vmem:[#allocation2 + $0x48] sm:$0xff] %vm9337_vm12, %v8023_v56  ;;  %vm8067_vm3 = vmand %vm9339_vm2, %vm9338_vm0  ;;  %v9340_v2 = vmov 0  ;;  %vm9343_vm12 = vcmp.le.f32.partialorder %v7808_v14, 7.0  ;;  %vm9344_vm7 = vcmp.ge.f32.partialorder %v7808_v14, 0.0 }
 0x259   : > { %9336 = vst [vmem:[#allocation69_spill] sm:$0xff] %v9335_v19  ;;  %v9341_v2 = vsel %vm8067_vm3, 4294967295, %v9340_v2  ;;  %vm8075_vm6 = vmand %vm9344_vm7, %vm9343_vm12  ;;  %v9345_v59 = vmov 0  ;;  %v5540_v54 = vsel %vm7624_vm8, %v5532_v36, 0.0  ;;  %vm9348_vm15 = vcmask 130048   ;;  %v5533_v63 = vld [vmem:[#allocation2 + $0x1f] sm:$0xff] }
 0x25a   : > { %9342 = vst [vmem:[#allocation70_spill] sm:$0xff] %v9341_v2  ;;  %v9346_v59 = vsel %vm8075_vm6, 4294967295, %v9345_v59  ;;  %5528 = vst.msk [vmem:[#allocation2 + $0x38] sm:$0xff] %vm9348_vm15, %v8041_v27  ;;  %v8083_v23 = vadd.f32 %v1925_v32, %v1683_v55  ;;  %vm9349_vm0 = vcmask 1041408   ;;  %v5564_v14 = vadd.f32 %v5540_v54, %v7937_v18  ;;  %v5534_v16 = vld [vmem:[#allocation2 + $0x27] sm:$0xff]  ;;  %v5548_v22 = vld [vmem:[#allocation2 + $0x19] sm:$0xff] }
 0x25b   : > { %9347 = vst [vmem:[#allocation71_spill] sm:$0xff] %v9346_v59  ;;  %7003 = vmatprep.subr.msk.bf16.mxu0 %vm9349_vm0, %v8036_v39  ;;  %vm9350_vm12 = vmmov %vm9348_vm15  ;;  %v2171_v25 = vsel %vm8012_vm4, %v2131_v46, 0.0  ;;  %v2174_v50 = vsel %vm8050_vm11, %v2134_v20, 0.0  ;;  %v2120_v48 = vsel %vm8067_vm3, %v8054_v24, 0.0  ;;  %v5541_v34 = vsel %vm7678_vm9, %v5533_v63, 0.0  ;;  %v5549_v32 = vld [vmem:[#allocation2 + $0x21] sm:$0xff] }
 0x25c   : > { %5531 = vst.msk [vmem:[#allocation2 + $0x50] sm:$0xff] %vm9350_vm12, %v8058_v61  ;;  %vm9351_vm15 = vnez %v9237_v7  ;;  %vm9352_vm0 = vnez %v9235_v3  ;;  %5529 = vst.msk [vmem:[#allocation2 + $0x40] sm:$0xff] %vm9350_vm12, %v8083_v23  ;;  %v2132_v36 = vld [vmem:[#allocation3 + $0x3e] sm:$0xff]  ;;  %v2133_v46 = vld [vmem:[#allocation3 + $0x46] sm:$0xff]  ;;  %v5543_v54 = vsel %vm7691_vm1, %v5535_v60, 0.0  ;;  %v5565_v24 = vadd.f32 %v5541_v34, %v7960_v21 }
 0x25d   : > { %v5542_v6 = vsel %vm9351_vm15, %v5534_v16, 0.0  ;;  %v5556_v55 = vsel %vm9352_vm0, %v5548_v22, 0.0  ;;  %vm9353_vm2 = vcmp.ge.f32.partialorder %v7855_v43, 0.0  ;;  %v9354_v16 = vmov 0  ;;  %v2079_v22 = vld [vmem:[#allocation3 + $0x15] sm:$0xff] }
 0x25e   : > { %v5566_v20 = vadd.f32 %v5542_v6, %v7925_v40  ;;  %v8111_v63 = vadd.f32 %v5564_v14, %v5556_v55  ;;  %vm8117_vm7 = vmand %vm9353_vm2, %vm2157_vm5  ;;  %vm9357_vm12 = vcmp.le.f32.partialorder %v7822_v57, 7.0  ;;  %vm9358_vm14 = vcmp.ge.f32.partialorder %v7822_v57, 0.0  ;;  %v9390_v19 = vld [vmem:[#allocation37_spill] sm:$0xff] }
 0x25f   : > { %v9355_v16 = vsel %vm8117_vm7, 4294967295, %v9354_v16  ;;  %vm8125_vm3 = vmand %vm9358_vm14, %vm9357_vm12  ;;  %v9359_v60 = vmov 0  ;;  %vm9362_vm4 = vnez %v9239_v9  ;;  %v5557_v34 = vsel %vm7684_vm10, %v5549_v32, 0.0  ;;  %v2082_v32 = vld [vmem:[#allocation3 + $0x2d] sm:$0xff] }
 0x260   : > { %9356 = vst [vmem:[#allocation72_spill] sm:$0xff] %v9355_v16  ;;  %v9360_v60 = vsel %vm8125_vm3, 4294967295, %v9359_v60  ;;  %v5558_v14 = vsel %vm9362_vm4, %v5550_v30, 0.0  ;;  %v2172_v43 = vsel %vm8031_vm13, %v2132_v36, 0.0  ;;  %v2173_v6 = vsel %vm8117_vm7, %v2133_v46, 0.0  ;;  %v2081_v46 = vld [vmem:[#allocation3 + $0x25] sm:$0xff] }
 0x261   : > { %9361 = vst [vmem:[#allocation73_spill] sm:$0xff] %v9360_v60  ;;  %v5573_v55 = vadd.f32 %v5565_v24, %v5557_v34  ;;  %v8137_v2 = vadd.f32 %v5566_v20, %v5558_v14  ;;  %vm9363_vm14 = vcmask 130048   ;;  %v2318_v57 = vpack.c.bf16 %v2172_v43, %v2171_v25  ;;  %v5551_v24 = vld [vmem:[#allocation2 + $0x31] sm:$0xff] }
 0x262   : > { %5580 = vst.msk [vmem:[#allocation2 + $0x18] sm:$0xff] %vm9363_vm14, %v8111_v63  ;;  %v2319_v49 = vpack.c.bf16 %v2174_v50, %v2173_v6  ;;  %vm9364_vm5 = vcmp.le.f32.partialorder %v7802_v29, 7.0  ;;  %vm9365_vm2 = vcmp.ge.f32.partialorder %v7802_v29, 0.0  ;;  %v9366_v30 = vmov 0  ;;  %v5536_v50 = vld [vmem:[#allocation2 + $0x37] sm:$0xff] }
 0x263   : > { %vm8145_vm12 = vmand %vm9365_vm2, %vm9364_vm5  ;;  %vm9369_vm14 = vcmp.le.f32.partialorder %v7842_v10, 7.0  ;;  %vm9370_vm11 = vcmp.ge.f32.partialorder %v7842_v10, 0.0  ;;  %v9371_v25 = vmov 0  ;;  %v5567_v29 = vadd.f32 %v5543_v54, %v7952_v37  ;;  %v5539_v14 = vld [vmem:[#allocation2 + $0x4f] sm:$0xff]  ;;  %v5538_v16 = vld [vmem:[#allocation2 + $0x47] sm:$0xff] }
 0x264   : > { %v9367_v30 = vsel %vm8145_vm12, 4294967295, %v9366_v30  ;;  %v2119_v36 = vsel %vm8145_vm12, %v2079_v22, 0.0  ;;  %vm8157_vm0 = vmand %vm9370_vm11, %vm9369_vm14  ;;  %vm9374_vm2 = vcmask 130048   ;;  %vm9376_vm7 = vcmask 31744   ;;  %v2084_v22 = vld [vmem:[#allocation3 + $0x3d] sm:$0xff] }
 0x265   : > { %9368 = vst [vmem:[#allocation74_spill] sm:$0xff] %v9367_v30  ;;  %v9372_v25 = vsel %vm8157_vm0, 4294967295, %v9371_v25  ;;  %5582 = vst.msk [vmem:[#allocation2 + $0x28] sm:$0xff] %vm9374_vm2, %v8137_v2  ;;  %6480 = vmatprep.mubr.msk.bf16.mxu0 %vm9376_vm7, %v2318_v57  ;;  %v2311_v20 = vpack.c.bf16 %v2120_v48, %v2119_v36  ;;  %vm9377_vm13 = vnez %v9252_v44  ;;  %vm9378_vm5 = vnez %v9256_v52  ;;  %v5554_v34 = vld [vmem:[#allocation2 + $0x49] sm:$0xff]  ;;  %v5555_v43 = vld [vmem:[#allocation2 + $0x51] sm:$0xff] }
 0x266   : > { %9373 = vst [vmem:[#allocation75_spill] sm:$0xff] %v9372_v25  ;;  %vm9375_vm12 = vmmov %vm9374_vm2  ;;  %v5544_v10 = vsel %vm9377_vm13, %v5536_v50, 0.0  ;;  %v5559_v54 = vsel %vm9378_vm5, %v5551_v24, 0.0  ;;  %v2122_v6 = vsel %vm8125_vm3, %v2082_v32, 0.0  ;;  %v5537_v30 = vld [vmem:[#allocation2 + $0x3f] sm:$0xff]  ;;  %v2121_v24 = vsel %vm8075_vm6, %v2081_v46, 0.0 }
 0x267   : > { %5581 = vst.msk [vmem:[#allocation2 + $0x20] sm:$0xff] %vm9375_vm12, %v5573_v55  ;;  %vm9379_vm12 = vmmov %vm9376_vm7  ;;  %v5568_v48 = vadd.f32 %v5544_v10, %v8041_v27  ;;  %v5575_v57 = vadd.f32 %v5567_v29, %v5559_v54  ;;  %vm9380_vm7 = vnez %v9275_v51  ;;  %v5552_v50 = vld [vmem:[#allocation2 + $0x39] sm:$0xff]  ;;  %vm9383_vm11 = vnez %v9260_v62  ;;  %v5553_v29 = vld [vmem:[#allocation2 + $0x41] sm:$0xff] }
 0x268   : > { %6481 = vmatmul.mubr.msk.bf16.gmra.mrb[16].mxu0 %vm9379_vm12, %v2319_v49  ;;  %v5547_v36 = vsel %vm9380_vm7, %v5539_v14, 0.0  ;;  %vm9381_vm2 = vmmov %vm9379_vm12  ;;  %vm9382_vm12 = vnez %v9258_v58  ;;  %v5546_v32 = vsel %vm9383_vm11, %v5538_v16, 0.0  ;;  %v2124_v10 = vsel %vm8157_vm0, %v2084_v22, 0.0  ;;  %v9388_v22 = vld [vmem:[#allocation52_spill] sm:$0xff] }
 0x269   : > { %6486 = vmatprep.mubr.msk.bf16.mxu0 %vm9381_vm2, %v2311_v20  ;;  %v5571_v13 = vadd.f32 %v5547_v36, %v8058_v61  ;;  %v5545_v49 = vsel %vm9382_vm12, %v5537_v30, 0.0  ;;  %vm9384_vm14 = vcmask 130048   ;;  %vm9385_vm3 = vnez %v9277_v53  ;;  %v2083_v30 = vld [vmem:[#allocation3 + $0x35] sm:$0xff]  ;;  %v5589_v36 = vld [vmem:[#allocation2 + $0x18] sm:$0xff] }
 0x26a   : > { %5583 = vst.msk [vmem:[#allocation2 + $0x30] sm:$0xff] %vm9384_vm14, %v5575_v57  ;;  %v5563_v20 = vsel %vm9385_vm3, %v5555_v43, 0.0  ;;  %vm9386_vm2 = vnez %v9254_v47  ;;  %v5569_v54 = vadd.f32 %v5545_v49, %v8083_v23  ;;  %v5570_v14 = vadd.f32 %v5546_v32, %v8023_v56  ;;  %5630 = vst.msk [vmem:[#allocation2 + $0x18] sm:$0xff] %vm9384_vm14, %v9390_v19 }
 0x26b   : > { %v5560_v46 = vsel %vm9386_vm2, %v5552_v50, 0.0  ;;  %vm9387_vm6 = vnez %v9262_v1  ;;  %v8198_v60 = vadd.f32 %v5571_v13, %v5563_v20  ;;  %vm9389_vm0 = vnez %v9388_v22  ;;  %v2086_v20 = vld [vmem:[#allocation3 + $0x4d] sm:$0xff] }
 0x26c   : > { %v5562_v16 = vsel %vm9387_vm6, %v5554_v34, 0.0  ;;  %v5561_v25 = vsel %vm9389_vm0, %v5553_v29, 0.0  ;;  %v8202_v59 = vadd.f32 %v5568_v48, %v5560_v46  ;;  %v5599_v43 = vadd.f32 %v5589_v36, %v5573_v55  ;;  %v5591_v13 = vld [vmem:[#allocation2 + $0x28] sm:$0xff]  ;;  %vm9396_vm0 = vmmov %vm9384_vm14  ;;  %v6058_v46 = vld [vmem:[%s7271_s20 + $0x6] sm:$0x3] }
 0x26d   : > { %v5577_v50 = vadd.f32 %v5569_v54, %v5561_v25  ;;  %v8206_v49 = vadd.f32 %v5570_v14, %v5562_v16  ;;  %vm9391_vm3 = vcmp.le.f32.partialorder %v7832_v17, 7.0  ;;  %vm9392_vm4 = vcmp.ge.f32.partialorder %v7832_v17, 0.0  ;;  %5587 = vst.msk [vmem:[#allocation2 + $0x50] sm:$0xff] %vm9396_vm0, %v8198_v60  ;;  %vm9397_vm14 = vmmov %vm9396_vm0  ;;  %v9404_v29 = vld [vmem:[#allocation36_spill] sm:$0xff] }
 0x26e   : > { %vm8212_vm10 = vmand %vm9392_vm4, %vm9391_vm3  ;;  %v9393_v34 = vmov 0  ;;  %5584 = vst.msk [vmem:[#allocation2 + $0x38] sm:$0xff] %vm9397_vm14, %v8202_v59  ;;  %v2312_v55 = vpack.c.bf16 %v2122_v6, %v2121_v24  ;;  %vm9398_vm2 = vcmask 1041408   ;;  %vm9399_vm3 = vcmp.le.f32.partialorder %v7852_v15, 7.0  ;;  %v2085_v24 = vld [vmem:[#allocation3 + $0x45] sm:$0xff]  ;;  %v2175_v54 = vld [vmem:[#allocation3 + $0x17] sm:$0xff] }
 0x26f   : > { %v9394_v34 = vsel %vm8212_vm10, 4294967295, %v9393_v34  ;;  %v2502_v25 = vsel %vm9398_vm2, %v8036_v39, 0  ;;  %v2123_v17 = vsel %vm8212_vm10, %v2083_v30, 0.0  ;;  %vm9400_vm4 = vcmp.ge.f32.partialorder %v7852_v15, 0.0  ;;  %5632 = vst.msk [vmem:[#allocation2 + $0x28] sm:$0xff] %vm9396_vm0, %v9404_v29  ;;  %vm9405_vm14 = vmmov %vm9396_vm0  ;;  %v5590_v30 = vld [vmem:[#allocation2 + $0x20] sm:$0xff] }
 0x270   : > { %9395 = vst [vmem:[#allocation52_spill] sm:$0xff] %v9394_v34  ;;  %vm8229_vm6 = vmand %vm9400_vm4, %vm9399_vm3  ;;  %v9401_v48 = vmov 0  ;;  %v5607_v32 = vadd.f32 %v5599_v43, %v5591_v13  ;;  %v5601_v39 = vadd.f32 %v5591_v13, %v5575_v57  ;;  %v2313_v6 = vpack.c.bf16 %v2124_v10, %v2123_v17  ;;  %v2176_v57 = vld [vmem:[#allocation3 + $0x1f] sm:$0xff]  ;;  %v2177_v10 = vld [vmem:[#allocation3 + $0x27] sm:$0xff] }
 0x271   : > { %v9402_v48 = vsel %vm8229_vm6, 4294967295, %v9401_v48  ;;  %5585 = vst.msk [vmem:[#allocation2 + $0x40] sm:$0xff] %vm9405_vm14, %v5577_v50  ;;  %vm9406_vm5 = vmmov %vm9396_vm0  ;;  %vm9407_vm2 = vcmask 31744   ;;  %vm9408_vm3 = vcmp.le.f32.partialorder %v8018_v31, 7.0  ;;  %vm9409_vm4 = vcmp.ge.f32.partialorder %v8018_v31, 0.0  ;;  %v5592_v36 = vld [vmem:[#allocation2 + $0x30] sm:$0xff] }
 0x272   : > { %9403 = vst [vmem:[#allocation37_spill] sm:$0xff] %v9402_v48  ;;  %5586 = vst.msk [vmem:[#allocation2 + $0x48] sm:$0xff] %vm9406_vm5, %v8206_v49  ;;  %6487 = vmatmul.mubr.msk.bf16.vlgmr.msra.gmra.mrb[12].mxu0 %vm9407_vm2, %v2312_v55  ;;  %v9410_v15 = vmov 0  ;;  %v5615_v14 = vmul.f32 %v5607_v32, %v7816_v45  ;;  %v2125_v16 = vsel %vm8229_vm6, %v2085_v24, 0.0  ;;  %vm9414_vm0 = vcmask 1041408   ;;  %v2178_v43 = vld [vmem:[#allocation3 + $0x2f] sm:$0xff] }
 0x273   : > { %vm8244_vm10 = vmand %vm9409_vm4, %vm9408_vm3  ;;  %6495 = vmatpush3.bf16.msra.mxu0 %v2502_v25  ;;  %v2180_v13 = vld [vmem:[#allocation3 + $0x3f] sm:$0xff]  ;;  %v9415_v55 = vld [vmem:[#allocation39_spill] sm:$0xff]  ;;  %v2183_v24 = vsel %vm7624_vm8, %v2175_v54, 0.0  ;;  %v2185_v33 = vsel %vm9351_vm15, %v2177_v10, 0.0 }
 0x274   : > { %v9411_v15 = vsel %vm8244_vm10, 4294967295, %v9410_v15  ;;  %vm9413_vm5 = vmmov %vm9407_vm2  ;;  %v2126_v31 = vsel %vm8244_vm10, %v2086_v20, 0.0  ;;  %7004 = vmatprep.subr.msk.bf16.mxu0 %vm9414_vm0, %v6058_v46  ;;  %5631 = vst.msk [vmem:[#allocation2 + $0x20] sm:$0xff] %vm9405_vm14, %v9415_v55  ;;  %v8258_v25 = vadd.f32 %v5615_v14, %v7960_v21  ;;  %v9416_v17 = vld [vmem:[#allocation38_spill] sm:$0xff]  ;;  %v2184_v20 = vsel %vm7678_vm9, %v2176_v57, 0.0  ;;  %v2179_v45 = vld [vmem:[#allocation3 + $0x37] sm:$0xff] }
 0x275   : > { %9412 = vst [vmem:[#allocation36_spill] sm:$0xff] %v9411_v15  ;;  %6490 = vmatprep.mubr.msk.bf16.mxu0 %vm9413_vm5, %v2313_v6  ;;  %vm9417_vm2 = vmmov %vm9405_vm14  ;;  %v2181_v32 = vld [vmem:[#allocation3 + $0x47] sm:$0xff]  ;;  %v2182_v6 = vld [vmem:[#allocation3 + $0x4f] sm:$0xff]  ;;  %v2314_v34 = vpack.c.bf16 %v2126_v31, %v2125_v16  ;;  %v2186_v21 = vsel %vm7691_vm1, %v2178_v43, 0.0  ;;  %v2188_v14 = vsel %vm9382_vm12, %v2180_v13, 0.0  ;;  %v2483_v1 = vpack.c.bf16 %v2184_v20, %v2183_v24 }
 0x276   : > { %5633 = vst.msk [vmem:[#allocation2 + $0x30] sm:$0xff] %vm9417_vm2, %v9416_v17  ;;  %v5596_v15 = vld [vmem:[#allocation2 + $0x50] sm:$0xff]  ;;  %v5593_v48 = vld [vmem:[#allocation2 + $0x38] sm:$0xff]  ;;  %vm9419_vm3 = vmmov %vm9417_vm2  ;;  %v2189_v16 = vsel %vm9383_vm11, %v2181_v32, 0.0  ;;  %v2190_v10 = vsel %vm9380_vm7, %v2182_v6, 0.0  ;;  %vm9426_vm14 = vcmask 1041408   ;;  %v2484_v6 = vpack.c.bf16 %v2186_v21, %v2185_v33 }
 0x277   : > { %5637 = vst.msk [vmem:[#allocation2 + $0x50] sm:$0xff] %vm9419_vm3, %v9418_v26  ;;  %v5603_v4 = vadd.f32 %v5593_v48, %v5577_v50  ;;  %v5609_v57 = vadd.f32 %v5601_v39, %v5593_v48  ;;  %vm9421_vm4 = vmmov %vm9417_vm2  ;;  %v8280_v31 = vld [vmem:[#allocation2 + $0x10] sm:$0xff]  ;;  %v9422_v43 = vld [vmem:[#allocation43_spill] sm:$0xff]  ;;  %v2596_v50 = vsel %vm9426_vm14, %v6058_v46, 0  ;;  %v2187_v48 = vsel %vm9377_vm13, %v2179_v45, 0.0 }
 0x278   : > { %v5594_v54 = vld [vmem:[#allocation2 + $0x40] sm:$0xff]  ;;  %5634 = vst.msk [vmem:[#allocation2 + $0x38] sm:$0xff] %vm9421_vm4, %v9420_v42  ;;  %vm9423_vm5 = vmmov %vm9417_vm2  ;;  %v2485_v53 = vpack.c.bf16 %v2188_v14, %v2187_v48  ;;  %v8292_v26 = vpack.c.bf16 %v2190_v10, %v2189_v16  ;;  %v5600_v24 = vadd.f32 %v5590_v30, %v8137_v2  ;;  %v5602_v46 = vadd.f32 %v5592_v36, %v8202_v59 }
 0x279   : > { %v5595_v11 = vld [vmem:[#allocation2 + $0x48] sm:$0xff]  ;;  %5635 = vst.msk [vmem:[#allocation2 + $0x40] sm:$0xff] %vm9423_vm5, %v9422_v43  ;;  %vm9425_vm0 = vmmov %vm9417_vm2  ;;  %v5617_v32 = vmul.f32 %v5609_v57, %v7862_v12  ;;  %vm9427_vm2 = vcmask 31744   ;;  %v5604_v33 = vadd.f32 %v5594_v54, %v8206_v49  ;;  %v8306_v57 = vld [vmem:[#allocation2 + $0x58] sm:$0xff]  ;;  %v5729_v16 = vmax.f32 %v8258_v25, 0.0 }
 0x27a   : > { %v9424_v13 = vld [vmem:[#allocation40_spill] sm:$0xff]  ;;  %v5611_v39 = vadd.f32 %v5603_v4, %v5595_v11  ;;  %6491 = vmatmul.mubr.msk.bf16.gmra.mrb[16].mxu0 %vm9427_vm2, %v2314_v34  ;;  %vm9428_vm3 = vmmov %vm9427_vm2  ;;  %v5605_v34 = vadd.f32 %v5595_v11, %v8198_v60  ;;  %v5608_v14 = vadd.f32 %v5600_v24, %v5592_v36  ;;  %v9430_v36 = vld [vmem:[#allocation58_spill] sm:$0xff]  ;;  %vm9431_vm4 = vnez %v9256_v52 }
 0x27b   : > { %5636 = vst.msk [vmem:[#allocation2 + $0x48] sm:$0xff] %vm9425_vm0, %v9424_v13  ;;  %6496 = vmatprep.mubr.msk.bf16.mxu0 %vm9428_vm3, %v2483_v1  ;;  %v5598_v13 = vadd.f32 %v8280_v31, %v8111_v63  ;;  %v8300_v4 = vadd.f32 %v5617_v32, %v7952_v37  ;;  %v5610_v63 = vadd.f32 %v5602_v46, %v5594_v54  ;;  %v9429_v11 = vld [vmem:[#allocation56_spill] sm:$0xff]  ;;  %vm9436_vm14 = vmmov %vm9427_vm2  ;;  %vm9439_vm3 = vcmask 1041408  }
 0x27c   : > { %v5619_v45 = vmul.f32 %v5611_v39, %v7917_v5  ;;  %v5612_v37 = vadd.f32 %v5604_v33, %v5596_v15  ;;  %v5616_v60 = vmul.f32 %v5608_v14, %v9429_v11  ;;  %v5613_v25 = vadd.f32 %v5605_v34, %v8306_v57  ;;  %v9432_v24 = vld [vmem:[#allocation60_spill] sm:$0xff] }
 0x27d   : > { %v5641_v20 = vld [vmem:[#allocation2 + $0x2f] sm:$0xff]  ;;  %v5606_v21 = vadd.f32 %v5598_v13, %v5590_v30  ;;  %v5731_v30 = vmax.f32 %v8300_v4, 0.0  ;;  %v5618_v54 = vmul.f32 %v5610_v63, %v9430_v36  ;;  %vm9433_vm5 = vnez %v9254_v47 }
 0x27e   : > { %v5649_v1 = vsel %vm7691_vm1, %v5641_v20, 0.0  ;;  %v5627_v59 = vadd.f32 %v5619_v45, %v8083_v23  ;;  %v5620_v46 = vmul.f32 %v5612_v37, %v9432_v24  ;;  %vm9434_vm0 = vnez %v9388_v22 }
 0x27f   : > { %v5673_v2 = vadd.f32 %v5649_v1, %v9416_v17  ;;  %v5642_v10 = vld [vmem:[#allocation2 + $0x37] sm:$0xff]  ;;  %v5614_v49 = vmul.f32 %v5606_v21, %v7797_v8  ;;  %v8332_v21 = vld [vmem:[%s7271_s20 + $0x8] sm:$0x3]  ;;  %vm9458_vm1 = vcmask 130048  }
 0x280   : > { %v5657_v48 = vld [vmem:[#allocation2 + $0x31] sm:$0xff]  ;;  %v5643_v13 = vld [vmem:[#allocation2 + $0x3f] sm:$0xff]  ;;  %v5650_v23 = vsel %vm9377_vm13, %v5642_v10, 0.0 }
 0x281   : > { %v5658_v32 = vld [vmem:[#allocation2 + $0x39] sm:$0xff]  ;;  %v5665_v15 = vsel %vm9431_vm4, %v5657_v48, 0.0  ;;  %v5651_v20 = vsel %vm9382_vm12, %v5643_v13, 0.0  ;;  %v5674_v1 = vadd.f32 %v5650_v23, %v9420_v42  ;;  %v5622_v37 = vadd.f32 %v5614_v49, %v7937_v18  ;;  %v5640_v48 = vld [vmem:[#allocation2 + $0x27] sm:$0xff] }
 0x282   : > { %v8315_v39 = vld [vmem:[#allocation2 + $0x4f] sm:$0xff]  ;;  %v5659_v4 = vld [vmem:[#allocation2 + $0x41] sm:$0xff]  ;;  %v5666_v33 = vsel %vm9433_vm5, %v5658_v32, 0.0  ;;  %v5675_v14 = vadd.f32 %v5651_v20, %v9422_v43  ;;  %v8337_v63 = vadd.f32 %v5673_v2, %v5665_v15  ;;  %6497 = vmatmul.mubr.msk.bf16.vlgmr.msra.gmra.mrb[12].mxu0 %vm9436_vm14, %v2484_v6  ;;  %v5626_v23 = vadd.f32 %v5618_v54, %v8041_v27 }
 0x283   : > { %v5653_v45 = vsel %vm9380_vm7, %v8315_v39, 0.0  ;;  %v5667_v34 = vsel %vm9434_vm0, %v5659_v4, 0.0  ;;  %v5639_v10 = vld [vmem:[#allocation2 + $0x1f] sm:$0xff]  ;;  %v8341_v13 = vadd.f32 %v5674_v1, %v5666_v33  ;;  %6505 = vmatpush3.bf16.msra.mxu0 %v2596_v50  ;;  %6500 = vmatprep.mubr.msk.bf16.mxu0 %vm9427_vm2, %v2485_v53  ;;  %v5624_v39 = vadd.f32 %v5616_v60, %v7925_v40  ;;  %v5656_v20 = vld [vmem:[#allocation2 + $0x29] sm:$0xff]  ;;  %v5638_v53 = vld [vmem:[#allocation2 + $0x17] sm:$0xff] }
 0x284   : > { %9435 = vst [vmem:[#allocation39_spill] sm:$0xff] %v8337_v63  ;;  %v5733_v32 = vmax.f32 %v5627_v59, 0.0  ;;  %v5655_v4 = vld [vmem:[#allocation2 + $0x21] sm:$0xff]  ;;  %v8346_v2 = vadd.f32 %v5675_v14, %v5667_v34  ;;  %7005 = vmatprep.subr.msk.bf16.mxu0 %vm9439_vm3, %v8332_v21  ;;  %v5728_v18 = vmax.f32 %v5622_v37, 0.0  ;;  %v5621_v6 = vmul.f32 %v5613_v25, %v7990_v28  ;;  %v5654_v60 = vld [vmem:[#allocation2 + $0x19] sm:$0xff]  ;;  %v2192_v15 = vld [vmem:[#allocation3 + $0x20] sm:$0xff] }
 0x285   : > { %9437 = vst [vmem:[#allocation38_spill] sm:$0xff] %v8341_v13  ;;  %v5628_v49 = vadd.f32 %v5620_v46, %v8023_v56  ;;  %vm9440_vm14 = vcmask 130048   ;;  %v5730_v40 = vmax.f32 %v5624_v39, 0.0  ;;  %v5732_v27 = vmax.f32 %v5626_v23, 0.0  ;;  %v5644_v54 = vld [vmem:[#allocation2 + $0x47] sm:$0xff] }
 0x286   : > { %9438 = vst [vmem:[#allocation41_spill] sm:$0xff] %v8346_v2  ;;  %5689 = vst.msk [vmem:[#allocation2 + $0x30] sm:$0xff] %vm9440_vm14, %v8337_v63  ;;  %v5647_v50 = vsel %vm7678_vm9, %v5639_v10, 0.0  ;;  %v5648_v59 = vsel %vm9351_vm15, %v5640_v48, 0.0  ;;  %v8360_v25 = vpack.c.bf16 %v5729_v16, %v5728_v18  ;;  %v5629_v56 = vadd.f32 %v5621_v6, %v8058_v61  ;;  %v5661_v16 = vld [vmem:[#allocation2 + $0x51] sm:$0xff]  ;;  %v2191_v10 = vld [vmem:[#allocation3 + $0x18] sm:$0xff] }
 0x287   : > { %vm9441_vm2 = vmmov %vm9440_vm14  ;;  %v5734_v46 = vmax.f32 %v5628_v49, 0.0  ;;  %vm9443_vm3 = vnez %v9247_v38  ;;  %v8367_v1 = vpack.c.bf16 %v5731_v30, %v5730_v40  ;;  %v8369_v34 = vpack.c.bf16 %v5733_v32, %v5732_v27  ;;  %v5660_v30 = vld [vmem:[#allocation2 + $0x49] sm:$0xff]  ;;  %v9454_v27 = vld [vmem:[#allocation42_spill] sm:$0xff] }
 0x288   : > { %5690 = vst.msk [vmem:[#allocation2 + $0x38] sm:$0xff] %vm9441_vm2, %v8341_v13  ;;  %9442 = vst [vmem:[#allocation43_spill] sm:$0xff] %v8360_v25  ;;  %v5663_v33 = vsel %vm9443_vm3, %v5655_v4, 0.0  ;;  %v5671_v37 = vadd.f32 %v5647_v50, %v9415_v55  ;;  %v5735_v48 = vmax.f32 %v5629_v56, 0.0  ;;  %v5672_v61 = vadd.f32 %v5648_v59, %v9404_v29  ;;  %v9455_v59 = vld [vmem:[#allocation54_spill] sm:$0xff] }
 0x289   : > { %vm9444_vm14 = vmmov %vm9441_vm2  ;;  %9445 = vst [vmem:[#allocation76_spill] sm:$0xff] %v8367_v1  ;;  %vm9447_vm2 = vnez %v9239_v9  ;;  %v5646_v39 = vsel %vm7624_vm8, %v5638_v53, 0.0  ;;  %vm9448_vm7 = vnez %v9235_v3  ;;  %v2577_v4 = vpack.c.bf16 %v2192_v15, %v2191_v10  ;;  %v9453_v53 = vld [vmem:[#allocation40_spill] sm:$0xff]  ;;  %v9459_v15 = vld [vmem:[#allocation51_spill] sm:$0xff] }
 0x28a   : > { %5691 = vst.msk [vmem:[#allocation2 + $0x40] sm:$0xff] %vm9444_vm14, %v8346_v2  ;;  %9446 = vst [vmem:[#allocation77_spill] sm:$0xff] %v8369_v34  ;;  %v5664_v14 = vsel %vm9447_vm2, %v5656_v20, 0.0  ;;  %v5662_v23 = vsel %vm9448_vm7, %v5654_v60, 0.0  ;;  %v8379_v32 = vadd.f32 %v5671_v37, %v5663_v33  ;;  %v5670_v18 = vadd.f32 %v5646_v39, %v9390_v19  ;;  %v2193_v37 = vld [vmem:[#allocation3 + $0x28] sm:$0xff] }
 0x28b   : > { %v5652_v20 = vsel %vm9383_vm11, %v5644_v54, 0.0  ;;  %vm9450_vm14 = vcmask 31744   ;;  %v8386_v6 = vpack.c.bf16 %v5735_v48, %v5734_v46  ;;  %v8388_v49 = vadd.f32 %v5672_v61, %v5664_v14  ;;  %vm9464_vm15 = vmmov %vm9458_vm1  ;;  %v2196_v14 = vld [vmem:[#allocation3 + $0x40] sm:$0xff]  ;;  %v2195_v48 = vld [vmem:[#allocation3 + $0x38] sm:$0xff] }
 0x28c   : > { %9449 = vst [vmem:[#allocation78_spill] sm:$0xff] %v8379_v32  ;;  %6501 = vmatmul.mubr.msk.bf16.gmra.mrb[16].mxu0 %vm9450_vm14, %v8292_v26  ;;  %v5676_v40 = vadd.f32 %v5652_v20, %v9453_v53  ;;  %v5677_v50 = vadd.f32 %v5653_v45, %v9454_v27  ;;  %vm9456_vm13 = vnez %v9455_v59  ;;  %vm9457_vm12 = vmmov %vm9450_vm14  ;;  %v5678_v54 = vadd.f32 %v5670_v18, %v5662_v23  ;;  %v2194_v45 = vld [vmem:[#allocation3 + $0x30] sm:$0xff]  ;;  %v6068_v39 = vld [vmem:[%s7271_s20 + $0xa] sm:$0x3] }
 0x28d   : > { %9451 = vst [vmem:[#allocation79_spill] sm:$0xff] %v8386_v6  ;;  %9452 = vst [vmem:[#allocation80_spill] sm:$0xff] %v8388_v49  ;;  %v5669_v60 = vsel %vm9456_vm13, %v5661_v16, 0.0  ;;  %6506 = vmatprep.mubr.msk.bf16.mxu0 %vm9457_vm12, %v2577_v4  ;;  %vm9460_vm11 = vnez %v9459_v15  ;;  %v2578_v16 = vpack.c.bf16 %v2194_v45, %v2193_v37  ;;  %vm9466_vm8 = vcmask 1041408   ;;  %v2200_v23 = vld [vmem:[#allocation3 + $0x21] sm:$0xff]  ;;  %v2203_v45 = vld [vmem:[#allocation3 + $0x39] sm:$0xff] }
 0x28e   : > { %5687 = vst.msk [vmem:[#allocation2 + $0x20] sm:$0xff] %vm9458_vm1, %v8379_v32  ;;  %v5668_v26 = vsel %vm9460_vm11, %v5660_v30, 0.0  ;;  %vm9461_vm14 = vmmov %vm9458_vm1  ;;  %v5685_v46 = vadd.f32 %v5677_v50, %v5669_v60  ;;  %v8404_v33 = vadd.f32 %v5678_v54, %v8280_v31  ;;  %v2690_v10 = vsel %vm9466_vm8, %v8332_v21, 0  ;;  %v2199_v31 = vld [vmem:[#allocation3 + $0x19] sm:$0xff]  ;;  %v2198_v30 = vld [vmem:[#allocation3 + $0x50] sm:$0xff] }
 0x28f   : > { %5688 = vst.msk [vmem:[#allocation2 + $0x28] sm:$0xff] %vm9461_vm14, %v8388_v49  ;;  %v8401_v56 = vadd.f32 %v5676_v40, %v5668_v26  ;;  %vm9465_vm12 = vmmov %vm9458_vm1  ;;  %v2579_v61 = vpack.c.bf16 %v2196_v14, %v2195_v48  ;;  %vm9467_vm14 = vcmask 31744   ;;  %v2207_v18 = vsel %vm9448_vm7, %v2199_v31, 0.0  ;;  %v2197_v40 = vld [vmem:[#allocation3 + $0x48] sm:$0xff]  ;;  %v2202_v26 = vld [vmem:[#allocation3 + $0x31] sm:$0xff] }
 0x290   : > { %9463 = vst [vmem:[#allocation42_spill] sm:$0xff] %v8404_v33  ;;  %5686 = vst.msk [vmem:[#allocation2 + $0x18] sm:$0xff] %vm9464_vm15, %v5678_v54  ;;  %v2208_v21 = vsel %vm9443_vm3, %v2200_v23, 0.0  ;;  %v2580_v50 = vpack.c.bf16 %v2198_v30, %v2197_v40  ;;  %v2204_v14 = vld [vmem:[#allocation3 + $0x41] sm:$0xff]  ;;  %v2201_v37 = vld [vmem:[#allocation3 + $0x29] sm:$0xff]  ;;  %v9494_v28 = vmov 0 }
 0x291   : > { %9462 = vst [vmem:[#allocation40_spill] sm:$0xff] %v8401_v56  ;;  %5693 = vst.msk [vmem:[#allocation2 + $0x50] sm:$0xff] %vm9465_vm12, %v5685_v46  ;;  %v2671_v54 = vpack.c.bf16 %v2208_v21, %v2207_v18  ;;  %v9474_v48 = vld [vmem:[#allocation46_spill] sm:$0xff]  ;;  %v2212_v31 = vsel %vm9434_vm0, %v2204_v14, 0.0  ;;  %v2209_v23 = vsel %vm9447_vm2, %v2201_v37, 0.0  ;;  %v2206_v40 = vld [vmem:[#allocation3 + $0x51] sm:$0xff] }
 0x292   : > { %5692 = vst.msk [vmem:[#allocation2 + $0x48] sm:$0xff] %vm9458_vm1, %v8401_v56  ;;  %vm9468_vm9 = vmmov %vm9467_vm14  ;;  %v6073_v21 = vld [vmem:[%s7271_s20 + $0xc] sm:$0x3]  ;;  %v9479_v14 = vmov 0  ;;  %v2272_v36 = vadd.f32 3.0, %v9474_v48 }
 0x293   : > { %vm9469_vm15 = vmmov %vm9466_vm8 }
 0x294   : > { %6507 = vmatmul.mubr.msk.bf16.vlgmr.msra.gmra.mrb[12].mxu0 %vm9467_vm14, %v2578_v16  ;;  %vm9471_vm8 = vmmov %vm9468_vm9  ;;  %v9473_v16 = vld [vmem:[#allocation44_spill] sm:$0xff] }
 0x295   : > { %6515 = vmatpush3.bf16.msra.mxu0 %v2690_v10  ;;  %6510 = vmatprep.mubr.msk.bf16.mxu0 %vm9468_vm9, %v2579_v61  ;;  %vm9472_vm9 = vmmov %vm9471_vm8  ;;  %v2223_v10 = vadd.f32 2.0, %v9473_v16  ;;  %v2224_v61 = vadd.f32 2.0, %v9474_v48  ;;  %v2221_v48 = vld [vmem:[#allocation3 + $0x4a] sm:$0xff] }
 0x296   : > { %7006 = vmatprep.subr.msk.bf16.mxu0 %vm9469_vm15, %v6068_v39  ;;  %vm9475_vm12 = vmmov %vm9469_vm15 }
 0x297   : > { %vm2231_vm1 = vcmp.ge.f32.partialorder %v2223_v10, 0.0  ;;  %vm2239_vm14 = vcmp.le.f32.partialorder %v2223_v10, 7.0  ;;  %vm9476_vm15 = vmmov %vm9471_vm8 }
 0x298   : > { %vm8440_vm2 = vmand %vm2231_vm1, %vm2239_vm14 }
 0x299   : > { %v5701_v4 = vld [vmem:[#allocation2 + $0x48] sm:$0xff]  ;;  %v9480_v14 = vsel %vm8440_vm2, 4294967295, %v9479_v14 }
 0x29a   : > { %v5711_v20 = vadd.f32 %v5701_v4, %v5685_v46  ;;  %v2210_v46 = vsel %vm9431_vm4, %v2202_v26, 0.0  ;;  %v2784_v4 = vsel %vm9475_vm12, %v6068_v39, 0  ;;  %v9478_v26 = vld [vmem:[#allocation47_spill] sm:$0xff]  ;;  %v9481_v39 = vld [vmem:[#allocation48_spill] sm:$0xff] }
 0x29b   : > { %v2672_v30 = vpack.c.bf16 %v2210_v46, %v2209_v23  ;;  %v2227_v37 = vadd.f32 2.0, %v9481_v39  ;;  %v2214_v46 = vsel %vm9456_vm13, %v2206_v40, 0.0  ;;  %v2218_v40 = vld [vmem:[#allocation3 + $0x32] sm:$0xff] }
 0x29c   : > { %v8421_v60 = vadd.f32 %v5711_v20, %v8306_v57  ;;  %6511 = vmatmul.mubr.msk.bf16.gmra.mrb[16].mxu0 %vm9471_vm8, %v2580_v50  ;;  %v2211_v57 = vsel %vm9433_vm5, %v2203_v45, 0.0  ;;  %v2205_v20 = vld [vmem:[#allocation3 + $0x49] sm:$0xff]  ;;  %vm2232_vm8 = vcmp.ge.f32.partialorder %v2224_v61, 0.0  ;;  %vm9477_vm5 = vmmov %vm9476_vm15  ;;  %v2215_v50 = vld [vmem:[#allocation3 + $0x1a] sm:$0xff]  ;;  %v2226_v45 = vadd.f32 2.0, %v9478_v26 }
 0x29d   : > { %6516 = vmatprep.mubr.msk.bf16.mxu0 %vm9472_vm9, %v2671_v54  ;;  %v2673_v18 = vpack.c.bf16 %v2212_v31, %v2211_v57  ;;  %vm2240_vm9 = vcmp.le.f32.partialorder %v2224_v61, 7.0  ;;  %v2216_v54 = vld [vmem:[#allocation3 + $0x22] sm:$0xff]  ;;  %v2213_v10 = vsel %vm9460_vm11, %v2205_v20, 0.0  ;;  %v9482_v61 = vmov 0  ;;  %v9484_v57 = vld [vmem:[#allocation49_spill] sm:$0xff] }
 0x29e   : > { %9470 = vst [vmem:[#allocation54_spill] sm:$0xff] %v8421_v60  ;;  %v2228_v31 = vadd.f32 2.0, %v9484_v57  ;;  %v2255_v23 = vsel %vm8440_vm2, %v2215_v50, 0.0  ;;  %vm2242_vm1 = vcmp.le.f32.partialorder %v2226_v45, 7.0  ;;  %v2674_v20 = vpack.c.bf16 %v2214_v46, %v2213_v10  ;;  %v2220_v10 = vld [vmem:[#allocation3 + $0x42] sm:$0xff]  ;;  %v9491_v46 = vld [vmem:[#allocation53_spill] sm:$0xff] }
 0x29f   : > { %vm2235_vm14 = vcmp.ge.f32.partialorder %v2227_v37, 0.0  ;;  %v9487_v50 = vmov 0 }
 0x2a0   : > { %vm2244_vm13 = vcmp.le.f32.partialorder %v2228_v31, 7.0 }
 0x2a4   : > { %6517 = vmatmul.mubr.msk.bf16.vlgmr.msra.gmra.mrb[12].mxu0 %vm9476_vm15, %v2672_v30  ;;  %vm8450_vm15 = vmand %vm2232_vm8, %vm2240_vm9  ;;  %vm9486_vm8 = vcmask 31744   ;;  %vm2236_vm9 = vcmp.ge.f32.partialorder %v2228_v31, 0.0  ;;  %v2271_v31 = vadd.f32 3.0, %v9473_v16 }
 0x2a5   : > { %6525 = vmatpush3.bf16.msra.mxu0 %v2784_v4  ;;  %6520 = vmatprep.mubr.msk.bf16.mxu0 %vm9477_vm5, %v2673_v18  ;;  %v9483_v61 = vsel %vm8450_vm15, 4294967295, %v9482_v61  ;;  %v2256_v30 = vsel %vm8450_vm15, %v2216_v54, 0.0  ;;  %v9485_v4 = vld [vmem:[#allocation45_spill] sm:$0xff]  ;;  %vm2234_vm5 = vcmp.ge.f32.partialorder %v2226_v45, 0.0  ;;  %v9489_v54 = vld [vmem:[#allocation50_spill] sm:$0xff]  ;;  %vm9490_vm15 = vmmov %vm9486_vm8 }
 0x2a6   : > { %7007 = vmatprep.subr.msk.bf16.mxu0 %vm9475_vm12, %v6073_v21  ;;  %v2225_v18 = vadd.f32 2.0, %v9485_v4  ;;  %v2765_v5 = vpack.c.bf16 %v2256_v30, %v2255_v23  ;;  %vm2243_vm12 = vcmp.le.f32.partialorder %v2227_v37, 7.0  ;;  %vm8461_vm4 = vmand %vm2234_vm5, %vm2242_vm1  ;;  %v2229_v60 = vadd.f32 2.0, %v9489_v54  ;;  %v2219_v45 = vld [vmem:[#allocation3 + $0x3a] sm:$0xff]  ;;  %v2217_v30 = vld [vmem:[#allocation3 + $0x2a] sm:$0xff] }
 0x2a7   : > { %v9488_v50 = vsel %vm8461_vm4, 4294967295, %v9487_v50  ;;  %v2230_v23 = vadd.f32 2.0, %v9491_v46  ;;  %vm8476_vm5 = vmand %vm2236_vm9, %vm2244_vm13  ;;  %vm2287_vm9 = vcmp.le.f32.partialorder %v2271_v31, 7.0 }
 0x2a8   : > { %vm2233_vm11 = vcmp.ge.f32.partialorder %v2225_v18, 0.0  ;;  %vm2241_vm0 = vcmp.le.f32.partialorder %v2225_v18, 7.0  ;;  %v2258_v18 = vsel %vm8461_vm4, %v2218_v40, 0.0  ;;  %v9495_v28 = vsel %vm8476_vm5, 4294967295, %v9494_v28 }
 0x2a9   : > { %v2260_v24 = vsel %vm8476_vm5, %v2220_v10, 0.0  ;;  %vm2237_vm1 = vcmp.ge.f32.partialorder %v2229_v60, 0.0  ;;  %vm2245_vm13 = vcmp.le.f32.partialorder %v2229_v60, 7.0  ;;  %vm9499_vm4 = vcmask 31744  }
 0x2aa   : > { %vm2280_vm5 = vcmp.ge.f32.partialorder %v2272_v36, 0.0  ;;  %vm9502_vm2 = vmmov %vm9499_vm4  ;;  %v9503_v60 = vmov 0  ;;  %v2274_v10 = vadd.f32 3.0, %v9478_v26 }
 0x2ac   : > { %6521 = vmatmul.mubr.msk.bf16.gmra.mrb[16].mxu0 %vm9486_vm8, %v2674_v20  ;;  %vm8469_vm8 = vmand %vm2235_vm14, %vm2243_vm12  ;;  %v9492_v20 = vmov 0  ;;  %vm9498_vm14 = vcmask 1041408   ;;  %vm2279_vm12 = vcmp.ge.f32.partialorder %v2271_v31, 0.0  ;;  %v2276_v31 = vadd.f32 3.0, %v9484_v57 }
 0x2ad   : > { %6526 = vmatprep.mubr.msk.bf16.mxu0 %vm9490_vm15, %v2765_v5  ;;  %v9493_v20 = vsel %vm8469_vm8, 4294967295, %v9492_v20  ;;  %vm8480_vm15 = vmand %vm2233_vm11, %vm2241_vm0  ;;  %v9496_v5 = vmov 0  ;;  %v2259_v37 = vsel %vm8469_vm8, %v2219_v45, 0.0  ;;  %v2878_v2 = vsel %vm9498_vm14, %v6073_v21, 0  ;;  %v2222_v45 = vld [vmem:[#allocation3 + $0x52] sm:$0xff]  ;;  %v2264_v21 = vld [vmem:[#allocation3 + $0x23] sm:$0xff] }
 0x2ae   : > { %v9497_v5 = vsel %vm8480_vm15, 4294967295, %v9496_v5  ;;  %v2257_v16 = vsel %vm8480_vm15, %v2217_v30, 0.0  ;;  %vm2238_vm11 = vcmp.ge.f32.partialorder %v2230_v23, 0.0  ;;  %vm2246_vm0 = vcmp.le.f32.partialorder %v2230_v23, 7.0  ;;  %vm8493_vm8 = vmand %vm2237_vm1, %vm2245_vm13 }
 0x2af   : > { %v2766_v40 = vpack.c.bf16 %v2258_v18, %v2257_v16  ;;  %v2767_v13 = vpack.c.bf16 %v2260_v24, %v2259_v37  ;;  %vm2288_vm15 = vcmp.le.f32.partialorder %v2272_v36, 7.0  ;;  %vm8498_vm3 = vmand %vm2238_vm11, %vm2246_vm0  ;;  %v2263_v24 = vld [vmem:[#allocation3 + $0x1b] sm:$0xff]  ;;  %v9505_v23 = vmov 0 }
 0x2b0   : > { %v9504_v60 = vsel %vm8498_vm3, 4294967295, %v9503_v60  ;;  %v2275_v30 = vadd.f32 3.0, %v9481_v39  ;;  %v2261_v36 = vsel %vm8493_vm8, %v2221_v48, 0.0  ;;  %v2273_v39 = vadd.f32 3.0, %v9485_v4  ;;  %v2267_v4 = vld [vmem:[#allocation3 + $0x3b] sm:$0xff]  ;;  %v2268_v48 = vld [vmem:[#allocation3 + $0x43] sm:$0xff] }
 0x2b1   : > { %vm2282_vm1 = vcmp.ge.f32.partialorder %v2274_v10, 0.0  ;;  %vm2290_vm13 = vcmp.le.f32.partialorder %v2274_v10, 7.0  ;;  %vm2292_vm0 = vcmp.le.f32.partialorder %v2276_v31, 7.0  ;;  %v9512_v57 = vmov 0 }
 0x2b2   : > { %vm2283_vm14 = vcmp.ge.f32.partialorder %v2275_v30, 0.0  ;;  %vm2291_vm11 = vcmp.le.f32.partialorder %v2275_v30, 7.0  ;;  %v2278_v10 = vadd.f32 3.0, %v9491_v46 }
 0x2b4   : > { %6527 = vmatmul.mubr.msk.bf16.vlgmr.msra.gmra.mrb[12].mxu0 %vm9499_vm4, %v2766_v40  ;;  %vm8503_vm4 = vmand %vm2279_vm12, %vm2287_vm9  ;;  %v2266_v40 = vld [vmem:[#allocation3 + $0x33] sm:$0xff]  ;;  %vm2281_vm12 = vcmp.ge.f32.partialorder %v2273_v39, 0.0  ;;  %vm2289_vm9 = vcmp.le.f32.partialorder %v2273_v39, 7.0  ;;  %v2269_v39 = vld [vmem:[#allocation3 + $0x4b] sm:$0xff] }
 0x2b5   : > { %6535 = vmatpush3.bf16.msra.mxu0 %v2878_v2  ;;  %6530 = vmatprep.mubr.msk.bf16.mxu0 %vm9502_vm2, %v2767_v13  ;;  %v9506_v23 = vsel %vm8503_vm4, 4294967295, %v9505_v23  ;;  %v2262_v13 = vsel %vm8498_vm3, %v2222_v45, 0.0  ;;  %vm8512_vm2 = vmand %vm2280_vm5, %vm2288_vm15  ;;  %v9508_v2 = vmov 0  ;;  %v2303_v26 = vsel %vm8503_vm4, %v2263_v24, 0.0  ;;  %v2265_v24 = vld [vmem:[#allocation3 + $0x2b] sm:$0xff] }
 0x2b6   : > { %9507 = vst [vmem:[#allocation51_spill] sm:$0xff] %v9506_v23  ;;  %v9509_v2 = vsel %vm8512_vm2, 4294967295, %v9508_v2  ;;  %v2304_v18 = vsel %vm8512_vm2, %v2264_v21, 0.0  ;;  %v2768_v37 = vpack.c.bf16 %v2262_v13, %v2261_v36  ;;  %vm9511_vm5 = vcmask 31744   ;;  %vm8523_vm3 = vmand %vm2282_vm1, %vm2290_vm13 }
 0x2b7   : > { %9510 = vst [vmem:[#allocation44_spill] sm:$0xff] %v9509_v2  ;;  %v2859_v16 = vpack.c.bf16 %v2304_v18, %v2303_v26  ;;  %vm2284_vm15 = vcmp.ge.f32.partialorder %v2276_v31, 0.0  ;;  %v9513_v57 = vsel %vm8523_vm3, 4294967295, %v9512_v57  ;;  %vm9515_vm2 = vmmov %vm9511_vm5  ;;  %v2277_v45 = vadd.f32 3.0, %v9489_v54 }
 0x2b8   : > { %9514 = vst [vmem:[#allocation46_spill] sm:$0xff] %v9513_v57  ;;  %vm8529_vm4 = vmand %vm2283_vm14, %vm2291_vm11  ;;  %v9516_v21 = vmov 0  ;;  %v2306_v30 = vsel %vm8523_vm3, %v2266_v40, 0.0  ;;  %v9519_v36 = vmov 0  ;;  %v9522_v13 = vmov 0 }
 0x2b9   : > { %v9517_v21 = vsel %vm8529_vm4, 4294967295, %v9516_v21  ;;  %vm8536_vm1 = vmand %vm2284_vm15, %vm2292_vm0  ;;  %v2307_v54 = vsel %vm8529_vm4, %v2267_v4, 0.0  ;;  %vm2293_vm14 = vcmp.le.f32.partialorder %v2277_v45, 7.0  ;;  %vm2286_vm11 = vcmp.ge.f32.partialorder %v2278_v10, 0.0 }
 0x2ba   : > { %9518 = vst [vmem:[#allocation47_spill] sm:$0xff] %v9517_v21  ;;  %v9520_v36 = vsel %vm8536_vm1, 4294967295, %v9519_v36  ;;  %vm8540_vm13 = vmand %vm2281_vm12, %vm2289_vm9  ;;  %v2308_v31 = vsel %vm8536_vm1, %v2268_v48, 0.0  ;;  %vm9526_vm15 = vcmask 31744   ;;  %v9532_v40 = vmov 0 }
 0x2bb   : > { %9521 = vst [vmem:[#allocation48_spill] sm:$0xff] %v9520_v36  ;;  %v9523_v13 = vsel %vm8540_vm13, 4294967295, %v9522_v13  ;;  %v2305_v46 = vsel %vm8540_vm13, %v2265_v24, 0.0  ;;  %v2861_v18 = vpack.c.bf16 %v2308_v31, %v2307_v54  ;;  %vm9527_vm0 = vmmov %vm9526_vm15  ;;  %v6080_v24 = vld [vmem:[%s9525_s18 + $0x2] sm:$0x3] }
 0x2bc   : > { %6531 = vmatmul.mubr.msk.bf16.gmra.mrb[16].mxu0 %vm9511_vm5, %v2768_v37  ;;  %9524 = vst [vmem:[#allocation49_spill] sm:$0xff] %v9523_v13  ;;  %v2860_v26 = vpack.c.bf16 %v2306_v30, %v2305_v46  ;;  %vm2294_vm5 = vcmp.le.f32.partialorder %v2278_v10, 7.0  ;;  %v2270_v37 = vld [vmem:[#allocation3 + $0x53] sm:$0xff]  ;;  %v8568_v30 = vld [vmem:[#allocation3 + $0x8] sm:$0xff]  ;;  %v3017_v31 = vld [vmem:[%s9525_s18] sm:$0x3] }
 0x2bd   : > { %6536 = vmatprep.mubr.msk.bf16.mxu0 %vm9515_vm2, %v2859_v16  ;;  %vm2285_vm2 = vcmp.ge.f32.partialorder %v2277_v45, 0.0  ;;  %v9528_v16 = vmov 0  ;;  %vm8556_vm9 = vmand %vm2286_vm11, %vm2294_vm5  ;;  %v8570_v54 = vld [vmem:[#allocation3 + $0x10] sm:$0xff] }
 0x2be   : > { %vm8552_vm12 = vmand %vm2285_vm2, %vm2293_vm14  ;;  %v9533_v40 = vsel %vm8556_vm9, 4294967295, %v9532_v40  ;;  %v2310_v48 = vsel %vm8556_vm9, %v2270_v37, 0.0  ;;  %vm9537_vm2 = vcmask 1041408   ;;  %v8575_v46 = vpack.c.bf16 %v8570_v54, %v8568_v30 }
 0x2bf   : > { %v9529_v16 = vsel %vm8552_vm12, 4294967295, %v9528_v16  ;;  %9534 = vst [vmem:[#allocation50_spill] sm:$0xff] %v9533_v40  ;;  %v2309_v4 = vsel %vm8552_vm12, %v2269_v39, 0.0  ;;  %7008 = vmatprep.subr.msk.bf16.mxu1 %vm9537_vm2, %v6080_v24  ;;  %vm9538_vm14 = vmmov %vm9537_vm2  ;;  %v6079_v39 = vld [vmem:[%s9535_s23] ss:$0 sm:$0xff]  ;;  %s9615_s23 = sld [smem:[#allocation22_spill]] }
 0x2c0   : > { %9530 = vst [vmem:[#allocation45_spill] sm:$0xff] %v9529_v16  ;;  %v2862_v45 = vpack.c.bf16 %v2310_v48, %v2309_v4  ;;  %v3037_v10 = vsel %vm9538_vm14, %v6080_v24, 0  ;;  %vm9539_vm11 = vmmov %vm9537_vm2 }
 0x2c1   : > { %6545 = vmatpush3.bf16.msra.mxu1 %v3037_v10  ;;  %vm9540_vm5 = vmmov %vm9527_vm0 }
 0x2c2   : > { %7009 = vmatprep.subr.msk.bf16.mxu1 %vm9539_vm11, %v3017_v31  ;;  %6546 = vmatprep.mubr.msk.bf16.mxu1 %vm9540_vm5, %v8575_v46  ;;  %vm9543_vm2 = vmmov %vm9527_vm0 }
 0x2c3   : > { %vm9544_vm14 = vmmov %vm9527_vm0 }
 0x2c4   : > { %6537 = vmatmul.mubr.msk.bf16.vlgmr.msra.gmra.mrb[12].mxu0 %vm9526_vm15, %v2860_v26  ;;  %vm9536_vm15 = vmmov %vm9527_vm0  ;;  %v6078_v26 = vld [vmem:[%s9531_s22] ss:$0 sm:$0xff]  ;;  %s9613_s22 = sld [smem:[#allocation21_spill]] }
 0x2c5   : > { %6540 = vmatprep.mubr.msk.bf16.mxu0 %vm9527_vm0, %v2861_v18  ;;  %vm9545_vm5 = vmmov %vm9539_vm11 }
 0x2c6   : > { %vm9557_vm9 = vmmov %vm9527_vm0 }
 0x2c7   : > { %vm9560_vm12 = vmmov %vm9527_vm0 }
 0x2cc   : > { %6541 = vmatmul.mubr.msk.bf16.gmra.mrb[16].mxu0 %vm9536_vm15, %v2862_v45  ;;  %vm9542_vm15 = vmmov %vm9527_vm0 }
 0x397   : > { %v6538_v18 = vpop.f32.mrb[12].mxu0 }
 0x398   : > { %v2962_v37 = vmul.f32 %v6538_v18, %v6078_v26  ;;  %v2914_v4 = vpop.f32.mrb[13].mxu0 }
 0x399   : > { %v2960_v48 = vmul.f32 %v6078_v26, %v2914_v4  ;;  %v6539_v45 = vpop.f32.mrb[14].mxu0 }
 0x39a   : > { %v2977_v24 = vadd.f32 %v6079_v39, %v2962_v37  ;;  %v2963_v10 = vmul.f32 %v6539_v45, %v6078_v26  ;;  %v2917_v8 = vpop.f32.mrb[15].mxu0 }
 0x39b   : > { %v2975_v56 = vadd.f32 %v6079_v39, %v2960_v48  ;;  %v2961_v11 = vmul.f32 %v6078_v26, %v2917_v8 }
 0x39c   : > { %v2985_v32 = vmax.f32 %v2977_v24, 0.0  ;;  %v2978_v33 = vadd.f32 %v6079_v39, %v2963_v10 }
 0x39d   : > { %v2983_v63 = vmax.f32 %v2975_v56, 0.0  ;;  %v2976_v49 = vadd.f32 %v6079_v39, %v2961_v11 }
 0x39e   : > { %2993 = vst.msk [vmem:[#allocation3 + $0x28] sm:$0xff] %vm9527_vm0, %v2985_v32  ;;  %v2986_v6 = vmax.f32 %v2978_v33, 0.0  ;;  %v3636_v32 = vld [vmem:[%s9541_s26] sm:$0x3]  ;;  %s9716_s26 = sld [smem:[#allocation26_spill]] }
 0x39f   : > { %2991 = vst.msk [vmem:[#allocation3 + $0x18] sm:$0xff] %vm9542_vm15, %v2983_v63  ;;  %v2984_v34 = vmax.f32 %v2976_v49, 0.0  ;;  %v6542_v18 = vpop.f32.mrb[16].mxu0  ;;  %7015 = vmatprep.subr.msk.bf16.mxu0 %vm9539_vm11, %v3636_v32  ;;  %v3650_v63 = vsel %vm9545_vm5, %v3636_v32, 0  ;;  %vm9546_vm15 = vmmov %vm9527_vm0 }
 0x3a0   : > { %2994 = vst.msk [vmem:[#allocation3 + $0x30] sm:$0xff] %vm9543_vm2, %v2986_v6  ;;  %v2966_v4 = vmul.f32 %v6542_v18, %v6078_v26  ;;  %v2930_v37 = vpop.f32.mrb[17].mxu0  ;;  %6615 = vmatpush3.bf16.msra.mxu0 %v3650_v63  ;;  %vm9547_vm2 = vmmov %vm9527_vm0 }
 0x3a1   : > { %2992 = vst.msk [vmem:[#allocation3 + $0x20] sm:$0xff] %vm9544_vm14, %v2984_v34  ;;  %v2964_v48 = vmul.f32 %v6078_v26, %v2930_v37  ;;  %v6543_v8 = vpop.f32.mrb[18].mxu0  ;;  %vm9548_vm14 = vmmov %vm9527_vm0 }
 0x3a2   : > { %v2981_v45 = vadd.f32 %v6079_v39, %v2966_v4  ;;  %v2967_v24 = vmul.f32 %v6543_v8, %v6078_v26  ;;  %v2933_v56 = vpop.f32.mrb[19].mxu0  ;;  %vm9549_vm11 = vmmov %vm9545_vm5 }
 0x3a3   : > { %v2979_v11 = vadd.f32 %v6079_v39, %v2964_v48  ;;  %v2965_v10 = vmul.f32 %v6078_v26, %v2933_v56  ;;  %v3117_v8 = vsel %vm9549_vm11, %v3017_v31, 0  ;;  %vm9550_vm5 = vmmov %vm9527_vm0 }
 0x3a4   : > { %v2989_v1 = vmax.f32 %v2981_v45, 0.0  ;;  %v2982_v33 = vadd.f32 %v6079_v39, %v2967_v24 }
 0x3a5   : > { %v2987_v49 = vmax.f32 %v2979_v11, 0.0  ;;  %v2980_v6 = vadd.f32 %v6079_v39, %v2965_v10  ;;  %v3004_v45 = vld [vmem:[#allocation3 + $0x28] sm:$0xff]  ;;  %v6089_v39 = vld [vmem:[%s9525_s18 + $0x4] sm:$0x3] }
 0x3a6   : > { %2997 = vst.msk [vmem:[#allocation3 + $0x48] sm:$0xff] %vm9527_vm0, %v2989_v1  ;;  %v2990_v34 = vmax.f32 %v2982_v33, 0.0  ;;  %v3002_v26 = vld [vmem:[#allocation3 + $0x18] sm:$0xff]  ;;  %v2999_v1 = vld [vmem:[#allocation3] sm:$0xff]  ;;  %v3191_v33 = vsel %vm9549_vm11, %v6089_v39, 0 }
 0x3a7   : > { %2995 = vst.msk [vmem:[#allocation3 + $0x38] sm:$0xff] %vm9546_vm15, %v2987_v49  ;;  %v2988_v18 = vmax.f32 %v2980_v6, 0.0  ;;  %v3005_v4 = vld [vmem:[#allocation3 + $0x30] sm:$0xff]  ;;  %vm9551_vm15 = vmmov %vm9549_vm11  ;;  %v8599_v10 = vpack.c.bf16 %v8568_v30, %v2999_v1  ;;  %v3014_v31 = vpack.c.bf16 %v3002_v26, %v8570_v54  ;;  %v6099_v54 = vld [vmem:[%s9525_s18 + $0x8] sm:$0x3] }
 0x3a8   : > { %2998 = vst.msk [vmem:[#allocation3 + $0x50] sm:$0xff] %vm9547_vm2, %v2990_v34  ;;  %v3003_v37 = vld [vmem:[#allocation3 + $0x20] sm:$0xff]  ;;  %v3020_v24 = vpack.c.bf16 %v3005_v4, %v3004_v45  ;;  %vm9553_vm2 = vmmov %vm9527_vm0  ;;  %v6094_v49 = vld [vmem:[%s9525_s18 + $0x6] sm:$0x3] }
 0x3a9   : > { %2996 = vst.msk [vmem:[#allocation3 + $0x40] sm:$0xff] %vm9548_vm14, %v2988_v18  ;;  %v3019_v48 = vpack.c.bf16 %v3003_v37, %v3002_v26  ;;  %9552 = vst [vmem:[#allocation53_spill] sm:$0xff] %v8599_v10  ;;  %v3015_v63 = vpack.c.bf16 %v3004_v45, %v3003_v37  ;;  %v6104_v26 = vld [vmem:[%s9525_s18 + $0xa] sm:$0x3] }
 0x3aa   : > { %vm9554_vm14 = vmmov %vm9527_vm0 }
 0x3ab   : > { %6547 = vmatmul.mubr.msk.bf16.vlgmr.msra.gmra.mrb[20].mxu1 %vm9550_vm5, %v3019_v48  ;;  %vm9555_vm5 = vmmov %vm9527_vm0 }
 0x3ac   : > { %6555 = vmatpush3.bf16.msra.mxu1 %v3117_v8  ;;  %6550 = vmatprep.mubr.msk.bf16.mxu1 %vm9527_vm0, %v3020_v24 }
 0x3ad   : > { %7010 = vmatprep.subr.msk.bf16.mxu1 %vm9551_vm15, %v6089_v39  ;;  %vm9556_vm15 = vmmov %vm9549_vm11  ;;  %v3008_v34 = vld [vmem:[#allocation3 + $0x48] sm:$0xff]  ;;  %v8631_v39 = vld [vmem:[#allocation3 + $0x58] sm:$0xff] }
 0x3ae   : > { %v3006_v56 = vld [vmem:[#allocation3 + $0x38] sm:$0xff]  ;;  %9575 = vst [vmem:[#allocation81_spill] sm:$0xff] %v8631_v39 }
 0x3af   : > { %v3016_v30 = vpack.c.bf16 %v3006_v56, %v3005_v4  ;;  %v3009_v37 = vld [vmem:[#allocation3 + $0x50] sm:$0xff] }
 0x3b0   : > { %v3007_v11 = vld [vmem:[#allocation3 + $0x40] sm:$0xff]  ;;  %v3266_v8 = vpack.c.bf16 %v3009_v37, %v3008_v34  ;;  %v3348_v1 = vpack.c.bf16 %v8631_v39, %v3009_v37 }
 0x3b1   : > { %v3021_v32 = vpack.c.bf16 %v3007_v11, %v3006_v56  ;;  %v3184_v18 = vpack.c.bf16 %v3008_v34, %v3007_v11  ;;  %v7098_v11 = vld [vmem:[%s9568_s28] sm:$0xff]   ;;  %s9721_s28 = sld [smem:[#allocation24_spill]] }
 0x3b2   : > { %v6114_v34 = vld [vmem:[%s9581_s2] ss:$0 sm:$0xff]  ;;  %s9734_s2 = sld [smem:[#allocation29_spill]] }
 0x3b3   : > { %6551 = vmatmul.mubr.msk.bf16.gmra.mrb[24].mxu1 %vm9553_vm2, %v3021_v32  ;;  %vm9558_vm2 = vmmov %vm9527_vm0 }
 0x3b4   : > { %6556 = vmatprep.mubr.msk.bf16.mxu1 %vm9554_vm14, %v8599_v10  ;;  %vm9559_vm14 = vmmov %vm9549_vm11 }
 0x3b5   : > { %v3273_v6 = vsel %vm9559_vm14, %v6094_v49, 0  ;;  %vm9561_vm11 = vmmov %vm9527_vm0 }
 0x3bb   : > { %6557 = vmatmul.mubr.msk.bf16.vlgmr.msra.gmra.mrb[20].mxu1 %vm9555_vm5, %v3014_v31  ;;  %vm9562_vm5 = vmmov %vm9559_vm14 }
 0x3bc   : > { %6565 = vmatpush3.bf16.msra.mxu1 %v3191_v33  ;;  %6560 = vmatprep.mubr.msk.bf16.mxu1 %vm9527_vm0, %v3015_v63  ;;  %vm9566_vm14 = vmmov %vm9527_vm0 }
 0x3bd   : > { %7011 = vmatprep.subr.msk.bf16.mxu1 %vm9556_vm15, %v6094_v49  ;;  %vm9563_vm15 = vmmov %vm9527_vm0  ;;  %v9592_v49 = vld [vmem:[#allocation32_spill] sm:$0xff] }
 0x3c3   : > { %6561 = vmatmul.mubr.msk.bf16.gmra.mrb[24].mxu1 %vm9557_vm9, %v3016_v30  ;;  %vm9564_vm9 = vmmov %vm9562_vm5 }
 0x3c4   : > { %6566 = vmatprep.mubr.msk.bf16.mxu1 %vm9558_vm2, %v3014_v31  ;;  %v3355_v4 = vsel %vm9564_vm9, %v6099_v54, 0  ;;  %vm9565_vm2 = vmmov %vm9527_vm0  ;;  %v3011_v31 = vld [vmem:[#allocation3 + $0x60] sm:$0xff] }
 0x3c5   : > { %v8641_v33 = vpack.c.bf16 %v3011_v31, %v8631_v39 }
 0x3c7   : > { %9582 = vst [vmem:[#allocation82_spill] sm:$0xff] %v8641_v33 }
 0x3cb   : > { %6567 = vmatmul.mubr.msk.bf16.vlgmr.msra.gmra.mrb[20].mxu1 %vm9560_vm12, %v3015_v63  ;;  %vm9567_vm12 = vmmov %vm9562_vm5 }
 0x3cc   : > { %6575 = vmatpush3.bf16.msra.mxu1 %v3273_v6  ;;  %6570 = vmatprep.mubr.msk.bf16.mxu1 %vm9561_vm11, %v3016_v30  ;;  %vm9569_vm11 = vmmov %vm9527_vm0  ;;  %v9594_v6 = vld [vmem:[#allocation35_spill] sm:$0xff] }
 0x3cd   : > { %7012 = vmatprep.subr.msk.bf16.mxu1 %vm9562_vm5, %v6099_v54  ;;  %vm9570_vm5 = vmmov %vm9527_vm0  ;;  %v7099_v54 = vld [vmem:[%s9580_s1] sm:$0xff]   ;;  %s9723_s1 = sld [smem:[#allocation25_spill]] }
 0x3ce   : > { %6634 = vmatprep.subr.bf16.mxu0 %v7099_v54 }
 0x3d3   : > { %6571 = vmatmul.mubr.msk.bf16.gmra.mrb[24].mxu1 %vm9527_vm0, %v3184_v18  ;;  %vm9571_vm0 = vmmov %vm9564_vm9 }
 0x3d4   : > { %6576 = vmatprep.mubr.msk.bf16.mxu1 %vm9563_vm15, %v3019_v48  ;;  %v3437_v45 = vsel %vm9571_vm0, %v6104_v26, 0  ;;  %v6109_v48 = vld [vmem:[%s9525_s18 + $0xc] sm:$0x3]  ;;  %vm9572_vm15 = vmmov %vm9565_vm2 }
 0x3d5   : > { %vm9573_vm9 = vmmov %vm9565_vm2 }
 0x3db   : > { %6577 = vmatmul.mubr.msk.bf16.vlgmr.msra.gmra.mrb[20].mxu1 %vm9565_vm2, %v3020_v24  ;;  %vm9574_vm2 = vmmov %vm9571_vm0 }
 0x3dc   : > { %6585 = vmatpush3.bf16.msra.mxu1 %v3355_v4  ;;  %6580 = vmatprep.mubr.msk.bf16.mxu1 %vm9566_vm14, %v3021_v32  ;;  %vm9576_vm14 = vmmov %vm9570_vm5  ;;  %v6115_v4 = vld [vmem:[%s9585_s7] ss:$0 sm:$0xff]  ;;  %s9775_s7 = sld [smem:[#allocation27_spill]] }
 0x3dd   : > { %7013 = vmatprep.subr.msk.bf16.mxu1 %vm9567_vm12, %v6104_v26  ;;  %vm9577_vm12 = vmmov %vm9570_vm5 }
 0x3e3   : > { %6581 = vmatmul.mubr.msk.bf16.gmra.mrb[24].mxu1 %vm9569_vm11, %v3266_v8  ;;  %vm9578_vm11 = vmmov %vm9571_vm0 }
 0x3e4   : > { %6586 = vmatprep.mubr.msk.bf16.mxu1 %vm9570_vm5, %v3015_v63  ;;  %v3519_v56 = vsel %vm9578_vm11, %v6109_v48, 0  ;;  %vm9579_vm0 = vmmov %vm9570_vm5  ;;  %v9590_v63 = vld [vmem:[#allocation34_spill] sm:$0xff]  ;;  %vm9591_vm11 = vcmask 130048  }
 0x3eb   : > { %6587 = vmatmul.mubr.msk.bf16.vlgmr.msra.gmra.mrb[20].mxu1 %vm9572_vm15, %v3016_v30  ;;  %vm9583_vm15 = vmmov %vm9579_vm0 }
 0x3ec   : > { %6595 = vmatpush3.bf16.msra.mxu1 %v3437_v45  ;;  %6590 = vmatprep.mubr.msk.bf16.mxu1 %vm9573_vm9, %v3184_v18  ;;  %vm9584_vm9 = vmmov %vm9579_vm0 }
 0x3ed   : > { %7014 = vmatprep.subr.msk.bf16.mxu1 %vm9574_vm2, %v6109_v48  ;;  %vm9586_vm2 = vmmov %vm9579_vm0 }
 0x3f3   : > { %6591 = vmatmul.mubr.msk.bf16.gmra.mrb[24].mxu1 %vm9576_vm14, %v3348_v1  ;;  %vm9587_vm14 = vmmov %vm9579_vm0 }
 0x3f4   : > { %6596 = vmatprep.mubr.msk.bf16.mxu1 %vm9577_vm12, %v3020_v24  ;;  %v3012_v24 = vld [vmem:[#allocation3 + $0x68] sm:$0xff]  ;;  %vm9589_vm12 = vmmov %vm9579_vm0 }
 0x3fb   : > { %6597 = vmatmul.mubr.msk.bf16.vlgmr.msra.gmra.mrb[20].mxu1 %vm9570_vm5, %v3021_v32  ;;  %v8648_v32 = vpack.c.bf16 %v3012_v24, %v3011_v31  ;;  %vm9593_vm5 = vmmov %vm9591_vm11 }
 0x3fc   : > { %6605 = vmatpush3.bf16.msra.mxu1 %v3519_v56  ;;  %6600 = vmatprep.mubr.msk.bf16.mxu1 %vm9579_vm0, %v3266_v8  ;;  %vm9595_vm0 = vmmov %vm9593_vm5 }
 0x3fd   : > { %6624 = vmatprep.subr.bf16.mxu1 %v7098_v11  ;;  %9588 = vst [vmem:[#allocation83_spill] sm:$0xff] %v8648_v32 }
 0x403   : > { %6601 = vmatmul.mubr.msk.bf16.gmra.mrb[24].mxu1 %vm9583_vm15, %v8641_v33  ;;  %vm9597_vm15 = vmmov %vm9595_vm0 }
 0x404   : > { %6606 = vmatprep.mubr.msk.bf16.mxu1 %vm9584_vm9, %v3016_v30  ;;  %v9596_v30 = vld [vmem:[#allocation33_spill] sm:$0xff]  ;;  %vm9598_vm9 = vmmov %vm9586_vm2 }
 0x40b   : > { %6607 = vmatmul.mubr.msk.bf16.vlgmr.msra.gmra.mrb[20].mxu1 %vm9586_vm2, %v3184_v18 }
 0x40c   : > { %6610 = vmatprep.mubr.msk.bf16.mxu1 %vm9587_vm14, %v3348_v1  ;;  %6625 = vmatpush3.bf16.msra.mxu1 %v7098_v11  ;;  %vm9600_vm14 = vmmov %vm9586_vm2 }
 0x413   : > { %6611 = vmatmul.mubr.msk.bf16.gmra.mrb[24].mxu1 %vm9589_vm12, %v8648_v32  ;;  %vm9601_vm12 = vmmov %vm9586_vm2 }
 0x414   : > { %6626 = vmatprep.mubr.msk.bf16.mxu1 %vm9591_vm11, %v9590_v63  ;;  %vm9602_vm11 = vmmov %vm9595_vm0 }
 0x41b   : > { %6627 = vmatmul.mubr.msk.bf16.vlgmr.msra.gmra.mrb[28].mxu1 %vm9593_vm5, %v9592_v49  ;;  %vm9605_vm5 = vmmov %vm9595_vm0 }
 0x41c   : > { %6630 = vmatprep.mubr.msk.bf16.mxu1 %vm9595_vm0, %v9594_v6 }
 0x423   : > { %6631 = vmatmul.mubr.msk.bf16.gmra.mrb[32].mxu1 %vm9597_vm15, %v9596_v30  ;;  %vm9606_vm15 = vmmov %vm9595_vm0 }
 0x4de   : > { %v6608_v18 = vpop.f32.mrb[20].mxu1 }
 0x4df   : > { %v3603_v26 = vmul.f32 %v6608_v18, %v6114_v34  ;;  %v3555_v37 = vpop.f32.mrb[21].mxu1 }
 0x4e0   : > { %v3601_v8 = vmul.f32 %v6114_v34, %v3555_v37  ;;  %v6609_v45 = vpop.f32.mrb[22].mxu1 }
 0x4e1   : > { %v3618_v48 = vadd.f32 %v6115_v4, %v3603_v26  ;;  %v3604_v1 = vmul.f32 %v6609_v45, %v6114_v34  ;;  %v3558_v56 = vpop.f32.mrb[23].mxu1 }
 0x4e2   : > { %v3616_v11 = vadd.f32 %v6115_v4, %v3601_v8  ;;  %v3602_v31 = vmul.f32 %v6114_v34, %v3558_v56 }
 0x4e3   : > { %v3619_v24 = vadd.f32 %v6115_v4, %v3604_v1  ;;  %v3626_v32 = vmax.f32 %v3618_v48, 0.0 }
 0x4e4   : > { %v3617_v25 = vadd.f32 %v6115_v4, %v3602_v31  ;;  %v3624_v39 = vmax.f32 %v3616_v11, 0.0 }
 0x4e5   : > { %v3627_v33 = vmax.f32 %v3619_v24, 0.0 }
 0x4e6   : > { %v3625_v10 = vmax.f32 %v3617_v25, 0.0  ;;  %v6612_v40 = vpop.f32.mrb[24].mxu1 }
 0x4e7   : > { %v3633_v16 = vpack.c.bf16 %v3627_v33, %v3626_v32  ;;  %v3607_v13 = vmul.f32 %v6612_v40, %v6114_v34  ;;  %v3571_v36 = vpop.f32.mrb[25].mxu1 }
 0x4e8   : > { %v3632_v21 = vpack.c.bf16 %v3625_v10, %v3624_v39  ;;  %v3605_v18 = vmul.f32 %v6114_v34, %v3571_v36  ;;  %v6613_v57 = vpop.f32.mrb[26].mxu1 }
 0x4e9   : > { %v3622_v37 = vadd.f32 %v6115_v4, %v3607_v13  ;;  %v3608_v2 = vmul.f32 %v6613_v57, %v6114_v34  ;;  %v3574_v26 = vpop.f32.mrb[27].mxu1 }
 0x4ea   : > { %v3620_v45 = vadd.f32 %v6115_v4, %v3605_v18  ;;  %v3606_v23 = vmul.f32 %v6114_v34, %v3574_v26  ;;  %6616 = vmatprep.mubr.msk.bf16.mxu0 %vm9598_vm9, %v3632_v21  ;;  %vm9607_vm9 = vmmov %vm9586_vm2  ;;  %v8697_v34 = vld [vmem:[%s9599_s10] sm:$0x3] }
 0x4eb   : > { %v3623_v8 = vadd.f32 %v6115_v4, %v3608_v2  ;;  %6617 = vmatmul.mubr.msk.bf16.vlgmr.msra.gmra.mrb[20].mxu0 %vm9586_vm2, %v3633_v16  ;;  %v3630_v25 = vmax.f32 %v3622_v37, 0.0  ;;  %vm9608_vm2 = vcmask 1041408  }
 0x4ec   : > { %v3621_v48 = vadd.f32 %v6115_v4, %v3606_v23  ;;  %6635 = vmatpush3.bf16.msra.mxu0 %v7099_v54  ;;  %v3628_v33 = vmax.f32 %v3620_v45, 0.0  ;;  %v6121_v4 = vld [vmem:[%s9604_s0] ss:$0 sm:$0xff]  ;;  %s9815_s0 = sld [smem:[#allocation18_spill]] }
 0x4ed   : > { %v3631_v1 = vmax.f32 %v3623_v8, 0.0 }
 0x4ee   : > { %v3629_v40 = vmax.f32 %v3621_v48, 0.0  ;;  %v8665_v32 = vpop.f32.mrb[28].mxu1 }
 0x4ef   : > { %v3635_v36 = vpack.c.bf16 %v3631_v1, %v3630_v25  ;;  %v8667_v13 = vpop.f32.mrb[29].mxu1 }
 0x4f0   : > { %v3634_v57 = vpack.c.bf16 %v3629_v40, %v3628_v33  ;;  %v8669_v10 = vpop.f32.mrb[30].mxu1 }
 0x4f1   : > { %v8671_v39 = vpop.f32.mrb[31].mxu1 }
 0x4f2   : > { %6620 = vmatprep.mubr.msk.bf16.mxu0 %vm9600_vm14, %v3634_v57  ;;  %vm9609_vm14 = vmmov %vm9608_vm2 }
 0x4f3   : > { %6621 = vmatmul.mubr.msk.bf16.gmra.mrb[24].mxu0 %vm9601_vm12, %v3635_v36  ;;  %vm9610_vm12 = vmmov %vm9608_vm2 }
 0x4f4   : > { %6636 = vmatprep.mubr.msk.bf16.mxu0 %vm9602_vm11, %v9590_v63  ;;  %v6136_v63 = vld [vmem:[%s9599_s10 + $0x2] sm:$0x3]  ;;  %vm9611_vm11 = vmmov %vm9595_vm0 }
 0x4f5   : > { %7016 = vmatprep.subr.msk.bf16.mxu1 %vm9608_vm2, %v6136_v63  ;;  %v4105_v54 = vsel %vm9609_vm14, %v6136_v63, 0  ;;  %vm9617_vm2 = vmmov %vm9595_vm0 }
 0x4f6   : > { %v8677_v23 = vpop.f32.mrb[32].mxu1  ;;  %6645 = vmatpush3.bf16.msra.mxu1 %v4105_v54  ;;  %vm9618_vm14 = vmmov %vm9595_vm0 }
 0x4f7   : > { %v8679_v2 = vpop.f32.mrb[33].mxu1  ;;  %7017 = vmatprep.subr.msk.bf16.mxu1 %vm9610_vm12, %v8697_v34  ;;  %vm9619_vm12 = vmmov %vm9595_vm0 }
 0x4f8   : > { %v8681_v21 = vpop.f32.mrb[34].mxu1 }
 0x4f9   : > { %v8683_v16 = vpop.f32.mrb[35].mxu1 }
 0x4fb   : > { %6637 = vmatmul.mubr.msk.bf16.vlgmr.msra.gmra.mrb[28].mxu0 %vm9605_vm5, %v9592_v49  ;;  %v6120_v49 = vld [vmem:[%s9603_s16] ss:$0 sm:$0xff]  ;;  %vm9612_vm5 = vmmov %vm9595_vm0  ;;  %s9777_s16 = sld [smem:[#allocation28_spill]] }
 0x4fc   : > { %6640 = vmatprep.mubr.msk.bf16.mxu0 %vm9595_vm0, %v9594_v6 }
 0x503   : > { %6641 = vmatmul.mubr.msk.bf16.gmra.mrb[32].mxu0 %vm9606_vm15, %v9596_v30  ;;  %vm9614_vm15 = vmmov %vm9595_vm0 }
 0x504   : > { %6716 = vmatprep.mubr.msk.bf16.mxu0 %vm9607_vm9, %v8575_v46  ;;  %vm9616_vm9 = vmmov %vm9595_vm0 }
 0x5be   : > { %v6618_v6 = vpop.f32.mrb[20].mxu0 }
 0x5bf   : > { %v3726_v30 = vmul.f32 %v6618_v6, %v6120_v49  ;;  %v3686_v56 = vpop.f32.mrb[21].mxu0 }
 0x5c0   : > { %v3724_v11 = vmul.f32 %v6120_v49, %v3686_v56  ;;  %v6619_v46 = vpop.f32.mrb[22].mxu0 }
 0x5c1   : > { %v3741_v31 = vadd.f32 %v6121_v4, %v3726_v30  ;;  %v3727_v24 = vmul.f32 %v6619_v46, %v6120_v49  ;;  %v3689_v18 = vpop.f32.mrb[23].mxu0 }
 0x5c2   : > { %v3739_v37 = vadd.f32 %v6121_v4, %v3724_v11  ;;  %v3725_v26 = vmul.f32 %v6120_v49, %v3689_v18 }
 0x5c3   : > { %v3749_v45 = vadd.f32 %v3741_v31, %v9404_v29  ;;  %v3742_v8 = vadd.f32 %v6121_v4, %v3727_v24  ;;  %v6134_v31 = vld [vmem:[%s9613_s22] ss:$0 sm:$0xff]  ;;  %s9816_s22 = sld [smem:[#allocation30_spill]] }
 0x5c4   : > { %v3747_v48 = vadd.f32 %v3739_v37, %v9390_v19  ;;  %v3740_v25 = vadd.f32 %v6121_v4, %v3725_v26  ;;  %v6135_v26 = vld [vmem:[%s9615_s23] ss:$0 sm:$0xff]  ;;  %s9817_s23 = sld [smem:[#allocation19_spill]] }
 0x5c5   : > { %6223 = vst.msk [vmem:[%s7536_s11 + $0x50] sm:$0xff] %vm9611_vm11, %v3749_v45  ;;  %v3750_v1 = vadd.f32 %v3742_v8, %v9416_v17  ;;  %vm9620_vm11 = vcmask 31744  }
 0x5c6   : > { %6221 = vst.msk [vmem:[%s7536_s11 + $0x40] sm:$0xff] %vm9612_vm5, %v3747_v48  ;;  %v3748_v33 = vadd.f32 %v3740_v25, %v9415_v55  ;;  %v6622_v40 = vpop.f32.mrb[24].mxu0  ;;  %vm9621_vm5 = vmmov %vm9620_vm11 }
 0x5c7   : > { %6224 = vst.msk [vmem:[%s7536_s11 + $0x58] sm:$0xff] %vm9595_vm0, %v3750_v1  ;;  %v3730_v36 = vmul.f32 %v6622_v40, %v6120_v49  ;;  %v3702_v57 = vpop.f32.mrb[25].mxu0  ;;  %vm9622_vm0 = vmmov %vm9621_vm5 }
 0x5c8   : > { %6222 = vst.msk [vmem:[%s7536_s11 + $0x48] sm:$0xff] %vm9614_vm15, %v3748_v33  ;;  %v3728_v19 = vmul.f32 %v6120_v49, %v3702_v57  ;;  %v6623_v29 = vpop.f32.mrb[26].mxu0  ;;  %vm9623_vm15 = vmmov %vm9622_vm0 }
 0x5c9   : > { %v3745_v63 = vadd.f32 %v6121_v4, %v3730_v36  ;;  %v3731_v17 = vmul.f32 %v6623_v29, %v6120_v49  ;;  %v3705_v54 = vpop.f32.mrb[27].mxu0 }
 0x5ca   : > { %v3743_v6 = vadd.f32 %v6121_v4, %v3728_v19  ;;  %v3729_v55 = vmul.f32 %v6120_v49, %v3705_v54 }
 0x5cb   : > { %v3753_v30 = vadd.f32 %v3745_v63, %v9453_v53  ;;  %v3746_v56 = vadd.f32 %v6121_v4, %v3731_v17 }
 0x5cc   : > { %v3751_v11 = vadd.f32 %v3743_v6, %v9420_v42  ;;  %v3744_v46 = vadd.f32 %v6121_v4, %v3729_v55 }
 0x5cd   : > { %6227 = vst.msk [vmem:[%s7536_s11 + $0x70] sm:$0xff] %vm9616_vm9, %v3753_v30  ;;  %v3754_v24 = vadd.f32 %v3746_v56, %v9454_v27  ;;  %vm9624_vm9 = vmmov %vm9622_vm0 }
 0x5ce   : > { %6225 = vst.msk [vmem:[%s7536_s11 + $0x60] sm:$0xff] %vm9617_vm2, %v3751_v11  ;;  %v3752_v18 = vadd.f32 %v3744_v46, %v9422_v43  ;;  %v6638_v37 = vpop.f32.mrb[28].mxu0  ;;  %vm9625_vm2 = vmmov %vm9622_vm0 }
 0x5cf   : > { %6228 = vst.msk [vmem:[%s7536_s11 + $0x78] sm:$0xff] %vm9618_vm14, %v3754_v24  ;;  %v3940_v49 = vmul.f32 %v6638_v37, %v6134_v31  ;;  %v3900_v45 = vpop.f32.mrb[29].mxu0  ;;  %vm9626_vm14 = vmmov %vm9622_vm0 }
 0x5d0   : > { %6226 = vst.msk [vmem:[%s7536_s11 + $0x68] sm:$0xff] %vm9619_vm12, %v3752_v18  ;;  %v3938_v53 = vmul.f32 %v6134_v31, %v3900_v45  ;;  %v6639_v42 = vpop.f32.mrb[30].mxu0 }
 0x5d1   : > { %v3955_v4 = vadd.f32 %v6135_v26, %v3940_v49  ;;  %v3941_v8 = vmul.f32 %v6639_v42, %v6134_v31  ;;  %v3903_v48 = vpop.f32.mrb[31].mxu0 }
 0x5d2   : > { %v3953_v25 = vadd.f32 %v6135_v26, %v3938_v53  ;;  %v3939_v1 = vmul.f32 %v6134_v31, %v3903_v48  ;;  %v9627_v48 = vld [vmem:[#allocation63_spill] sm:$0xff] }
 0x5d3   : > { %v3963_v27 = vmax.f32 %v3955_v4, 0.0  ;;  %v3956_v33 = vadd.f32 %v6135_v26, %v3941_v8  ;;  %vm9628_vm12 = vnez %v9627_v48 }
 0x5d4   : > { %v3961_v40 = vmax.f32 %v3953_v25, 0.0  ;;  %v3954_v36 = vadd.f32 %v6135_v26, %v3939_v1  ;;  %v9630_v25 = vld [vmem:[#allocation64_spill] sm:$0xff]  ;;  %v9632_v1 = vld [vmem:[#allocation65_spill] sm:$0xff] }
 0x5d5   : > { %3971 = vst.msk [vmem:[#allocation3 + $0x28] sm:$0xff] %vm9620_vm11, %v3963_v27  ;;  %v3964_v43 = vmax.f32 %v3956_v33, 0.0  ;;  %vm9629_vm11 = vmmov %vm9622_vm0  ;;  %v9634_v33 = vld [vmem:[#allocation62_spill] sm:$0xff] }
 0x5d6   : > { %3969 = vst.msk [vmem:[#allocation3 + $0x18] sm:$0xff] %vm9621_vm5, %v3961_v40  ;;  %v3962_v57 = vmax.f32 %v3954_v36, 0.0  ;;  %v6642_v19 = vpop.f32.mrb[32].mxu0  ;;  %vm9631_vm5 = vnez %v9630_v25 }
 0x5d7   : > { %3972 = vst.msk [vmem:[#allocation3 + $0x30] sm:$0xff] %vm9622_vm0, %v3964_v43  ;;  %v3944_v29 = vmul.f32 %v6642_v19, %v6134_v31  ;;  %v3916_v63 = vpop.f32.mrb[33].mxu0  ;;  %vm9633_vm0 = vnez %v9632_v1  ;;  %v6145_v19 = vld [vmem:[%s9599_s10 + $0x4] sm:$0x3]  ;;  %v9653_v1 = vld [vmem:[#allocation71_spill] sm:$0xff] }
 0x5d8   : > { %3970 = vst.msk [vmem:[#allocation3 + $0x20] sm:$0xff] %vm9623_vm15, %v3962_v57  ;;  %v3942_v17 = vmul.f32 %v6134_v31, %v3916_v63  ;;  %v6643_v54 = vpop.f32.mrb[34].mxu0  ;;  %vm9635_vm15 = vnez %v9634_v33  ;;  %v9655_v33 = vld [vmem:[#allocation73_spill] sm:$0xff] }
 0x5d9   : > { %v3959_v6 = vadd.f32 %v6135_v26, %v3944_v29  ;;  %v3945_v55 = vmul.f32 %v6643_v54, %v6134_v31  ;;  %v3919_v30 = vpop.f32.mrb[35].mxu0 }
 0x5da   : > { %v3957_v56 = vadd.f32 %v6135_v26, %v3942_v17  ;;  %v3943_v11 = vmul.f32 %v6134_v31, %v3919_v30 }
 0x5db   : > { %v3967_v46 = vmax.f32 %v3959_v6, 0.0  ;;  %v3960_v24 = vadd.f32 %v6135_v26, %v3945_v55  ;;  %v9639_v55 = vld [vmem:[#allocation69_spill] sm:$0xff] }
 0x5dc   : > { %v3965_v18 = vmax.f32 %v3957_v56, 0.0  ;;  %v3958_v37 = vadd.f32 %v6135_v26, %v3943_v11  ;;  %v9641_v11 = vld [vmem:[#allocation67_spill] sm:$0xff] }
 0x5dd   : > { %3975 = vst.msk [vmem:[#allocation3 + $0x48] sm:$0xff] %vm9624_vm9, %v3967_v46  ;;  %v3968_v49 = vmax.f32 %v3960_v24, 0.0  ;;  %v3993_v45 = vld [vmem:[#allocation3 + $0x16] sm:$0xff]  ;;  %vm9636_vm9 = vcmask 1041408  }
 0x5de   : > { %3973 = vst.msk [vmem:[#allocation3 + $0x38] sm:$0xff] %vm9625_vm2, %v3965_v18  ;;  %v3966_v53 = vmax.f32 %v3958_v37, 0.0  ;;  %v3996_v42 = vld [vmem:[#allocation3 + $0x2e] sm:$0xff]  ;;  %v4001_v26 = vsel %vm9631_vm5, %v3993_v45, 0.0  ;;  %v4185_v57 = vsel %vm9636_vm9, %v8697_v34, 0  ;;  %vm9642_vm5 = vnez %v9641_v11 }
 0x5df   : > { %3976 = vst.msk [vmem:[#allocation3 + $0x50] sm:$0xff] %vm9626_vm14, %v3968_v49  ;;  %v3994_v4 = vld [vmem:[#allocation3 + $0x1e] sm:$0xff]  ;;  %v3995_v8 = vld [vmem:[#allocation3 + $0x26] sm:$0xff]  ;;  %v4004_v31 = vsel %vm9628_vm12, %v3996_v42, 0.0  ;;  %vm9637_vm14 = vmmov %vm9625_vm2 }
 0x5e0   : > { %3974 = vst.msk [vmem:[#allocation3 + $0x40] sm:$0xff] %vm9629_vm11, %v3966_v53  ;;  %v4002_v27 = vsel %vm9633_vm0, %v3994_v4, 0.0  ;;  %v4003_v40 = vsel %vm9635_vm15, %v3995_v8, 0.0  ;;  %v3978_v63 = vld [vmem:[#allocation3 + $0x1d] sm:$0xff]  ;;  %vm9638_vm12 = vmmov %vm9636_vm9  ;;  %vm9640_vm11 = vnez %v9639_v55  ;;  %v3977_v56 = vld [vmem:[#allocation3 + $0x15] sm:$0xff] }
 0x5e1   : > { %v4086_v36 = vpack.c.bf16 %v4002_v27, %v4001_v26  ;;  %v4087_v43 = vpack.c.bf16 %v4004_v31, %v4003_v40  ;;  %v9643_v46 = vld [vmem:[#allocation68_spill] sm:$0xff]  ;;  %v9647_v49 = vld [vmem:[#allocation70_spill] sm:$0xff] }
 0x5e2   : > { %vm9644_vm0 = vnez %v9643_v46  ;;  %v9645_v18 = vld [vmem:[#allocation72_spill] sm:$0xff]  ;;  %vm9648_vm9 = vnez %v9647_v49  ;;  %v9649_v4 = vld [vmem:[#allocation74_spill] sm:$0xff] }
 0x5e3   : > { %6646 = vmatprep.mubr.msk.bf16.mxu1 %vm9625_vm2, %v4086_v36  ;;  %vm9646_vm15 = vnez %v9645_v18  ;;  %v3986_v45 = vsel %vm9648_vm9, %v3978_v63, 0.0  ;;  %vm9650_vm2 = vnez %v9649_v4  ;;  %v3979_v31 = vld [vmem:[#allocation3 + $0x25] sm:$0xff]  ;;  %v3980_v25 = vld [vmem:[#allocation3 + $0x2d] sm:$0xff]  ;;  %vm9659_vm9 = vcmask 1041408   ;;  %v6150_v55 = vld [vmem:[%s9599_s10 + $0x6] sm:$0x3] }
 0x5e4   : > { %6647 = vmatmul.mubr.msk.bf16.vlgmr.msra.gmra.mrb[36].mxu1 %vm9637_vm14, %v4087_v43  ;;  %v3985_v8 = vsel %vm9650_vm2, %v3977_v56, 0.0  ;;  %v9657_v43 = vld [vmem:[#allocation75_spill] sm:$0xff]  ;;  %v4271_v63 = vsel %vm9659_vm9, %v6145_v19, 0  ;;  %v4010_v11 = vld [vmem:[#allocation3 + $0x1f] sm:$0xff]  ;;  %v4009_v18 = vld [vmem:[#allocation3 + $0x17] sm:$0xff] }
 0x5e5   : > { %6655 = vmatpush3.bf16.msra.mxu1 %v4185_v57  ;;  %v3997_v29 = vld [vmem:[#allocation3 + $0x36] sm:$0xff]  ;;  %v4081_v48 = vpack.c.bf16 %v3986_v45, %v3985_v8  ;;  %v4067_v12 = vld [vmem:[#allocation3 + $0x2b] sm:$0xff] }
 0x5e6   : > { %v4000_v17 = vld [vmem:[#allocation3 + $0x4e] sm:$0xff]  ;;  %7018 = vmatprep.subr.msk.bf16.mxu1 %vm9638_vm12, %v6145_v19  ;;  %v4005_v34 = vsel %vm9642_vm5, %v3997_v29, 0.0  ;;  %vm9651_vm12 = vmmov %vm9637_vm14  ;;  %vm9654_vm5 = vnez %v9653_v1 }
 0x5e7   : > { %v3998_v54 = vld [vmem:[#allocation3 + $0x3e] sm:$0xff]  ;;  %v3999_v6 = vld [vmem:[#allocation3 + $0x46] sm:$0xff]  ;;  %v4008_v30 = vsel %vm9640_vm11, %v4000_v17, 0.0  ;;  %vm9652_vm11 = vmmov %vm9651_vm12  ;;  %v3987_v27 = vsel %vm9654_vm5, %v3979_v31, 0.0  ;;  %vm9667_vm5 = vnez %v9245_v35 }
 0x5e8   : > { %v4006_v24 = vsel %vm9644_vm0, %v3998_v54, 0.0  ;;  %v4007_v37 = vsel %vm9646_vm15, %v3999_v6, 0.0  ;;  %v3982_v26 = vld [vmem:[#allocation3 + $0x3d] sm:$0xff]  ;;  %vm9656_vm0 = vnez %v9655_v33  ;;  %v3981_v36 = vld [vmem:[#allocation3 + $0x35] sm:$0xff]  ;;  %vm9658_vm15 = vnez %v9657_v43  ;;  %v3984_v56 = vld [vmem:[#allocation3 + $0x4d] sm:$0xff] }
 0x5e9   : > { %v4088_v53 = vpack.c.bf16 %v4006_v24, %v4005_v34  ;;  %v4089_v42 = vpack.c.bf16 %v4008_v30, %v4007_v37  ;;  %v3988_v40 = vsel %vm9656_vm0, %v3980_v25, 0.0  ;;  %v3990_v57 = vsel %vm9658_vm15, %v3982_v26, 0.0  ;;  %v9660_v17 = vld [vmem:[#allocation52_spill] sm:$0xff]  ;;  %v3983_v30 = vld [vmem:[#allocation3 + $0x45] sm:$0xff] }
 0x5ea   : > { %v4082_v29 = vpack.c.bf16 %v3988_v40, %v3987_v27  ;;  %vm9661_vm2 = vnez %v9660_v17  ;;  %v3991_v46 = vsel %vm8229_vm6, %v3983_v30, 0.0  ;;  %v3992_v19 = vsel %vm8244_vm10, %v3984_v56, 0.0  ;;  %v4012_v4 = vld [vmem:[#allocation3 + $0x2f] sm:$0xff]  ;;  %v4014_v8 = vld [vmem:[#allocation3 + $0x3f] sm:$0xff]  ;;  %v4013_v31 = vld [vmem:[#allocation3 + $0x37] sm:$0xff] }
 0x5eb   : > { %6650 = vmatprep.mubr.msk.bf16.mxu1 %vm9637_vm14, %v4088_v53  ;;  %v3989_v54 = vsel %vm9661_vm2, %v3981_v36, 0.0  ;;  %vm9662_vm14 = vmmov %vm9652_vm11  ;;  %v4018_v37 = vsel %vm9667_vm5, %v4010_v11, 0.0  ;;  %v4084_v49 = vpack.c.bf16 %v3992_v19, %v3991_v46  ;;  %vm9668_vm0 = vnez %v9233_v0  ;;  %v6155_v33 = vld [vmem:[%s9599_s10 + $0x8] sm:$0x3]  ;;  %v4015_v40 = vld [vmem:[#allocation3 + $0x47] sm:$0xff] }
 0x5ec   : > { %6651 = vmatmul.mubr.msk.bf16.gmra.mrb[40].mxu1 %vm9651_vm12, %v4089_v42  ;;  %v4083_v6 = vpack.c.bf16 %v3990_v57, %v3989_v54  ;;  %vm9663_vm12 = vmmov %vm9652_vm11  ;;  %v4017_v45 = vsel %vm9668_vm0, %v4009_v18, 0.0  ;;  %v4011_v42 = vld [vmem:[#allocation3 + $0x27] sm:$0xff]  ;;  %vm9671_vm6 = vnez %v9237_v7  ;;  %vm9672_vm10 = vnez %v9250_v41  ;;  %v4016_v7 = vld [vmem:[#allocation3 + $0x4f] sm:$0xff] }
 0x5ed   : > { %6656 = vmatprep.mubr.msk.bf16.mxu1 %vm9652_vm11, %v4081_v48  ;;  %vm9664_vm11 = vmmov %vm9659_vm9  ;;  %v4252_v53 = vpack.c.bf16 %v4018_v37, %v4017_v45  ;;  %v4019_v48 = vsel %vm9671_vm6, %v4011_v42, 0.0  ;;  %v4020_v35 = vsel %vm9672_vm10, %v4012_v4, 0.0  ;;  %vm9673_vm2 = vnez %v9258_v58  ;;  %v4025_v43 = vld [vmem:[#allocation3 + $0x18] sm:$0xff]  ;;  %v4027_v17 = vld [vmem:[#allocation3 + $0x28] sm:$0xff] }
 0x5ee   : > { %vm9669_vm15 = vmmov %vm9663_vm12  ;;  %v4022_v0 = vsel %vm9673_vm2, %v4014_v8, 0.0  ;;  %v4253_v25 = vpack.c.bf16 %v4020_v35, %v4019_v48  ;;  %v6160_v30 = vld [vmem:[%s9599_s10 + $0xa] sm:$0x3]  ;;  %v4034_v56 = vld [vmem:[#allocation3 + $0x21] sm:$0xff] }
 0x5ef   : > { %vm9670_vm9 = vmmov %vm9663_vm12  ;;  %v4032_v11 = vld [vmem:[#allocation3 + $0x50] sm:$0xff]  ;;  %v4031_v24 = vld [vmem:[#allocation3 + $0x48] sm:$0xff] }
 0x5f0   : > { %vm9677_vm5 = vmmov %vm9670_vm9  ;;  %v4349_v19 = vpack.c.bf16 %v4032_v11, %v4031_v24  ;;  %v4036_v37 = vld [vmem:[#allocation3 + $0x31] sm:$0xff]  ;;  %v4038_v45 = vld [vmem:[#allocation3 + $0x41] sm:$0xff] }
 0x5f1   : > { %vm9681_vm6 = vmmov %vm9677_vm5 }
 0x5f2   : > { %vm9682_vm10 = vmmov %vm9677_vm5 }
 0x5f4   : > { %6657 = vmatmul.mubr.msk.bf16.vlgmr.msra.gmra.mrb[36].mxu1 %vm9662_vm14, %v4082_v29  ;;  %vm9674_vm14 = vmmov %vm9664_vm11  ;;  %v4028_v29 = vld [vmem:[#allocation3 + $0x30] sm:$0xff] }
 0x5f5   : > { %6665 = vmatpush3.bf16.msra.mxu1 %v4271_v63  ;;  %6660 = vmatprep.mubr.msk.bf16.mxu1 %vm9663_vm12, %v4083_v6  ;;  %v4365_v26 = vsel %vm9674_vm14, %v6150_v55, 0  ;;  %vm9675_vm12 = vnez %v9252_v44  ;;  %vm9678_vm0 = vmmov %vm9674_vm14  ;;  %v4026_v44 = vld [vmem:[#allocation3 + $0x20] sm:$0xff]  ;;  %v4347_v54 = vpack.c.bf16 %v4028_v29, %v4027_v17  ;;  %v4056_v29 = vld [vmem:[#allocation3 + $0x52] sm:$0xff] }
 0x5f6   : > { %7019 = vmatprep.subr.msk.bf16.mxu1 %vm9664_vm11, %v6150_v55  ;;  %v4021_v1 = vsel %vm9675_vm12, %v4013_v31, 0.0  ;;  %vm9676_vm11 = vmmov %vm9670_vm9  ;;  %v4346_v57 = vpack.c.bf16 %v4026_v44, %v4025_v43  ;;  %v4030_v63 = vld [vmem:[#allocation3 + $0x40] sm:$0xff]  ;;  %v6165_v31 = vld [vmem:[%s9599_s10 + $0xc] sm:$0x3] }
 0x5f7   : > { %v4254_v27 = vpack.c.bf16 %v4022_v0, %v4021_v1  ;;  %vm9683_vm2 = vmmov %vm9678_vm0  ;;  %v4039_v0 = vld [vmem:[#allocation3 + $0x49] sm:$0xff] }
 0x5f8   : > { %v4459_v6 = vsel %vm9683_vm2, %v6155_v33, 0  ;;  %vm9684_vm14 = vmmov %vm9677_vm5  ;;  %v4553_v48 = vsel %vm9683_vm2, %v6160_v30, 0 }
 0x5f9   : > { %vm9685_vm12 = vmmov %vm9677_vm5 }
 0x5fc   : > { %6661 = vmatmul.mubr.msk.bf16.gmra.mrb[40].mxu1 %vm9669_vm15, %v4084_v49  ;;  %vm9679_vm15 = vnez %v9260_v62  ;;  %v4029_v62 = vld [vmem:[#allocation3 + $0x38] sm:$0xff] }
 0x5fd   : > { %6666 = vmatprep.mubr.msk.bf16.mxu1 %vm9670_vm9, %v4252_v53  ;;  %v4023_v41 = vsel %vm9679_vm15, %v4015_v40, 0.0  ;;  %vm9680_vm9 = vnez %v9275_v51  ;;  %v4348_v55 = vpack.c.bf16 %v4030_v63, %v4029_v62  ;;  %v4033_v51 = vld [vmem:[#allocation3 + $0x19] sm:$0xff]  ;;  %v4035_v53 = vld [vmem:[#allocation3 + $0x29] sm:$0xff] }
 0x5fe   : > { %v4024_v58 = vsel %vm9680_vm9, %v4016_v7, 0.0  ;;  %v4041_v34 = vsel %vm9448_vm7, %v4033_v51, 0.0  ;;  %v4037_v49 = vld [vmem:[#allocation3 + $0x39] sm:$0xff]  ;;  %vm9690_vm9 = vnez %v9256_v52  ;;  %vm9691_vm7 = vnez %v9254_v47  ;;  %v4050_v52 = vld [vmem:[#allocation3 + $0x22] sm:$0xff]  ;;  %v9710_v63 = vld [vmem:[#allocation51_spill] sm:$0xff] }
 0x5ff   : > { %v4255_v36 = vpack.c.bf16 %v4024_v58, %v4023_v41  ;;  %v4044_v42 = vsel %vm9690_vm9, %v4036_v37, 0.0  ;;  %v4045_v3 = vsel %vm9691_vm7, %v4037_v49, 0.0  ;;  %v4049_v47 = vld [vmem:[#allocation3 + $0x1a] sm:$0xff]  ;;  %vm9700_vm9 = vnez %v9483_v61  ;;  %v4052_v40 = vld [vmem:[#allocation3 + $0x32] sm:$0xff]  ;;  %v4054_v41 = vld [vmem:[#allocation3 + $0x42] sm:$0xff] }
 0x600   : > { %v4058_v1 = vsel %vm9700_vm9, %v4050_v52, 0.0  ;;  %v4053_v7 = vld [vmem:[#allocation3 + $0x3a] sm:$0xff]  ;;  %vm9711_vm9 = vnez %v9710_v63  ;;  %v4075_v37 = vsel %vm8540_vm13, %v4067_v12, 0.0  ;;  %v6171_v52 = vld [vmem:[%s9723_s1] ss:$0 sm:$0xff] }
 0x601   : > { %v4069_v51 = vld [vmem:[#allocation3 + $0x3b] sm:$0xff] }
 0x604   : > { %6667 = vmatmul.mubr.msk.bf16.vlgmr.msra.gmra.mrb[36].mxu1 %vm9676_vm11, %v4253_v25  ;;  %vm9686_vm11 = vmmov %vm9678_vm0  ;;  %v4040_v25 = vld [vmem:[#allocation3 + $0x51] sm:$0xff] }
 0x605   : > { %6675 = vmatpush3.bf16.msra.mxu1 %v4365_v26  ;;  %6670 = vmatprep.mubr.msk.bf16.mxu1 %vm9677_vm5, %v4254_v27  ;;  %vm9687_vm5 = vnez %v9247_v38 }
 0x606   : > { %7020 = vmatprep.subr.msk.bf16.mxu1 %vm9678_vm0, %v6155_v33  ;;  %v4042_v46 = vsel %vm9687_vm5, %v4034_v56, 0.0  ;;  %vm9688_vm0 = vmmov %vm9681_vm6  ;;  %vm9697_vm5 = vnez %v9459_v15  ;;  %v4051_v15 = vld [vmem:[#allocation3 + $0x2a] sm:$0xff] }
 0x607   : > { %v4440_v18 = vpack.c.bf16 %v4042_v46, %v4041_v34  ;;  %vm9689_vm15 = vmmov %vm9688_vm0  ;;  %v4070_v56 = vld [vmem:[#allocation3 + $0x43] sm:$0xff]  ;;  %v4077_v46 = vsel %vm8529_vm4, %v4069_v51, 0.0 }
 0x60c   : > { %6671 = vmatmul.mubr.msk.bf16.gmra.mrb[40].mxu1 %vm9681_vm6, %v4255_v36  ;;  %vm9692_vm6 = vnez %v9388_v22 }
 0x60d   : > { %6676 = vmatprep.mubr.msk.bf16.mxu1 %vm9682_vm10, %v4346_v57  ;;  %v4046_v38 = vsel %vm9692_vm6, %v4038_v45, 0.0  ;;  %vm9693_vm10 = vnez %v9239_v9  ;;  %v4047_v9 = vsel %vm9697_vm5, %v4039_v0, 0.0  ;;  %v4055_v57 = vld [vmem:[#allocation3 + $0x4a] sm:$0xff] }
 0x60e   : > { %v4043_v4 = vsel %vm9693_vm10, %v4035_v53, 0.0  ;;  %v4442_v35 = vpack.c.bf16 %v4046_v38, %v4045_v3  ;;  %vm9703_vm10 = vnez %v9488_v50  ;;  %v4065_v50 = vld [vmem:[#allocation3 + $0x1b] sm:$0xff]  ;;  %v4071_v53 = vld [vmem:[#allocation3 + $0x4b] sm:$0xff] }
 0x60f   : > { %v4441_v8 = vpack.c.bf16 %v4044_v42, %v4043_v4  ;;  %v4073_v17 = vsel %vm9711_vm9, %v4065_v50, 0.0  ;;  %v4072_v42 = vld [vmem:[#allocation3 + $0x53] sm:$0xff]  ;;  %v9727_v4 = vld [vmem:[#allocation50_spill] sm:$0xff]  ;;  %v4786_v0 = vld [vmem:[%s9716_s26] sm:$0x3] }
 0x610   : > { %v9725_v3 = vld [vmem:[#allocation45_spill] sm:$0xff]  ;;  %vm9728_vm4 = vnez %v9727_v4 }
 0x614   : > { %6677 = vmatmul.mubr.msk.bf16.vlgmr.msra.gmra.mrb[36].mxu1 %vm9684_vm14, %v4347_v54  ;;  %vm9694_vm14 = vmmov %vm9688_vm0  ;;  %v9712_v54 = vld [vmem:[#allocation44_spill] sm:$0xff] }
 0x615   : > { %6685 = vmatpush3.bf16.msra.mxu1 %v4459_v6  ;;  %6680 = vmatprep.mubr.msk.bf16.mxu1 %vm9685_vm12, %v4348_v55  ;;  %vm9695_vm12 = vmmov %vm9688_vm0 }
 0x616   : > { %7021 = vmatprep.subr.msk.bf16.mxu1 %vm9686_vm11, %v6160_v30  ;;  %vm9696_vm11 = vmmov %vm9683_vm2  ;;  %vm9704_vm2 = vnez %v9493_v20  ;;  %v4066_v20 = vld [vmem:[#allocation3 + $0x23] sm:$0xff]  ;;  %v4068_v30 = vld [vmem:[#allocation3 + $0x33] sm:$0xff] }
 0x617   : > { %vm9701_vm7 = vmmov %vm9695_vm12  ;;  %v4647_v36 = vsel %vm9696_vm11, %v6165_v31, 0 }
 0x618   : > { %vm9702_vm6 = vmmov %vm9701_vm7 }
 0x619   : > { %vm9707_vm5 = vmmov %vm9702_vm6 }
 0x61a   : > { %vm9730_vm13 = vmmov %vm9696_vm11 }
 0x61c   : > { %6681 = vmatmul.mubr.msk.bf16.gmra.mrb[40].mxu1 %vm9688_vm0, %v4349_v19  ;;  %vm9698_vm0 = vnez %v9455_v59  ;;  %v4060_v59 = vsel %vm9703_vm10, %v4052_v40, 0.0  ;;  %v4078_v19 = vsel %vm8536_vm1, %v4070_v56, 0.0 }
 0x61d   : > { %6686 = vmatprep.mubr.msk.bf16.mxu1 %vm9689_vm15, %v4440_v18  ;;  %v4048_v22 = vsel %vm9698_vm0, %v4040_v25, 0.0  ;;  %vm9699_vm15 = vnez %v9480_v14  ;;  %v4061_v14 = vsel %vm9704_vm2, %v4053_v7, 0.0  ;;  %vm9708_vm0 = vmmov %vm9707_vm5  ;;  %v4630_v45 = vpack.c.bf16 %v4078_v19, %v4077_v46  ;;  %v6170_v25 = vld [vmem:[%s9721_s28] ss:$0 sm:$0xff]  ;;  %s9820_s28 = sld [smem:[#allocation31_spill]] }
 0x61e   : > { %v4057_v26 = vsel %vm9699_vm15, %v4049_v47, 0.0  ;;  %v4443_v27 = vpack.c.bf16 %v4048_v22, %v4047_v9  ;;  %vm9709_vm15 = vnez %v9504_v60  ;;  %vm9715_vm10 = vmmov %vm9708_vm0  ;;  %v4076_v60 = vsel %vm8523_vm3, %v4068_v30, 0.0 }
 0x61f   : > { %v4534_v33 = vpack.c.bf16 %v4058_v1, %v4057_v26  ;;  %v4629_v49 = vpack.c.bf16 %v4076_v60, %v4075_v37  ;;  %vm9724_vm2 = vmmov %vm9708_vm0  ;;  %vm9726_vm3 = vnez %v9725_v3  ;;  %v6181_v37 = vld [vmem:[%s9716_s26 + $0x4] sm:$0x3] }
 0x620   : > { %v4079_v38 = vsel %vm9726_vm3, %v4071_v53, 0.0  ;;  %vm9729_vm1 = vmmov %vm9708_vm0  ;;  %v7101_v3 = vld [vmem:[#allocation3 + $0x10] sm:$0xff] }
 0x624   : > { %6687 = vmatmul.mubr.msk.bf16.vlgmr.msra.gmra.mrb[36].mxu1 %vm9694_vm14, %v4441_v8  ;;  %vm9705_vm14 = vnez %v9495_v28  ;;  %v4063_v28 = vsel %vm8493_vm8, %v4055_v57, 0.0  ;;  %vm9722_vm8 = vmmov %vm9708_vm0  ;;  %v4080_v8 = vsel %vm9728_vm4, %v4072_v42, 0.0  ;;  %v9748_v42 = vld [vmem:[#allocation53_spill] sm:$0xff] }
 0x625   : > { %6695 = vmatpush3.bf16.msra.mxu1 %v4553_v48  ;;  %6690 = vmatprep.mubr.msk.bf16.mxu1 %vm9695_vm12, %v4442_v35  ;;  %v4062_v61 = vsel %vm9705_vm14, %v4054_v41, 0.0  ;;  %vm9706_vm12 = vnez %v9497_v5  ;;  %v4064_v5 = vsel %vm9709_vm15, %v4056_v29, 0.0  ;;  %v4631_v48 = vpack.c.bf16 %v4080_v8, %v4079_v38  ;;  %v6172_v35 = vld [vmem:[%s9716_s26 + $0x2] sm:$0x3]  ;;  %vm9731_vm14 = vmmov %vm9696_vm11 }
 0x626   : > { %7022 = vmatprep.subr.msk.bf16.mxu1 %vm9696_vm11, %v6165_v31  ;;  %v4059_v58 = vsel %vm9706_vm12, %v4051_v15, 0.0  ;;  %v4536_v43 = vpack.c.bf16 %v4062_v61, %v4061_v14  ;;  %v4537_v62 = vpack.c.bf16 %v4064_v5, %v4063_v28  ;;  %7023 = vmatprep.subr.msk.bf16.mxu0 %vm9730_vm13, %v6172_v35  ;;  %v4806_v31 = vsel %vm9731_vm14, %v6172_v35, 0  ;;  %vm9732_vm12 = vmmov %vm9696_vm11 }
 0x627   : > { %v4535_v44 = vpack.c.bf16 %v4060_v59, %v4059_v58  ;;  %6715 = vmatpush3.bf16.msra.mxu0 %v4806_v31  ;;  %vm9733_vm11 = vmmov %vm9708_vm0 }
 0x628   : > { %7024 = vmatprep.subr.msk.bf16.mxu0 %vm9732_vm12, %v4786_v0  ;;  %vm9736_vm15 = vmmov %vm9708_vm0 }
 0x629   : > { %vm9737_vm9 = vmmov %vm9732_vm12 }
 0x62a   : > { %vm9744_vm4 = vmmov %vm9708_vm0 }
 0x62b   : > { %vm9747_vm14 = vmmov %vm9708_vm0 }
 0x62c   : > { %6691 = vmatmul.mubr.msk.bf16.gmra.mrb[40].mxu1 %vm9701_vm7, %v4443_v27  ;;  %vm9713_vm7 = vnez %v9712_v54  ;;  %v5405_v54 = vld [vmem:[%s9734_s2] sm:$0x3]  ;;  %vm9749_vm12 = vmmov %vm9708_vm0 }
 0x62d   : > { %6696 = vmatprep.mubr.msk.bf16.mxu1 %vm9702_vm6, %v4534_v33  ;;  %v4074_v6 = vsel %vm9713_vm7, %v4066_v20, 0.0  ;;  %vm9714_vm6 = vmmov %vm9708_vm0 }
 0x62e   : > { %v4628_v55 = vpack.c.bf16 %v4074_v6, %v4073_v17  ;;  %vm9738_vm7 = vmmov %vm9737_vm9 }
 0x62f   : > { %vm9743_vm3 = vmmov %vm9738_vm7 }
 0x630   : > { %v4886_v24 = vsel %vm9743_vm3, %v4786_v0, 0  ;;  %vm9746_vm13 = vmmov %vm9743_vm3  ;;  %v6191_v0 = vld [vmem:[%s9716_s26 + $0x8] sm:$0x3] }
 0x634   : > { %6697 = vmatmul.mubr.msk.bf16.vlgmr.msra.gmra.mrb[36].mxu1 %vm9707_vm5, %v4535_v44  ;;  %vm9735_vm5 = vmmov %vm9708_vm0 }
 0x635   : > { %6705 = vmatpush3.bf16.msra.mxu1 %v4647_v36  ;;  %6700 = vmatprep.mubr.msk.bf16.mxu1 %vm9708_vm0, %v4536_v43 }
 0x636   : > { %7030 = vmatprep.subr.msk.bf16.mxu1 %vm9737_vm9, %v5405_v54  ;;  %vm9753_vm9 = vmmov %vm9708_vm0 }
 0x63c   : > { %6701 = vmatmul.mubr.msk.bf16.gmra.mrb[40].mxu1 %vm9714_vm6, %v4537_v62  ;;  %vm9739_vm6 = vmmov %vm9708_vm0 }
 0x63d   : > { %6706 = vmatprep.mubr.msk.bf16.mxu1 %vm9715_vm10, %v4628_v55  ;;  %v5419_v55 = vsel %vm9738_vm7, %v5405_v54, 0  ;;  %vm9740_vm10 = vmmov %vm9708_vm0 }
 0x63e   : > { %vm9754_vm7 = vmmov %vm9708_vm0 }
 0x644   : > { %6707 = vmatmul.mubr.msk.bf16.vlgmr.msra.gmra.mrb[36].mxu1 %vm9722_vm8, %v4629_v49  ;;  %vm9741_vm8 = vmmov %vm9708_vm0 }
 0x645   : > { %6710 = vmatprep.mubr.msk.bf16.mxu1 %vm9724_vm2, %v4630_v45  ;;  %6785 = vmatpush3.bf16.msra.mxu1 %v5419_v55  ;;  %vm9742_vm2 = vmmov %vm9708_vm0 }
 0x64c   : > { %6711 = vmatmul.mubr.msk.bf16.gmra.mrb[40].mxu1 %vm9729_vm1, %v4631_v48  ;;  %vm9745_vm1 = vmmov %vm9708_vm0  ;;  %v6186_v48 = vld [vmem:[%s9716_s26 + $0x6] sm:$0x3] }
 0x717   : > { %v6708_v47 = vpop.f32.mrb[36].mxu1 }
 0x718   : > { %v4731_v9 = vmul.f32 %v6708_v47, %v6170_v25  ;;  %v4683_v22 = vpop.f32.mrb[37].mxu1 }
 0x719   : > { %v4729_v26 = vmul.f32 %v6170_v25, %v4683_v22  ;;  %v6709_v1 = vpop.f32.mrb[38].mxu1 }
 0x71a   : > { %v4746_v27 = vadd.f32 %v6171_v52, %v4731_v9  ;;  %v4732_v33 = vmul.f32 %v6709_v1, %v6170_v25  ;;  %v4686_v40 = vpop.f32.mrb[39].mxu1  ;;  %v6196_v9 = vld [vmem:[%s9716_s26 + $0xa] sm:$0x3] }
 0x71b   : > { %v4744_v7 = vadd.f32 %v6171_v52, %v4729_v26  ;;  %v4730_v41 = vmul.f32 %v6170_v25, %v4686_v40 }
 0x71c   : > { %v4754_v15 = vmax.f32 %v4746_v27, 0.0  ;;  %v4747_v59 = vadd.f32 %v6171_v52, %v4732_v33  ;;  %v6201_v27 = vld [vmem:[%s9716_s26 + $0xc] sm:$0x3] }
 0x71d   : > { %v4752_v14 = vmax.f32 %v4744_v7, 0.0  ;;  %v4745_v61 = vadd.f32 %v6171_v52, %v4730_v41  ;;  %v9771_v33 = vld [vmem:[#allocation81_spill] sm:$0xff]  ;;  %v7100_v41 = vld [vmem:[%s7391_s19] sm:$0xff]  }
 0x71e   : > { %4762 = vst.msk [vmem:[#allocation3 + $0x28] sm:$0xff] %vm9733_vm11, %v4754_v15  ;;  %v4755_v58 = vmax.f32 %v4747_v59, 0.0  ;;  %vm9750_vm11 = vmmov %vm9743_vm3  ;;  %v9779_v15 = vld [vmem:[#allocation82_spill] sm:$0xff]  ;;  %v9784_v59 = vld [vmem:[#allocation83_spill] sm:$0xff] }
 0x71f   : > { %4760 = vst.msk [vmem:[#allocation3 + $0x18] sm:$0xff] %vm9735_vm5, %v4752_v14  ;;  %v4753_v44 = vmax.f32 %v4745_v61, 0.0  ;;  %v6712_v36 = vpop.f32.mrb[40].mxu1  ;;  %v4960_v4 = vsel %vm9750_vm11, %v6181_v37, 0  ;;  %vm9751_vm5 = vmmov %vm9708_vm0  ;;  %v9786_v14 = vld [vmem:[#allocation43_spill] sm:$0xff]  ;;  %v9788_v61 = vld [vmem:[#allocation76_spill] sm:$0xff] }
 0x720   : > { %4763 = vst.msk [vmem:[#allocation3 + $0x30] sm:$0xff] %vm9708_vm0, %v4755_v58  ;;  %v4735_v43 = vmul.f32 %v6712_v36, %v6170_v25  ;;  %v4699_v57 = vpop.f32.mrb[41].mxu1  ;;  %vm9765_vm11 = vmmov %vm9708_vm0  ;;  %v9790_v58 = vld [vmem:[#allocation77_spill] sm:$0xff]  ;;  %v6206_v36 = vld [vmem:[%s9775_s7] ss:$0 sm:$0xff] }
 0x721   : > { %4761 = vst.msk [vmem:[#allocation3 + $0x20] sm:$0xff] %vm9736_vm15, %v4753_v44  ;;  %v4733_v29 = vmul.f32 %v6170_v25, %v4699_v57  ;;  %v6713_v50 = vpop.f32.mrb[42].mxu1  ;;  %vm9752_vm15 = vmmov %vm9743_vm3  ;;  %v9792_v44 = vld [vmem:[#allocation79_spill] sm:$0xff] }
 0x722   : > { %v4750_v20 = vadd.f32 %v6171_v52, %v4735_v43  ;;  %v4736_v28 = vmul.f32 %v6713_v50, %v6170_v25  ;;  %v4702_v5 = vpop.f32.mrb[43].mxu1  ;;  %v6207_v57 = vld [vmem:[%s9777_s16] ss:$0 sm:$0xff] }
 0x723   : > { %v4748_v63 = vadd.f32 %v6171_v52, %v4733_v29  ;;  %v4734_v17 = vmul.f32 %v6170_v25, %v4702_v5 }
 0x724   : > { %v4758_v6 = vmax.f32 %v4750_v20, 0.0  ;;  %v4751_v62 = vadd.f32 %v6171_v52, %v4736_v28 }
 0x725   : > { %v4756_v30 = vmax.f32 %v4748_v63, 0.0  ;;  %v4749_v51 = vadd.f32 %v6171_v52, %v4734_v17  ;;  %v4773_v19 = vld [vmem:[#allocation3 + $0x28] sm:$0xff] }
 0x726   : > { %4766 = vst.msk [vmem:[#allocation3 + $0x48] sm:$0xff] %vm9739_vm6, %v4758_v6  ;;  %v4759_v56 = vmax.f32 %v4751_v62, 0.0  ;;  %v4771_v60 = vld [vmem:[#allocation3 + $0x18] sm:$0xff]  ;;  %vm9755_vm6 = vmmov %vm9743_vm3 }
 0x727   : > { %4764 = vst.msk [vmem:[#allocation3 + $0x38] sm:$0xff] %vm9740_vm10, %v4756_v30  ;;  %v4757_v12 = vmax.f32 %v4749_v51, 0.0  ;;  %v4774_v11 = vld [vmem:[#allocation3 + $0x30] sm:$0xff]  ;;  %v4783_v38 = vpack.c.bf16 %v4771_v60, %v7101_v3  ;;  %v5042_v31 = vsel %vm9755_vm6, %v6186_v48, 0  ;;  %vm9756_vm10 = vmmov %vm9708_vm0 }
 0x728   : > { %4767 = vst.msk [vmem:[#allocation3 + $0x50] sm:$0xff] %vm9741_vm8, %v4759_v56  ;;  %v4772_v34 = vld [vmem:[#allocation3 + $0x20] sm:$0xff]  ;;  %v4789_v18 = vpack.c.bf16 %v4774_v11, %v4773_v19  ;;  %vm9757_vm8 = vmmov %vm9708_vm0 }
 0x729   : > { %4765 = vst.msk [vmem:[#allocation3 + $0x40] sm:$0xff] %vm9742_vm2, %v4757_v12  ;;  %v4788_v46 = vpack.c.bf16 %v4772_v34, %v4771_v60  ;;  %v4784_v8 = vpack.c.bf16 %v4773_v19, %v4772_v34  ;;  %vm9758_vm2 = vmmov %vm9743_vm3 }
 0x72a   : > { %vm9759_vm3 = vmmov %vm9708_vm0 }
 0x72b   : > { %6717 = vmatmul.mubr.msk.bf16.vlgmr.msra.gmra.mrb[36].mxu0 %vm9744_vm4, %v4788_v46  ;;  %vm9760_vm4 = vmmov %vm9708_vm0 }
 0x72c   : > { %6725 = vmatpush3.bf16.msra.mxu0 %v4886_v24  ;;  %6720 = vmatprep.mubr.msk.bf16.mxu0 %vm9745_vm1, %v4789_v18  ;;  %vm9761_vm1 = vmmov %vm9758_vm2 }
 0x72d   : > { %7025 = vmatprep.subr.msk.bf16.mxu0 %vm9746_vm13, %v6181_v37  ;;  %v4777_v25 = vld [vmem:[#allocation3 + $0x48] sm:$0xff]  ;;  %v5124_v52 = vsel %vm9761_vm1, %v6191_v0, 0  ;;  %vm9762_vm13 = vmmov %vm9708_vm0  ;;  %v5696_v37 = vld [vmem:[#allocation2 + $0x20] sm:$0xff] }
 0x72e   : > { %v4775_v49 = vld [vmem:[#allocation3 + $0x38] sm:$0xff]  ;;  %vm9772_vm6 = vmmov %vm9759_vm3 }
 0x72f   : > { %v4785_v35 = vpack.c.bf16 %v4775_v49, %v4774_v11  ;;  %v4778_v22 = vld [vmem:[#allocation3 + $0x50] sm:$0xff] }
 0x730   : > { %v4776_v45 = vld [vmem:[#allocation3 + $0x40] sm:$0xff]  ;;  %v5035_v26 = vpack.c.bf16 %v4778_v22, %v4777_v25  ;;  %v5117_v40 = vpack.c.bf16 %v9771_v33, %v4778_v22 }
 0x731   : > { %v4790_v53 = vpack.c.bf16 %v4776_v45, %v4775_v49  ;;  %v4953_v47 = vpack.c.bf16 %v4777_v25, %v4776_v45  ;;  %v6219_v25 = vld [vmem:[%s7396_s27] ss:$0 sm:$0xff] }
 0x733   : > { %6721 = vmatmul.mubr.msk.bf16.gmra.mrb[40].mxu0 %vm9747_vm14, %v4790_v53  ;;  %vm9763_vm14 = vmmov %vm9708_vm0 }
 0x734   : > { %6726 = vmatprep.mubr.msk.bf16.mxu0 %vm9749_vm12, %v9748_v42  ;;  %vm9764_vm12 = vmmov %vm9761_vm1 }
 0x73b   : > { %6727 = vmatmul.mubr.msk.bf16.vlgmr.msra.gmra.mrb[36].mxu0 %vm9751_vm5, %v4783_v38  ;;  %vm9766_vm5 = vmmov %vm9708_vm0 }
 0x73c   : > { %6735 = vmatpush3.bf16.msra.mxu0 %v4960_v4  ;;  %6730 = vmatprep.mubr.msk.bf16.mxu0 %vm9708_vm0, %v4784_v8  ;;  %vm9767_vm0 = vmmov %vm9761_vm1  ;;  %v5697_v4 = vld [vmem:[#allocation2 + $0x28] sm:$0xff] }
 0x73d   : > { %7026 = vmatprep.subr.msk.bf16.mxu0 %vm9752_vm15, %v6186_v48  ;;  %v5206_v1 = vsel %vm9767_vm0, %v6196_v9, 0  ;;  %vm9768_vm15 = vmmov %vm9759_vm3  ;;  %v9796_v48 = vld [vmem:[#allocation80_spill] sm:$0xff] }
 0x743   : > { %6731 = vmatmul.mubr.msk.bf16.gmra.mrb[40].mxu0 %vm9753_vm9, %v4785_v35  ;;  %vm9769_vm9 = vmmov %vm9759_vm3 }
 0x744   : > { %6736 = vmatprep.mubr.msk.bf16.mxu0 %vm9754_vm7, %v4783_v38  ;;  %vm9770_vm7 = vmmov %vm9767_vm0  ;;  %v5698_v38 = vld [vmem:[#allocation2 + $0x30] sm:$0xff] }
 0x74b   : > { %6737 = vmatmul.mubr.msk.bf16.vlgmr.msra.gmra.mrb[36].mxu0 %vm9756_vm10, %v4784_v8  ;;  %vm9773_vm10 = vmmov %vm9759_vm3 }
 0x74c   : > { %6745 = vmatpush3.bf16.msra.mxu0 %v5042_v31  ;;  %6740 = vmatprep.mubr.msk.bf16.mxu0 %vm9757_vm8, %v4785_v35  ;;  %vm9774_vm8 = vmmov %vm9767_vm0  ;;  %v5695_v31 = vld [vmem:[#allocation2 + $0x18] sm:$0xff] }
 0x74d   : > { %7027 = vmatprep.subr.msk.bf16.mxu0 %vm9758_vm2, %v6191_v0  ;;  %v5288_v7 = vsel %vm9774_vm8, %v6201_v27, 0  ;;  %vm9776_vm2 = vmmov %vm9759_vm3 }
 0x74e   : > { %vm9781_vm1 = vmmov %vm9776_vm2 }
 0x753   : > { %6741 = vmatmul.mubr.msk.bf16.gmra.mrb[40].mxu0 %vm9759_vm3, %v4953_v47  ;;  %vm9778_vm3 = vmmov %vm9776_vm2 }
 0x754   : > { %6746 = vmatprep.mubr.msk.bf16.mxu0 %vm9760_vm4, %v4788_v46  ;;  %vm9780_vm4 = vmmov %vm9776_vm2 }
 0x75b   : > { %6747 = vmatmul.mubr.msk.bf16.vlgmr.msra.gmra.mrb[36].mxu0 %vm9762_vm13, %v4789_v18  ;;  %vm9782_vm13 = vmmov %vm9781_vm1 }
 0x75c   : > { %6755 = vmatpush3.bf16.msra.mxu0 %v5124_v52  ;;  %6750 = vmatprep.mubr.msk.bf16.mxu0 %vm9763_vm14, %v4790_v53  ;;  %vm9783_vm14 = vmmov %vm9781_vm1 }
 0x75d   : > { %7028 = vmatprep.subr.msk.bf16.mxu0 %vm9764_vm12, %v6196_v9  ;;  %vm9785_vm12 = vmmov %vm9781_vm1 }
 0x763   : > { %6751 = vmatmul.mubr.msk.bf16.gmra.mrb[40].mxu0 %vm9765_vm11, %v5035_v26  ;;  %vm9787_vm11 = vcmask 130048  }
 0x764   : > { %6756 = vmatprep.mubr.msk.bf16.mxu0 %vm9766_vm5, %v4784_v8  ;;  %vm9789_vm5 = vmmov %vm9787_vm11 }
 0x765   : > { %vm9791_vm0 = vmmov %vm9789_vm5 }
 0x766   : > { %vm9809_vm8 = vmmov %vm9791_vm0 }
 0x76b   : > { %6757 = vmatmul.mubr.msk.bf16.vlgmr.msra.gmra.mrb[36].mxu0 %vm9768_vm15, %v4785_v35  ;;  %vm9793_vm15 = vmmov %vm9791_vm0 }
 0x76c   : > { %6765 = vmatpush3.bf16.msra.mxu0 %v5206_v1  ;;  %6760 = vmatprep.mubr.msk.bf16.mxu0 %vm9769_vm9, %v4953_v47  ;;  %vm9794_vm9 = vmmov %vm9781_vm1 }
 0x76d   : > { %7029 = vmatprep.subr.msk.bf16.mxu0 %vm9770_vm7, %v6201_v27  ;;  %vm9795_vm7 = vmmov %vm9781_vm1 }
 0x773   : > { %6761 = vmatmul.mubr.msk.bf16.gmra.mrb[40].mxu0 %vm9772_vm6, %v5117_v40  ;;  %vm9803_vm6 = vmmov %vm9781_vm1 }
 0x774   : > { %6766 = vmatprep.mubr.msk.bf16.mxu0 %vm9773_vm10, %v4789_v18  ;;  %vm9805_vm10 = vmmov %vm9781_vm1 }
 0x77b   : > { %6767 = vmatmul.mubr.msk.bf16.vlgmr.msra.gmra.mrb[36].mxu0 %vm9776_vm2, %v4790_v53  ;;  %vm9810_vm2 = vmmov %vm9791_vm0 }
 0x77c   : > { %6775 = vmatpush3.bf16.msra.mxu0 %v5288_v7  ;;  %6770 = vmatprep.mubr.msk.bf16.mxu0 %vm9778_vm3, %v5035_v26  ;;  %v9797_v26 = vld [vmem:[#allocation39_spill] sm:$0xff]  ;;  %vm9811_vm3 = vmmov %vm9791_vm0 }
 0x77d   : > { %6794 = vmatprep.subr.bf16.mxu0 %v7100_v41  ;;  %v5707_v1 = vadd.f32 %v5697_v4, %v9797_v26  ;;  %v6220_v7 = vld [vmem:[#allocation4] ss:$0 sm:$0xff] }
 0x783   : > { %6771 = vmatmul.mubr.msk.bf16.gmra.mrb[40].mxu0 %vm9780_vm4, %v9779_v15  ;;  %vm9812_vm4 = vmmov %vm9791_vm0 }
 0x784   : > { %6776 = vmatprep.mubr.msk.bf16.mxu0 %vm9781_vm1, %v4785_v35  ;;  %v5706_v35 = vadd.f32 %v5696_v37, %v9796_v48  ;;  %vm9822_vm1 = vmmov %vm9791_vm0 }
 0x786   : > { %v5714_v22 = vadd.f32 %v5706_v35, %v5698_v38 }
 0x78b   : > { %6777 = vmatmul.mubr.msk.bf16.vlgmr.msra.gmra.mrb[36].mxu0 %vm9782_vm13, %v4953_v47  ;;  %v5699_v47 = vld [vmem:[#allocation2 + $0x38] sm:$0xff]  ;;  %vm9823_vm13 = vmmov %vm9791_vm0 }
 0x78c   : > { %6780 = vmatprep.mubr.msk.bf16.mxu0 %vm9783_vm14, %v5117_v40  ;;  %6795 = vmatpush3.bf16.msra.mxu0 %v7100_v41  ;;  %v9798_v41 = vld [vmem:[#allocation42_spill] sm:$0xff]  ;;  %vm9824_vm14 = vmmov %vm9791_vm0 }
 0x78d   : > { %v5712_v15 = vadd.f32 %v9798_v41, %v5696_v37 }
 0x793   : > { %6781 = vmatmul.mubr.msk.bf16.gmra.mrb[40].mxu0 %vm9785_vm12, %v9784_v59  ;;  %v9799_v59 = vld [vmem:[#allocation78_spill] sm:$0xff]  ;;  %vm9825_vm12 = vmmov %vm9791_vm0 }
 0x794   : > { %6796 = vmatprep.mubr.msk.bf16.mxu0 %vm9787_vm11, %v9786_v14  ;;  %v5705_v14 = vadd.f32 %v5695_v31, %v9799_v59  ;;  %vm9826_vm11 = vmmov %vm9791_vm0 }
 0x79b   : > { %6797 = vmatmul.mubr.msk.bf16.vlgmr.msra.gmra.mrb[44].mxu0 %vm9789_vm5, %v9788_v61  ;;  %v5700_v61 = vld [vmem:[#allocation2 + $0x40] sm:$0xff]  ;;  %vm9827_vm5 = vmmov %vm9791_vm0 }
 0x79c   : > { %6800 = vmatprep.mubr.msk.bf16.mxu0 %vm9791_vm0, %v9790_v58 }
 0x7a3   : > { %6801 = vmatmul.mubr.msk.bf16.gmra.mrb[48].mxu0 %vm9793_vm15, %v9792_v44  ;;  %vm9828_vm15 = vmmov %vm9791_vm0 }
 0x85e   : > { %v6778_v43 = vpop.f32.mrb[36].mxu0 }
 0x85f   : > { %v5372_v29 = vmul.f32 %v6778_v43, %v6206_v36  ;;  %v5324_v50 = vpop.f32.mrb[37].mxu0  ;;  %v5715_v43 = vadd.f32 %v5707_v1, %v5699_v47 }
 0x860   : > { %v5370_v20 = vmul.f32 %v6206_v36, %v5324_v50  ;;  %v6779_v28 = vpop.f32.mrb[38].mxu0 }
 0x861   : > { %v5387_v5 = vadd.f32 %v6207_v57, %v5372_v29  ;;  %v5373_v63 = vmul.f32 %v6779_v28, %v6206_v36  ;;  %v5327_v17 = vpop.f32.mrb[39].mxu0  ;;  %v9800_v28 = vld [vmem:[#allocation56_spill] sm:$0xff] }
 0x862   : > { %v5385_v54 = vadd.f32 %v6207_v57, %v5370_v20  ;;  %v5371_v6 = vmul.f32 %v6206_v36, %v5327_v17  ;;  %v5713_v20 = vadd.f32 %v5705_v14, %v5697_v4 }
 0x863   : > { %v5388_v62 = vadd.f32 %v6207_v57, %v5373_v63  ;;  %v5395_v30 = vmax.f32 %v5387_v5, 0.0  ;;  %v5722_v5 = vmul.f32 %v5714_v22, %v9800_v28  ;;  %v9813_v22 = vld [vmem:[#allocation60_spill] sm:$0xff] }
 0x864   : > { %v5386_v55 = vadd.f32 %v6207_v57, %v5371_v6  ;;  %v5393_v56 = vmax.f32 %v5385_v54, 0.0  ;;  %v9801_v6 = vld [vmem:[#allocation40_spill] sm:$0xff] }
 0x865   : > { %v5396_v51 = vmax.f32 %v5388_v62, 0.0  ;;  %v5710_v62 = vadd.f32 %v5700_v61, %v9801_v6 }
 0x866   : > { %v5394_v12 = vmax.f32 %v5386_v55, 0.0  ;;  %v6782_v11 = vpop.f32.mrb[40].mxu0  ;;  %v9802_v55 = vld [vmem:[#allocation55_spill] sm:$0xff] }
 0x867   : > { %v5402_v60 = vpack.c.bf16 %v5396_v51, %v5395_v30  ;;  %v5376_v34 = vmul.f32 %v6782_v11, %v6206_v36  ;;  %v5340_v46 = vpop.f32.mrb[41].mxu0  ;;  %v5720_v30 = vmul.f32 %v5712_v15, %v9802_v55  ;;  %v9804_v11 = vld [vmem:[#allocation59_spill] sm:$0xff] }
 0x868   : > { %v5401_v24 = vpack.c.bf16 %v5394_v12, %v5393_v56  ;;  %v5374_v19 = vmul.f32 %v6206_v36, %v5340_v46  ;;  %v6783_v18 = vpop.f32.mrb[42].mxu0  ;;  %v9806_v46 = vld [vmem:[#allocation38_spill] sm:$0xff] }
 0x869   : > { %v5391_v49 = vadd.f32 %v6207_v57, %v5376_v34  ;;  %v5377_v45 = vmul.f32 %v6783_v18, %v6206_v36  ;;  %v5343_v53 = vpop.f32.mrb[43].mxu0  ;;  %v9807_v18 = vld [vmem:[#allocation57_spill] sm:$0xff] }
 0x86a   : > { %v5389_v42 = vadd.f32 %v6207_v57, %v5374_v19  ;;  %v5375_v3 = vmul.f32 %v6206_v36, %v5343_v53  ;;  %6786 = vmatprep.mubr.msk.bf16.mxu1 %vm9794_vm9, %v5401_v24  ;;  %v5708_v24 = vadd.f32 %v5698_v38, %v9806_v46  ;;  %v5721_v37 = vmul.f32 %v5713_v20, %v9807_v18  ;;  %v9808_v53 = vld [vmem:[#allocation41_spill] sm:$0xff]  ;;  %vm9829_vm9 = vmmov %vm9791_vm0 }
 0x86b   : > { %v5392_v8 = vadd.f32 %v6207_v57, %v5377_v45  ;;  %6787 = vmatmul.mubr.msk.bf16.vlgmr.msra.gmra.mrb[44].mxu1 %vm9795_vm7, %v5402_v60  ;;  %v5399_v52 = vmax.f32 %v5391_v49, 0.0  ;;  %v5723_v60 = vmul.f32 %v5715_v43, %v9804_v11  ;;  %v5702_v45 = vld [vmem:[#allocation2 + $0x50] sm:$0xff]  ;;  %vm9830_vm7 = vmmov %vm9791_vm0 }
 0x86c   : > { %v5390_v0 = vadd.f32 %v6207_v57, %v5375_v3  ;;  %v5397_v27 = vmax.f32 %v5389_v42, 0.0  ;;  %v5709_v42 = vadd.f32 %v5699_v47, %v9808_v53  ;;  %v5718_v4 = vadd.f32 %v5710_v62, %v5702_v45  ;;  %v6213_v62 = vld [vmem:[%s9820_s28] ss:$0 sm:$0xff] }
 0x86d   : > { %v5400_v9 = vmax.f32 %v5392_v8, 0.0  ;;  %v5716_v35 = vadd.f32 %v5708_v24, %v5700_v61  ;;  %v9818_v61 = vld [vmem:[#allocation66_spill] sm:$0xff] }
 0x86e   : > { %v5398_v33 = vmax.f32 %v5390_v0, 0.0  ;;  %v6798_v40 = vpop.f32.mrb[44].mxu0  ;;  %v5726_v26 = vmul.f32 %v5718_v4, %v9813_v22 }
 0x86f   : > { %v5404_v58 = vpack.c.bf16 %v5400_v9, %v5399_v52  ;;  %v5834_v44 = vmul.f32 %v6798_v40, %v6219_v25  ;;  %v5794_v36 = vpop.f32.mrb[45].mxu0  ;;  %v7102_v9 = vld [vmem:[#allocation2 + $0x48] sm:$0xff]  ;;  %v9814_v40 = vld [vmem:[#allocation58_spill] sm:$0xff] }
 0x870   : > { %v5403_v57 = vpack.c.bf16 %v5398_v33, %v5397_v27  ;;  %v5832_v29 = vmul.f32 %v6219_v25, %v5794_v36  ;;  %v6799_v50 = vpop.f32.mrb[46].mxu0  ;;  %v5717_v47 = vadd.f32 %v7102_v9, %v5709_v42  ;;  %v5724_v41 = vmul.f32 %v5716_v35, %v9814_v40 }
 0x871   : > { %v5849_v63 = vadd.f32 %v6220_v7, %v5834_v44  ;;  %v5835_v17 = vmul.f32 %v6799_v50, %v6219_v25  ;;  %v5797_v54 = vpop.f32.mrb[47].mxu0 }
 0x872   : > { %v5847_v51 = vadd.f32 %v6220_v7, %v5832_v29  ;;  %v5833_v56 = vmul.f32 %v6219_v25, %v5797_v54  ;;  %6790 = vmatprep.mubr.msk.bf16.mxu1 %vm9803_vm6, %v5403_v57  ;;  %v9821_v57 = vld [vmem:[#allocation61_spill] sm:$0xff]  ;;  %vm9831_vm6 = vmmov %vm9791_vm0 }
 0x873   : > { %v5857_v12 = vadd.f32 %v5849_v63, %v5722_v5  ;;  %v5850_v34 = vadd.f32 %v6220_v7, %v5835_v17  ;;  %6791 = vmatmul.mubr.msk.bf16.gmra.mrb[48].mxu1 %vm9805_vm10, %v5404_v58  ;;  %v9819_v58 = vld [vmem:[#allocation54_spill] sm:$0xff]  ;;  %v5725_v29 = vmul.f32 %v5717_v47, %v9821_v57  ;;  %v6212_v5 = vld [vmem:[%s9816_s22] ss:$0 sm:$0xff]  ;;  %vm9832_vm10 = vmmov %vm9791_vm0 }
 0x874   : > { %v5855_v19 = vadd.f32 %v5847_v51, %v5720_v30  ;;  %v5848_v49 = vadd.f32 %v6220_v7, %v5833_v56  ;;  %v5727_v44 = vmul.f32 %v9819_v58, %v9818_v61  ;;  %v6128_v17 = vld [vmem:[%s9817_s23] ss:$0 sm:$0xff] }
 0x875   : > { %6239 = vst.msk [vmem:[%s7536_s11 + $0xd0] sm:$0xff] %vm9809_vm8, %v5857_v12  ;;  %v5858_v3 = vadd.f32 %v5850_v34, %v5723_v60 }
 0x876   : > { %6237 = vst.msk [vmem:[%s7536_s11 + $0xc0] sm:$0xff] %vm9810_vm2, %v5855_v19  ;;  %v5856_v8 = vadd.f32 %v5848_v49, %v5721_v37  ;;  %v6802_v48 = vpop.f32.mrb[48].mxu0 }
 0x877   : > { %6240 = vst.msk [vmem:[%s7536_s11 + $0xd8] sm:$0xff] %vm9811_vm3, %v5858_v3  ;;  %v5838_v38 = vmul.f32 %v6802_v48, %v6219_v25  ;;  %v5810_v31 = vpop.f32.mrb[49].mxu0 }
 0x878   : > { %6238 = vst.msk [vmem:[%s7536_s11 + $0xc8] sm:$0xff] %vm9812_vm4, %v5856_v8  ;;  %v5836_v0 = vmul.f32 %v6219_v25, %v5810_v31  ;;  %v6803_v52 = vpop.f32.mrb[50].mxu0 }
 0x879   : > { %v5853_v1 = vadd.f32 %v6220_v7, %v5838_v38  ;;  %v5839_v27 = vmul.f32 %v6803_v52, %v6219_v25  ;;  %v5813_v33 = vpop.f32.mrb[51].mxu0 }
 0x87a   : > { %v5851_v15 = vadd.f32 %v6220_v7, %v5836_v0  ;;  %v5837_v59 = vmul.f32 %v6219_v25, %v5813_v33  ;;  %v6127_v25 = vld [vmem:[%s9815_s0] ss:$0 sm:$0xff] }
 0x87b   : > { %v5861_v14 = vadd.f32 %v5853_v1, %v5726_v26  ;;  %v5854_v36 = vadd.f32 %v6220_v7, %v5839_v27  ;;  %v3837_v63 = vmul.f32 %v8665_v32, %v6127_v25  ;;  %v3835_v54 = vmul.f32 %v6127_v25, %v8667_v13 }
 0x87c   : > { %v5859_v43 = vadd.f32 %v5851_v15, %v5724_v41  ;;  %v5852_v50 = vadd.f32 %v6220_v7, %v5837_v59  ;;  %v3838_v7 = vmul.f32 %v8669_v10, %v6127_v25  ;;  %v3836_v51 = vmul.f32 %v6127_v25, %v8671_v39 }
 0x87d   : > { %6243 = vst.msk [vmem:[%s7536_s11 + $0xf0] sm:$0xff] %vm9822_vm1, %v5861_v14  ;;  %v5862_v20 = vadd.f32 %v5854_v36, %v5727_v44  ;;  %v3852_v11 = vadd.f32 %v6128_v17, %v3837_v63  ;;  %v3850_v32 = vadd.f32 %v6128_v17, %v3835_v54  ;;  %v3841_v39 = vmul.f32 %v8677_v23, %v6127_v25 }
 0x87e   : > { %6241 = vst.msk [vmem:[%s7536_s11 + $0xe0] sm:$0xff] %vm9823_vm13, %v5859_v43  ;;  %v5860_v28 = vadd.f32 %v5852_v50, %v5725_v29  ;;  %v3853_v19 = vadd.f32 %v6128_v17, %v3838_v7  ;;  %v3851_v10 = vadd.f32 %v6128_v17, %v3836_v51  ;;  %v3839_v42 = vmul.f32 %v6127_v25, %v8679_v2 }
 0x87f   : > { %6244 = vst.msk [vmem:[%s7536_s11 + $0xf8] sm:$0xff] %vm9824_vm14, %v5862_v20  ;;  %v3842_v8 = vmul.f32 %v8681_v21, %v6127_v25  ;;  %v3840_v38 = vmul.f32 %v6127_v25, %v8683_v16  ;;  %v3856_v0 = vadd.f32 %v6128_v17, %v3841_v39 }
 0x880   : > { %6242 = vst.msk [vmem:[%s7536_s11 + $0xe8] sm:$0xff] %vm9825_vm12, %v5860_v28  ;;  %v3854_v47 = vadd.f32 %v6128_v17, %v3839_v42 }
 0x881   : > { %v3857_v26 = vadd.f32 %v6128_v17, %v3842_v8  ;;  %v3855_v33 = vadd.f32 %v6128_v17, %v3840_v38 }
 0x93e   : > { %v6788_v6 = vpop.f32.mrb[44].mxu1 }
 0x93f   : > { %v5495_v55 = vmul.f32 %v6788_v6, %v6212_v5  ;;  %v5455_v30 = vpop.f32.mrb[45].mxu1 }
 0x940   : > { %v5493_v56 = vmul.f32 %v6212_v5, %v5455_v30  ;;  %v6789_v12 = vpop.f32.mrb[46].mxu1 }
 0x941   : > { %v5510_v60 = vadd.f32 %v6213_v62, %v5495_v55  ;;  %v5496_v34 = vmul.f32 %v6789_v12, %v6212_v5  ;;  %v5458_v46 = vpop.f32.mrb[47].mxu1 }
 0x942   : > { %v5508_v24 = vadd.f32 %v6213_v62, %v5493_v56  ;;  %v5494_v13 = vmul.f32 %v6212_v5, %v5458_v46 }
 0x943   : > { %v5518_v18 = vadd.f32 %v5510_v60, %v3852_v11  ;;  %v5511_v37 = vadd.f32 %v6213_v62, %v5496_v34 }
 0x944   : > { %v5516_v49 = vadd.f32 %v5508_v24, %v3850_v32  ;;  %v5509_v45 = vadd.f32 %v6213_v62, %v5494_v13 }
 0x945   : > { %6231 = vst.msk [vmem:[%s7536_s11 + $0x90] sm:$0xff] %vm9826_vm11, %v5518_v18  ;;  %v5519_v53 = vadd.f32 %v5511_v37, %v3853_v19 }
 0x946   : > { %6229 = vst.msk [vmem:[%s7536_s11 + $0x80] sm:$0xff] %vm9827_vm5, %v5516_v49  ;;  %v5517_v3 = vadd.f32 %v5509_v45, %v3851_v10  ;;  %v6792_v4 = vpop.f32.mrb[48].mxu1 }
 0x947   : > { %6232 = vst.msk [vmem:[%s7536_s11 + $0x98] sm:$0xff] %vm9791_vm0, %v5519_v53  ;;  %v5499_v48 = vmul.f32 %v6792_v4, %v6212_v5  ;;  %v5471_v35 = vpop.f32.mrb[49].mxu1 }
 0x948   : > { %6230 = vst.msk [vmem:[%s7536_s11 + $0x88] sm:$0xff] %vm9828_vm15, %v5517_v3  ;;  %v5497_v23 = vmul.f32 %v6212_v5, %v5471_v35  ;;  %v6793_v31 = vpop.f32.mrb[50].mxu1 }
 0x949   : > { %v5514_v2 = vadd.f32 %v6213_v62, %v5499_v48  ;;  %v5500_v52 = vmul.f32 %v6793_v31, %v6212_v5  ;;  %v5474_v9 = vpop.f32.mrb[51].mxu1 }
 0x94a   : > { %v5512_v21 = vadd.f32 %v6213_v62, %v5497_v23  ;;  %v5498_v22 = vmul.f32 %v6212_v5, %v5474_v9 }
 0x94b   : > { %v5522_v1 = vadd.f32 %v5514_v2, %v3856_v0  ;;  %v5515_v27 = vadd.f32 %v6213_v62, %v5500_v52 }
 0x94c   : > { %v5520_v16 = vadd.f32 %v5512_v21, %v3854_v47  ;;  %v5513_v40 = vadd.f32 %v6213_v62, %v5498_v22 }
 0x94d   : > { %6235 = vst.msk [vmem:[%s7536_s11 + $0xb0] sm:$0xff] %vm9829_vm9, %v5522_v1  ;;  %v5523_v41 = vadd.f32 %v5515_v27, %v3857_v26 }
 0x94e   : > { %6233 = vst.msk [vmem:[%s7536_s11 + $0xa0] sm:$0xff] %vm9830_vm7, %v5520_v16  ;;  %v5521_v15 = vadd.f32 %v5513_v40, %v3855_v33 }
 0x94f   : > { %6236 = vst.msk [vmem:[%s7536_s11 + $0xb8] sm:$0xff] %vm9831_vm6, %v5523_v41 }
 0x950   : > { %6234 = vst.msk [vmem:[%s7536_s11 + $0xa8] sm:$0xff] %vm9832_vm10, %v5521_v15 }
 0x951 PF: > { %s96_s15 = sadd.s32 1, %s7141_s15  }
 0x952   : > { %p93_p2 = scmp.ge.s32.totalorder %s96_s15, 4  }
 0x954   :  { %95 = sbr.rel (!%p93_p2) target bundleno = 82 (0x52), region = 292 }
 0x95b   :  { %5919 = vsyncpa [#allocation5], 1 }
 0x95c   :  { %5921 = vsyncpa [#allocation5 + $0x1], 1 }

</bundles_post_ra>
